<compile_context>
chip_gen: v7x
topology: tpu7x:2x2x1
jax: 0.10.0
libtpu: 0.0.40
codegen_flags: <defaults>
</compile_context>

<pallas_src>
import jax
import jax.numpy as jnp
import numpy as np
from jax import lax
from jax.experimental import pallas as pl
from jax.experimental.pallas import tpu as pltpu


_N_STATE_IN = 7      # x_seq, h0, c0, r0, V0, s0, suffix-matrix
_N_W_PER_LAYER = 10  # wg, b, wro, bro, wd, bd, wu, bu, wvo, bvo


def _round_up(x, m):
    return ((x + m - 1) // m) * m


# ------------------------------ fused kernel ------------------------------

def _make_fused_kernel(nlayers, H, Tm, seq_len, init_depths):
    def kernel(*refs):
        n_in = _N_STATE_IN + _N_W_PER_LAYER * nlayers
        in_refs = refs[:n_in]
        o_ref, ho_ref, co_ref, ro_ref, Vo_ref, so_ref = refs[n_in:n_in + 6]

        (x_ref, h0_ref, c0_ref, r0_ref, V0_ref, s0_ref, suf_ref) = in_refs[:_N_STATE_IN]
        w_refs = in_refs[_N_STATE_IN:]

        f32 = jnp.float32
        bf16 = jnp.bfloat16

        # State is carried directly in the resident output refs: initialize once.
        ho_ref[...] = h0_ref[...]
        co_ref[...] = c0_ref[...]
        ro_ref[...] = r0_ref[...]
        Vo_ref[...] = V0_ref[...]
        so_ref[...] = s0_ref[...]

        lane_idx = lax.broadcasted_iota(jnp.int32, (1, Tm), 1)   # loop invariant

        def step(t, carry):
            x = x_ref[pl.ds(t, 1), :]                            # (1, E_pad) f32
            for l in range(nlayers):
                (wg, b, wro, bro, wd, bd, wu, bu, wvo, bvo) = (
                    w_refs[l * _N_W_PER_LAYER:(l + 1) * _N_W_PER_LAYER])

                h = ho_ref[l:l + 1, :]                 # (1, H) projected prev output
                c = co_ref[l:l + 1, :]                 # (1, H)
                r = ro_ref[l:l + 1, :]                 # (1, H)
                s_row = so_ref[l:l + 1, :]             # (1, Tm), zero past live depth
                depth = init_depths[l] + t             # stack depth before this push

                # ---- LSTMCell: single fused [x|r|h] operand (bf16 MXU, f32 acc) ----
                xrh = jnp.concatenate([x, r, h], axis=1).astype(bf16)
                gates = (jnp.dot(xrh, wg[...], preferred_element_type=f32)
                         + b[...])                                      # (1, 4H) f32
                i_g = jax.nn.sigmoid(gates[:, 0:H])
                f_g = jax.nn.sigmoid(gates[:, H:2 * H])
                g_g = jnp.tanh(gates[:, 2 * H:3 * H])
                o_g = jax.nn.sigmoid(gates[:, 3 * H:4 * H])
                c_new = f_g * c + i_g * g_g
                h_act = o_g * jnp.tanh(c_new)

                # ---- output projections (W_v|W_o fused; d/u as lane reductions) ----
                rnn_out = (jnp.dot(h_act.astype(bf16), wro[...],
                                   preferred_element_type=f32) + bro[...])   # (1, H)
                d_t = jnp.sum(rnn_out * wd[...], axis=1, keepdims=True) + bd[...]
                u_t = jnp.sum(rnn_out * wu[...], axis=1, keepdims=True) + bu[...]
                vo = (jnp.dot(rnn_out.astype(bf16), wvo[...],
                              preferred_element_type=f32) + bvo[...])        # (1, 2H)
                v_t = vo[:, 0:H]
                o_t = vo[:, H:2 * H]

                # ---- differentiable-stack update (row layout, f32 MXU suffix sums) ----
                # shid_prev[j] = sum_{k > j} s[k]   via s_row @ strict-lower-tri
                shid_prev = jnp.dot(s_row, suf_ref[...],
                                    preferred_element_type=f32)              # (1, Tm)
                pop = jnp.maximum(u_t - shid_prev, 0.0)
                s_head = jnp.maximum(s_row - pop, 0.0)
                new_s_row = jnp.where(lane_idx == depth,
                                      jnp.broadcast_to(d_t, (1, Tm)), s_head)
                shid_new = jnp.dot(new_s_row, suf_ref[...],
                                   preferred_element_type=f32)               # (1, Tm)
                r_scalars = jnp.minimum(new_s_row,
                                        jnp.maximum(1.0 - shid_new, 0.0))    # (1, Tm)

                # push v_t: single dynamic-row store (no full-stack rewrite)
                Vo_ref[pl.ds(l * Tm + depth, 1), :] = v_t
                V_layer = Vo_ref[l * Tm:(l + 1) * Tm, :]                     # (Tm, H)
                new_r = jnp.dot(r_scalars, V_layer,
                                preferred_element_type=f32)                  # (1, H)

                # ---- commit per-layer state (in the resident output refs) ----
                ho_ref[l:l + 1, :] = rnn_out   # PyTorch stores the projected output
                co_ref[l:l + 1, :] = c_new
                ro_ref[l:l + 1, :] = new_r
                so_ref[l:l + 1, :] = new_s_row

                x = o_t                        # input of the next layer

            o_ref[pl.ds(t, 1), :] = x          # per-step output row
            return carry

        lax.fori_loop(0, seq_len, step, 0)

    return kernel


# ------------------------------ host wrappers ------------------------------

def _initial_depth(st):
    _, _, V_l, s_l = st
    if s_l is None or V_l is None:
        return 0
    return int(s_l.shape[0])


def lstm_stack_sequence_forward(layer_kparams, x_seq, state):
    """Run the whole sequence through the LSTM stack in one fused pallas_call.

    x_seq: (seq_len, embedding_dim) f32.
    state: list (per layer) of ((h, c), r, V, s) in the PyTorch layout
           (h/c/r: (1, H); V: (T, H) or None; s: (T, 1) or None).
    Returns (o_seq (seq_len, H), new_state in the same PyTorch layout).
    """
    nlayers = len(layer_kparams)
    seq_len, e_dim = x_seq.shape
    H = layer_kparams[0]["wro"].shape[0]
    f32 = jnp.float32

    depths = tuple(_initial_depth(st) for st in state)
    # Pad the stack capacity to a lane-dense multiple of 128.
    Tm = _round_up(max(depths) + seq_len, 128)
    # Padded input width is baked into the fused gate weight of layer 0.
    e_pad = layer_kparams[0]["wg"].shape[0] - 2 * H

    # Pack the initial state into padded, kernel-friendly layouts.
    h0 = jnp.concatenate([st[0][0] for st in state], axis=0).astype(f32)   # (L, H)
    c0 = jnp.concatenate([st[0][1] for st in state], axis=0).astype(f32)   # (L, H)
    r0 = jnp.concatenate([st[1] for st in state], axis=0).astype(f32)      # (L, H)
    V_pads, s_pads = [], []
    for st, d in zip(state, depths):
        _, _, V_l, s_l = st
        if d == 0:
            V_pads.append(jnp.zeros((Tm, H), f32))
            s_pads.append(jnp.zeros((1, Tm), f32))
        else:
            V_pads.append(jnp.pad(V_l.astype(f32), ((0, Tm - d), (0, 0))))
            s_pads.append(jnp.pad(s_l.astype(f32).reshape(1, d),
                                  ((0, 0), (0, Tm - d))))
    V0 = jnp.concatenate(V_pads, axis=0)      # (L*Tm, H)
    s0 = jnp.concatenate(s_pads, axis=0)      # (L, Tm)

    # Constant strictly-lower-triangular matrix: suf[k, j] = 1 if k > j.
    idx = np.arange(Tm)
    suf = jnp.asarray((idx[:, None] > idx[None, :]).astype(np.float32))    # (Tm, Tm)

    # Lane-pad the input sequence to the fused weight width (unmasked loads).
    x_pad = jnp.pad(x_seq.astype(f32), ((0, 0), (0, e_pad - e_dim)))       # (T, E_pad)

    args = [x_pad, h0, c0, r0, V0, s0, suf]
    for kp in layer_kparams:
        args += [kp["wg"], kp["b"], kp["wro"], kp["bro"],
                 kp["wd"], kp["bd"], kp["wu"], kp["bu"], kp["wvo"], kp["bvo"]]

    def _full_spec(arr):
        nd = arr.ndim
        return pl.BlockSpec(arr.shape, lambda i, _nd=nd: (0,) * _nd)

    in_specs = [_full_spec(a) for a in args]

    out_shape = (
        jax.ShapeDtypeStruct((seq_len, H), f32),          # per-step o_t
        jax.ShapeDtypeStruct((nlayers, H), f32),          # final h
        jax.ShapeDtypeStruct((nlayers, H), f32),          # final c
        jax.ShapeDtypeStruct((nlayers, H), f32),          # final r
        jax.ShapeDtypeStruct((nlayers * Tm, H), f32),     # final V (padded)
        jax.ShapeDtypeStruct((nlayers, Tm), f32),         # final s (rows, padded)
    )
    out_specs = (
        pl.BlockSpec((seq_len, H), lambda i: (0, 0)),
        pl.BlockSpec((nlayers, H), lambda i: (0, 0)),
        pl.BlockSpec((nlayers, H), lambda i: (0, 0)),
        pl.BlockSpec((nlayers, H), lambda i: (0, 0)),
        pl.BlockSpec((nlayers * Tm, H), lambda i: (0, 0)),
        pl.BlockSpec((nlayers, Tm), lambda i: (0, 0)),
    )

    kernel = _make_fused_kernel(nlayers, H, Tm, seq_len, depths)
    o_seq, h_f, c_f, r_f, V_f, s_f = pl.pallas_call(
        kernel,
        grid=(1,),                       # single invocation; time is an in-kernel loop
        in_specs=in_specs,
        out_specs=out_specs,
        out_shape=out_shape,
        compiler_params=pltpu.CompilerParams(
            dimension_semantics=("arbitrary",)),
    )(*args)

    new_state = []
    for l in range(nlayers):
        nd_l = depths[l] + seq_len
        new_state.append((
            (h_f[l:l + 1, :], c_f[l:l + 1, :]),
            r_f[l:l + 1, :],
            V_f[l * Tm:l * Tm + nd_l, :],
            s_f[l, :nd_l].reshape(nd_l, 1),
        ))
    return o_seq, new_state


def lstm_stack_forward(layer_kparams, inpt, state):
    """Single-step forward matching LSTMStack.forward(inpt, state)."""
    o_seq, new_state = lstm_stack_sequence_forward(
        layer_kparams, inpt.reshape(1, -1), state)
    return o_seq.reshape(1, -1), new_state


# ----------------------- parameter setup (deterministic) -----------------------

def init_cell_params(key, in_dim, hidden):
    ks = jax.random.split(key, 14)

    def unif(k, shape, fan_in):
        bound = 1.0 / (fan_in ** 0.5)
        return jax.random.uniform(k, shape, jnp.float32, -bound, bound)

    return {
        "W_ih": unif(ks[0], (4 * hidden, in_dim + hidden), hidden),
        "W_hh": unif(ks[1], (4 * hidden, hidden), hidden),
        "b_ih": unif(ks[2], (4 * hidden,), hidden),
        "b_hh": unif(ks[3], (4 * hidden,), hidden),
        "W_ro": unif(ks[4], (hidden, hidden), hidden),
        "b_ro": unif(ks[5], (hidden,), hidden),
        "W_d": unif(ks[6], (1, hidden), hidden),
        "b_d": unif(ks[7], (1,), hidden),
        "W_u": unif(ks[8], (1, hidden), hidden),
        "b_u": unif(ks[9], (1,), hidden),
        "W_v": unif(ks[10], (hidden, hidden), hidden),
        "b_v": unif(ks[11], (hidden,), hidden),
        "W_o": unif(ks[12], (hidden, hidden), hidden),
        "b_o": unif(ks[13], (hidden,), hidden),
    }


def to_kernel_params(p, in_dim, in_dim_pad, hidden):
    f32, bf16 = jnp.float32, jnp.bfloat16
    wx = p["W_ih"][:, :in_dim].T                               # (in_dim, 4H)
    wx = jnp.pad(wx, ((0, in_dim_pad - in_dim), (0, 0)))       # (in_dim_pad, 4H)
    wr = p["W_ih"][:, in_dim:].T                               # (H, 4H) [x|r] order
    wh = p["W_hh"].T                                           # (H, 4H)
    return {
        "wg": jnp.concatenate([wx, wr, wh], axis=0).astype(bf16),   # (in_pad+2H, 4H)
        "b": (p["b_ih"] + p["b_hh"]).reshape(1, 4 * hidden).astype(f32),
        "wro": p["W_ro"].T.astype(bf16),                            # (H, H)
        "bro": p["b_ro"].reshape(1, hidden).astype(f32),
        "wd": p["W_d"].astype(f32),                                 # (1, H)
        "bd": p["b_d"].reshape(1, 1).astype(f32),
        "wu": p["W_u"].astype(f32),
        "bu": p["b_u"].reshape(1, 1).astype(f32),
        "wvo": jnp.concatenate([p["W_v"].T, p["W_o"].T], axis=1).astype(bf16),
        "bvo": jnp.concatenate([p["b_v"], p["b_o"]]).reshape(1, 2 * hidden).astype(f32),
    }


# --------------- pure-JAX reference (mirrors PyTorch, bf16 weights) ---------------

def _bf16_dot(a, w_bf16):
    """Mirror the kernel's MXU path: bf16 x bf16 inputs, f32 accumulation."""
    f32 = jnp.float32
    return jnp.dot(a.astype(jnp.bfloat16).astype(f32), w_bf16.astype(f32),
                   precision=jax.lax.Precision.HIGHEST,
                   preferred_element_type=f32)


def cell_reference(kp, inpt, state):
    (h, c), r, V, s = state
    H = h.shape[1]
    in_w = kp["wg"].shape[0] - 2 * H
    if inpt.shape[1] < in_w:                       # lane padding of the input
        inpt = jnp.pad(inpt, ((0, 0), (0, in_w - inpt.shape[1])))
    xrh = jnp.concatenate([inpt, r, h], axis=1)
    gates = _bf16_dot(xrh, kp["wg"]) + kp["b"]
    i = jax.nn.sigmoid(gates[:, :H])
    f = jax.nn.sigmoid(gates[:, H:2 * H])
    g = jnp.tanh(gates[:, 2 * H:3 * H])
    o = jax.nn.sigmoid(gates[:, 3 * H:])
    c_new = f * c + i * g
    h_act = o * jnp.tanh(c_new)
    rnn_output = _bf16_dot(h_act, kp["wro"]) + kp["bro"]
    d_t = jnp.sum(rnn_output * kp["wd"], axis=1, keepdims=True) + kp["bd"]
    u_t = jnp.sum(rnn_output * kp["wu"], axis=1, keepdims=True) + kp["bu"]
    vo = _bf16_dot(rnn_output, kp["wvo"]) + kp["bvo"]
    v_t, o_t = vo[:, :H], vo[:, H:]
    new_V = v_t if V is None else jnp.concatenate([V, v_t], axis=0)
    if s is None:
        new_s = d_t
    else:
        shid_prev = jnp.flip(jnp.cumsum(jnp.flip(s, 0), axis=0), 0) - s
        new_s_head = jnp.maximum(s - jnp.maximum(u_t[0, 0] - shid_prev, 0.0), 0.0)
        new_s = jnp.concatenate([new_s_head, d_t], axis=0)
    shid_new = jnp.flip(jnp.cumsum(jnp.flip(new_s, 0), axis=0), 0) - new_s
    r_scalars = jnp.minimum(new_s, jnp.maximum(1.0 - shid_new, 0.0))
    new_r = jnp.sum(r_scalars.reshape(-1, 1) * new_V, axis=0).reshape(1, -1)
    return o_t, ((rnn_output, c_new), new_r, new_V, new_s)


def stack_reference(layer_kparams, inpt, state):
    new_state = []
    for kp, st in zip(layer_kparams, state):
        inpt, ns = cell_reference(kp, inpt, st)
        new_state.append(ns)
    return inpt, new_state


# ----------------------------------- demo -----------------------------------

if __name__ == "__main__":
    key = jax.random.PRNGKey(0)
    nlayers = 2
    E = 32       # embedding_dim
    H = 128      # hidden_size
    T0 = 8       # initial stack depth
    seq_len = 8

    pkey, dkey = jax.random.split(key)
    pkeys = jax.random.split(pkey, nlayers)
    in_dims = [E] + [H] * (nlayers - 1)
    in_dims_pad = [_round_up(E, 128)] + [H] * (nlayers - 1)
    layer_params = [init_cell_params(pkeys[i], in_dims[i], H) for i in range(nlayers)]
    layer_kparams = [to_kernel_params(layer_params[i], in_dims[i], in_dims_pad[i], H)
                     for i in range(nlayers)]

    dkeys = jax.random.split(dkey, 1 + 5 * nlayers)
    x_seq = jax.random.normal(dkeys[0], (seq_len, E), jnp.float32)
    state = []
    for i in range(nlayers):
        k0, k1, k2, k3, k4 = dkeys[1 + 5 * i: 1 + 5 * (i + 1)]
        h = jax.random.normal(k0, (1, H), jnp.float32) * 0.1
        c = jax.random.normal(k1, (1, H), jnp.float32) * 0.1
        r = jax.random.normal(k2, (1, H), jnp.float32) * 0.1
        V = jax.random.normal(k3, (T0, H), jnp.float32) * 0.1
        s = jax.random.uniform(k4, (T0, 1), jnp.float32, 0.0, 1.0)
        state.append(((h, c), r, V, s))

    # ---- fused whole-sequence kernel ----
    o_seq, new_state = lstm_stack_sequence_forward(layer_kparams, x_seq, state)
    o_seq = jax.block_until_ready(o_seq)

    # ---- pure-JAX reference (mirrors the PyTorch module with bf16 weights) ----
    ref_state = state
    ref_os = []
    for t in range(seq_len):
        o_t, ref_state = stack_reference(layer_kparams, x_seq[t:t + 1, :], ref_state)
        ref_os.append(o_t)
    ref_o_seq = jnp.concatenate(ref_os, axis=0)

    tol = dict(rtol=5e-3, atol=5e-3)
    np.testing.assert_allclose(np.asarray(o_seq), np.asarray(ref_o_seq), **tol)
    for kn, rn in zip(new_state, ref_state):
        (h_k, c_k), r_k, V_k, s_k = kn
        (h_r, c_r), r_r, V_r, s_r = rn
        for a, b in [(h_k, h_r), (c_k, c_r), (r_k, r_r), (V_k, V_r), (s_k, s_r)]:
            np.testing.assert_allclose(np.asarray(a), np.asarray(b), **tol)

    # ---- single-step call matching LSTMStack.forward(inpt, state) ----
    o1, st1 = lstm_stack_forward(layer_kparams, x_seq[0:1, :], state)
    o1 = jax.block_until_ready(o1)
    ref_o1, ref_st1 = stack_reference(layer_kparams, x_seq[0:1, :], state)
    np.testing.assert_allclose(np.asarray(o1), np.asarray(ref_o1), **tol)
    for kn, rn in zip(st1, ref_st1):
        (h_k, c_k), r_k, V_k, s_k = kn
        (h_r, c_r), r_r, V_r, s_r = rn
        for a, b in [(h_k, h_r), (c_k, c_r), (r_k, r_r), (V_k, V_r), (s_k, s_r)]:
            np.testing.assert_allclose(np.asarray(a), np.asarray(b), **tol)

    print("KERNEL_OK")
</pallas_src>

<mosaic_0001>
module attributes {stable_mosaic.version = 11 : i64} {
  func.func @kernel(%arg0: i32, %arg1: memref<8x128xf32, #tpu.memory_space<vmem>>, %arg2: memref<2x128xf32, #tpu.memory_space<vmem>>, %arg3: memref<2x128xf32, #tpu.memory_space<vmem>>, %arg4: memref<2x128xf32, #tpu.memory_space<vmem>>, %arg5: memref<256x128xf32, #tpu.memory_space<vmem>>, %arg6: memref<2x128xf32, #tpu.memory_space<vmem>>, %arg7: memref<128x128xf32, #tpu.memory_space<vmem>>, %arg8: memref<384x512xbf16, #tpu.memory_space<vmem>>, %arg9: memref<1x512xf32, #tpu.memory_space<vmem>>, %arg10: memref<128x128xbf16, #tpu.memory_space<vmem>>, %arg11: memref<1x128xf32, #tpu.memory_space<vmem>>, %arg12: memref<1x128xf32, #tpu.memory_space<vmem>>, %arg13: memref<1x1xf32, #tpu.memory_space<vmem>>, %arg14: memref<1x128xf32, #tpu.memory_space<vmem>>, %arg15: memref<1x1xf32, #tpu.memory_space<vmem>>, %arg16: memref<128x256xbf16, #tpu.memory_space<vmem>>, %arg17: memref<1x256xf32, #tpu.memory_space<vmem>>, %arg18: memref<384x512xbf16, #tpu.memory_space<vmem>>, %arg19: memref<1x512xf32, #tpu.memory_space<vmem>>, %arg20: memref<128x128xbf16, #tpu.memory_space<vmem>>, %arg21: memref<1x128xf32, #tpu.memory_space<vmem>>, %arg22: memref<1x128xf32, #tpu.memory_space<vmem>>, %arg23: memref<1x1xf32, #tpu.memory_space<vmem>>, %arg24: memref<1x128xf32, #tpu.memory_space<vmem>>, %arg25: memref<1x1xf32, #tpu.memory_space<vmem>>, %arg26: memref<128x256xbf16, #tpu.memory_space<vmem>>, %arg27: memref<1x256xf32, #tpu.memory_space<vmem>>, %arg28: memref<8x128xf32, #tpu.memory_space<vmem>>, %arg29: memref<2x128xf32, #tpu.memory_space<vmem>>, %arg30: memref<2x128xf32, #tpu.memory_space<vmem>>, %arg31: memref<2x128xf32, #tpu.memory_space<vmem>>, %arg32: memref<256x128xf32, #tpu.memory_space<vmem>>, %arg33: memref<2x128xf32, #tpu.memory_space<vmem>>) attributes {dimension_semantics = [#tpu.dimension_semantics<arbitrary>], iteration_bounds = array<i64: 1>, scalar_prefetch = 0 : i64, scratch_operands = 0 : i64, tpu.core_type = #tpu.core_type<tc>, window_params = [{pipeline_mode = #tpu.pipeline_mode<synchronous>, transform_indices = @transform_0, window_bounds = array<i64: 8, 128>}, {pipeline_mode = #tpu.pipeline_mode<synchronous>, transform_indices = @transform_1, window_bounds = array<i64: 2, 128>}, {pipeline_mode = #tpu.pipeline_mode<synchronous>, transform_indices = @transform_2, window_bounds = array<i64: 2, 128>}, {pipeline_mode = #tpu.pipeline_mode<synchronous>, transform_indices = @transform_3, window_bounds = array<i64: 2, 128>}, {pipeline_mode = #tpu.pipeline_mode<synchronous>, transform_indices = @transform_4, window_bounds = array<i64: 256, 128>}, {pipeline_mode = #tpu.pipeline_mode<synchronous>, transform_indices = @transform_5, window_bounds = array<i64: 2, 128>}, {pipeline_mode = #tpu.pipeline_mode<synchronous>, transform_indices = @transform_6, window_bounds = array<i64: 128, 128>}, {pipeline_mode = #tpu.pipeline_mode<synchronous>, transform_indices = @transform_7, window_bounds = array<i64: 384, 512>}, {pipeline_mode = #tpu.pipeline_mode<synchronous>, transform_indices = @transform_8, window_bounds = array<i64: 1, 512>}, {pipeline_mode = #tpu.pipeline_mode<synchronous>, transform_indices = @transform_9, window_bounds = array<i64: 128, 128>}, {pipeline_mode = #tpu.pipeline_mode<synchronous>, transform_indices = @transform_10, window_bounds = array<i64: 1, 128>}, {pipeline_mode = #tpu.pipeline_mode<synchronous>, transform_indices = @transform_11, window_bounds = array<i64: 1, 128>}, {pipeline_mode = #tpu.pipeline_mode<synchronous>, transform_indices = @transform_12, window_bounds = array<i64: 1, 1>}, {pipeline_mode = #tpu.pipeline_mode<synchronous>, transform_indices = @transform_13, window_bounds = array<i64: 1, 128>}, {pipeline_mode = #tpu.pipeline_mode<synchronous>, transform_indices = @transform_14, window_bounds = array<i64: 1, 1>}, {pipeline_mode = #tpu.pipeline_mode<synchronous>, transform_indices = @transform_15, window_bounds = array<i64: 128, 256>}, {pipeline_mode = #tpu.pipeline_mode<synchronous>, transform_indices = @transform_16, window_bounds = array<i64: 1, 256>}, {pipeline_mode = #tpu.pipeline_mode<synchronous>, transform_indices = @transform_17, window_bounds = array<i64: 384, 512>}, {pipeline_mode = #tpu.pipeline_mode<synchronous>, transform_indices = @transform_18, window_bounds = array<i64: 1, 512>}, {pipeline_mode = #tpu.pipeline_mode<synchronous>, transform_indices = @transform_19, window_bounds = array<i64: 128, 128>}, {pipeline_mode = #tpu.pipeline_mode<synchronous>, transform_indices = @transform_20, window_bounds = array<i64: 1, 128>}, {pipeline_mode = #tpu.pipeline_mode<synchronous>, transform_indices = @transform_21, window_bounds = array<i64: 1, 128>}, {pipeline_mode = #tpu.pipeline_mode<synchronous>, transform_indices = @transform_22, window_bounds = array<i64: 1, 1>}, {pipeline_mode = #tpu.pipeline_mode<synchronous>, transform_indices = @transform_23, window_bounds = array<i64: 1, 128>}, {pipeline_mode = #tpu.pipeline_mode<synchronous>, transform_indices = @transform_24, window_bounds = array<i64: 1, 1>}, {pipeline_mode = #tpu.pipeline_mode<synchronous>, transform_indices = @transform_25, window_bounds = array<i64: 128, 256>}, {pipeline_mode = #tpu.pipeline_mode<synchronous>, transform_indices = @transform_26, window_bounds = array<i64: 1, 256>}, {pipeline_mode = #tpu.pipeline_mode<synchronous>, transform_indices = @transform_27, window_bounds = array<i64: 8, 128>}, {pipeline_mode = #tpu.pipeline_mode<synchronous>, transform_indices = @transform_28, window_bounds = array<i64: 2, 128>}, {pipeline_mode = #tpu.pipeline_mode<synchronous>, transform_indices = @transform_29, window_bounds = array<i64: 2, 128>}, {pipeline_mode = #tpu.pipeline_mode<synchronous>, transform_indices = @transform_30, window_bounds = array<i64: 2, 128>}, {pipeline_mode = #tpu.pipeline_mode<synchronous>, transform_indices = @transform_31, window_bounds = array<i64: 256, 128>}, {pipeline_mode = #tpu.pipeline_mode<synchronous>, transform_indices = @transform_32, window_bounds = array<i64: 2, 128>}]} {
    %c0 = arith.constant 0 : index
    %c0_0 = arith.constant 0 : index
    %0 = vector.load %arg2[%c0, %c0_0] : memref<2x128xf32, #tpu.memory_space<vmem>>, vector<2x128xf32>
    %c0_1 = arith.constant 0 : index
    %c0_2 = arith.constant 0 : index
    %1 = vector.load %arg29[%c0_1, %c0_2] : memref<2x128xf32, #tpu.memory_space<vmem>>, vector<2x128xf32>
    tpu.vector_store %arg29[%c0_1, %c0_2], %0 {strides = array<i32>} : memref<2x128xf32, #tpu.memory_space<vmem>>, vector<2x128xf32>,
    %c0_3 = arith.constant 0 : index
    %c0_4 = arith.constant 0 : index
    %2 = vector.load %arg3[%c0_3, %c0_4] : memref<2x128xf32, #tpu.memory_space<vmem>>, vector<2x128xf32>
    %c0_5 = arith.constant 0 : index
    %c0_6 = arith.constant 0 : index
    %3 = vector.load %arg30[%c0_5, %c0_6] : memref<2x128xf32, #tpu.memory_space<vmem>>, vector<2x128xf32>
    tpu.vector_store %arg30[%c0_5, %c0_6], %2 {strides = array<i32>} : memref<2x128xf32, #tpu.memory_space<vmem>>, vector<2x128xf32>,
    %c0_7 = arith.constant 0 : index
    %c0_8 = arith.constant 0 : index
    %4 = vector.load %arg4[%c0_7, %c0_8] : memref<2x128xf32, #tpu.memory_space<vmem>>, vector<2x128xf32>
    %c0_9 = arith.constant 0 : index
    %c0_10 = arith.constant 0 : index
    %5 = vector.load %arg31[%c0_9, %c0_10] : memref<2x128xf32, #tpu.memory_space<vmem>>, vector<2x128xf32>
    tpu.vector_store %arg31[%c0_9, %c0_10], %4 {strides = array<i32>} : memref<2x128xf32, #tpu.memory_space<vmem>>, vector<2x128xf32>,
    %c0_11 = arith.constant 0 : index
    %c0_12 = arith.constant 0 : index
    %6 = vector.load %arg5[%c0_11, %c0_12] : memref<256x128xf32, #tpu.memory_space<vmem>>, vector<256x128xf32>
    %c0_13 = arith.constant 0 : index
    %c0_14 = arith.constant 0 : index
    %7 = vector.load %arg32[%c0_13, %c0_14] : memref<256x128xf32, #tpu.memory_space<vmem>>, vector<256x128xf32>
    tpu.vector_store %arg32[%c0_13, %c0_14], %6 {strides = array<i32>} : memref<256x128xf32, #tpu.memory_space<vmem>>, vector<256x128xf32>,
    %c0_15 = arith.constant 0 : index
    %c0_16 = arith.constant 0 : index
    %8 = vector.load %arg6[%c0_15, %c0_16] : memref<2x128xf32, #tpu.memory_space<vmem>>, vector<2x128xf32>
    %c0_17 = arith.constant 0 : index
    %c0_18 = arith.constant 0 : index
    %9 = vector.load %arg33[%c0_17, %c0_18] : memref<2x128xf32, #tpu.memory_space<vmem>>, vector<2x128xf32>
    tpu.vector_store %arg33[%c0_17, %c0_18], %8 {strides = array<i32>} : memref<2x128xf32, #tpu.memory_space<vmem>>, vector<2x128xf32>,
    %10 = tpu.iota {dimensions = array<i32: 1>} : vector<1x128xi32>
    %c0_i32 = arith.constant 0 : i32
    %c8_i32 = arith.constant 8 : i32
    %11 = arith.addi %c0_i32, %c8_i32 : i32
    %c1_i32 = arith.constant 1 : i32
    scf.for %arg34 = %c0_i32 to %11 step %c1_i32  : i32 {
      %12 = arith.index_cast %arg34 : i32 to index
      %c0_20 = arith.constant 0 : index
      %13 = vector.load %arg1[%12, %c0_20] : memref<8x128xf32, #tpu.memory_space<vmem>>, vector<1x128xf32>
      %c0_21 = arith.constant 0 : index
      %c0_22 = arith.constant 0 : index
      %14 = vector.load %arg29[%c0_21, %c0_22] : memref<2x128xf32, #tpu.memory_space<vmem>>, vector<1x128xf32>
      %c0_23 = arith.constant 0 : index
      %c0_24 = arith.constant 0 : index
      %15 = vector.load %arg30[%c0_23, %c0_24] : memref<2x128xf32, #tpu.memory_space<vmem>>, vector<1x128xf32>
      %c0_25 = arith.constant 0 : index
      %c0_26 = arith.constant 0 : index
      %16 = vector.load %arg31[%c0_25, %c0_26] : memref<2x128xf32, #tpu.memory_space<vmem>>, vector<1x128xf32>
      %c0_27 = arith.constant 0 : index
      %c0_28 = arith.constant 0 : index
      %17 = vector.load %arg33[%c0_27, %c0_28] : memref<2x128xf32, #tpu.memory_space<vmem>>, vector<1x128xf32>
      %c8_i32_29 = arith.constant 8 : i32
      %18 = arith.addi %c8_i32_29, %arg34 : i32
      %19 = tpu.concatenate %13, %16, %14 in 1 : vector<1x128xf32>, vector<1x128xf32>, vector<1x128xf32> -> vector<1x384xf32>
      %20 = arith.truncf %19 : vector<1x384xf32> to vector<1x384xbf16>
      %c0_30 = arith.constant 0 : index
      %c0_31 = arith.constant 0 : index
      %21 = vector.load %arg8[%c0_30, %c0_31] : memref<384x512xbf16, #tpu.memory_space<vmem>>, vector<384x512xbf16>
      %cst = arith.constant dense<0.000000e+00> : vector<1x512xf32>
      %22 = tpu.matmul %20, %21, %cst {dimension_numbers = #tpu.dot_dimension_numbers<[1], [0], [0], [1], [0, 0, 1, 1], [], []>} : vector<1x384xbf16>, vector<384x512xbf16>, vector<1x512xf32> -> vector<1x512xf32>
      %c0_32 = arith.constant 0 : index
      %c0_33 = arith.constant 0 : index
      %23 = vector.load %arg9[%c0_32, %c0_33] : memref<1x512xf32, #tpu.memory_space<vmem>>, vector<1x512xf32>
      %24 = arith.addf %22, %23 : vector<1x512xf32>
      %25 = vector.extract_strided_slice %24 {offsets = [0, 0], sizes = [1, 128], strides = [1, 1]} : vector<1x512xf32> to vector<1x128xf32>
      %26 = arith.negf %25 : vector<1x128xf32>
      %27 = math.exp %26 : vector<1x128xf32>
      %cst_34 = arith.constant 1.000000e+00 : f32
      %28 = vector.broadcast %cst_34 : f32 to vector<1x128xf32>
      %29 = arith.addf %28, %27 : vector<1x128xf32>
      %30 = arith.divf %28, %29 : vector<1x128xf32>
      %31 = vector.extract_strided_slice %24 {offsets = [0, 128], sizes = [1, 128], strides = [1, 1]} : vector<1x512xf32> to vector<1x128xf32>
      %32 = arith.negf %31 : vector<1x128xf32>
      %33 = math.exp %32 : vector<1x128xf32>
      %cst_35 = arith.constant 1.000000e+00 : f32
      %34 = vector.broadcast %cst_35 : f32 to vector<1x128xf32>
      %35 = arith.addf %34, %33 : vector<1x128xf32>
      %36 = arith.divf %34, %35 : vector<1x128xf32>
      %37 = vector.extract_strided_slice %24 {offsets = [0, 256], sizes = [1, 128], strides = [1, 1]} : vector<1x512xf32> to vector<1x128xf32>
      %38 = math.tanh %37 : vector<1x128xf32>
      %39 = vector.extract_strided_slice %24 {offsets = [0, 384], sizes = [1, 128], strides = [1, 1]} : vector<1x512xf32> to vector<1x128xf32>
      %40 = arith.negf %39 : vector<1x128xf32>
      %41 = math.exp %40 : vector<1x128xf32>
      %cst_36 = arith.constant 1.000000e+00 : f32
      %42 = vector.broadcast %cst_36 : f32 to vector<1x128xf32>
      %43 = arith.addf %42, %41 : vector<1x128xf32>
      %44 = arith.divf %42, %43 : vector<1x128xf32>
      %45 = arith.mulf %36, %15 : vector<1x128xf32>
      %46 = arith.mulf %30, %38 : vector<1x128xf32>
      %47 = arith.addf %45, %46 : vector<1x128xf32>
      %48 = math.tanh %47 : vector<1x128xf32>
      %49 = arith.mulf %44, %48 : vector<1x128xf32>
      %50 = arith.truncf %49 : vector<1x128xf32> to vector<1x128xbf16>
      %c0_37 = arith.constant 0 : index
      %c0_38 = arith.constant 0 : index
      %51 = vector.load %arg10[%c0_37, %c0_38] : memref<128x128xbf16, #tpu.memory_space<vmem>>, vector<128x128xbf16>
      %cst_39 = arith.constant dense<0.000000e+00> : vector<1x128xf32>
      %52 = tpu.matmul %50, %51, %cst_39 {dimension_numbers = #tpu.dot_dimension_numbers<[1], [0], [0], [1], [0, 0, 1, 1], [], []>} : vector<1x128xbf16>, vector<128x128xbf16>, vector<1x128xf32> -> vector<1x128xf32>
      %c0_40 = arith.constant 0 : index
      %c0_41 = arith.constant 0 : index
      %53 = vector.load %arg11[%c0_40, %c0_41] : memref<1x128xf32, #tpu.memory_space<vmem>>, vector<1x128xf32>
      %54 = arith.addf %52, %53 : vector<1x128xf32>
      %c0_42 = arith.constant 0 : index
      %c0_43 = arith.constant 0 : index
      %55 = vector.load %arg12[%c0_42, %c0_43] : memref<1x128xf32, #tpu.memory_space<vmem>>, vector<1x128xf32>
      %56 = arith.mulf %54, %55 : vector<1x128xf32>
      %cst_44 = arith.constant dense<0.000000e+00> : vector<1xf32>
      %57 = vector.multi_reduction <add>, %56, %cst_44 [1] : vector<1x128xf32> to vector<1xf32>
      %58 = vector.shape_cast %57 : vector<1xf32> to vector<1x1xf32>
      %c0_45 = arith.constant 0 : index
      %c0_46 = arith.constant 0 : index
      %59 = vector.load %arg13[%c0_45, %c0_46] : memref<1x1xf32, #tpu.memory_space<vmem>>, vector<1x1xf32>
      %60 = arith.addf %58, %59 : vector<1x1xf32>
      %c0_47 = arith.constant 0 : index
      %c0_48 = arith.constant 0 : index
      %61 = vector.load %arg14[%c0_47, %c0_48] : memref<1x128xf32, #tpu.memory_space<vmem>>, vector<1x128xf32>
      %62 = arith.mulf %54, %61 : vector<1x128xf32>
      %cst_49 = arith.constant dense<0.000000e+00> : vector<1xf32>
      %63 = vector.multi_reduction <add>, %62, %cst_49 [1] : vector<1x128xf32> to vector<1xf32>
      %64 = vector.shape_cast %63 : vector<1xf32> to vector<1x1xf32>
      %c0_50 = arith.constant 0 : index
      %c0_51 = arith.constant 0 : index
      %65 = vector.load %arg15[%c0_50, %c0_51] : memref<1x1xf32, #tpu.memory_space<vmem>>, vector<1x1xf32>
      %66 = arith.addf %64, %65 : vector<1x1xf32>
      %67 = arith.truncf %54 : vector<1x128xf32> to vector<1x128xbf16>
      %c0_52 = arith.constant 0 : index
      %c0_53 = arith.constant 0 : index
      %68 = vector.load %arg16[%c0_52, %c0_53] : memref<128x256xbf16, #tpu.memory_space<vmem>>, vector<128x256xbf16>
      %cst_54 = arith.constant dense<0.000000e+00> : vector<1x256xf32>
      %69 = tpu.matmul %67, %68, %cst_54 {dimension_numbers = #tpu.dot_dimension_numbers<[1], [0], [0], [1], [0, 0, 1, 1], [], []>} : vector<1x128xbf16>, vector<128x256xbf16>, vector<1x256xf32> -> vector<1x256xf32>
      %c0_55 = arith.constant 0 : index
      %c0_56 = arith.constant 0 : index
      %70 = vector.load %arg17[%c0_55, %c0_56] : memref<1x256xf32, #tpu.memory_space<vmem>>, vector<1x256xf32>
      %71 = arith.addf %69, %70 : vector<1x256xf32>
      %72 = vector.extract_strided_slice %71 {offsets = [0, 0], sizes = [1, 128], strides = [1, 1]} : vector<1x256xf32> to vector<1x128xf32>
      %73 = vector.extract_strided_slice %71 {offsets = [0, 128], sizes = [1, 128], strides = [1, 1]} : vector<1x256xf32> to vector<1x128xf32>
      %c0_57 = arith.constant 0 : index
      %c0_58 = arith.constant 0 : index
      %74 = vector.load %arg7[%c0_57, %c0_58] : memref<128x128xf32, #tpu.memory_space<vmem>>, vector<128x128xf32>
      %cst_59 = arith.constant dense<0.000000e+00> : vector<1x128xf32>
      %75 = tpu.matmul %17, %74, %cst_59 {dimension_numbers = #tpu.dot_dimension_numbers<[1], [0], [0], [1], [0, 0, 1, 1], [], []>} : vector<1x128xf32>, vector<128x128xf32>, vector<1x128xf32> -> vector<1x128xf32>
      %76 = vector.broadcast %66 : vector<1x1xf32> to vector<1x128xf32>
      %77 = arith.subf %76, %75 : vector<1x128xf32>
      %cst_60 = arith.constant 0.000000e+00 : f32
      %78 = vector.broadcast %cst_60 : f32 to vector<1x128xf32>
      %79 = arith.maximumf %77, %78 : vector<1x128xf32>
      %80 = arith.subf %17, %79 : vector<1x128xf32>
      %cst_61 = arith.constant 0.000000e+00 : f32
      %81 = vector.broadcast %cst_61 : f32 to vector<1x128xf32>
      %82 = arith.maximumf %80, %81 : vector<1x128xf32>
      %83 = vector.broadcast %18 : i32 to vector<1x128xi32>
      %84 = arith.cmpi eq, %10, %83 : vector<1x128xi32>
      %85 = vector.shape_cast %60 : vector<1x1xf32> to vector<1x1xf32>
      %86 = vector.broadcast %85 : vector<1x1xf32> to vector<1x128xf32>
      %87 = arith.select %84, %86, %82 : vector<1x128xi1>, vector<1x128xf32>
      %c0_62 = arith.constant 0 : index
      %c0_63 = arith.constant 0 : index
      %88 = vector.load %arg7[%c0_62, %c0_63] : memref<128x128xf32, #tpu.memory_space<vmem>>, vector<128x128xf32>
      %cst_64 = arith.constant dense<0.000000e+00> : vector<1x128xf32>
      %89 = tpu.matmul %87, %88, %cst_64 {dimension_numbers = #tpu.dot_dimension_numbers<[1], [0], [0], [1], [0, 0, 1, 1], [], []>} : vector<1x128xf32>, vector<128x128xf32>, vector<1x128xf32> -> vector<1x128xf32>
      %cst_65 = arith.constant 1.000000e+00 : f32
      %90 = vector.broadcast %cst_65 : f32 to vector<1x128xf32>
      %91 = arith.subf %90, %89 : vector<1x128xf32>
      %cst_66 = arith.constant 0.000000e+00 : f32
      %92 = vector.broadcast %cst_66 : f32 to vector<1x128xf32>
      %93 = arith.maximumf %91, %92 : vector<1x128xf32>
      %94 = arith.minimumf %87, %93 : vector<1x128xf32>
      %c0_i32_67 = arith.constant 0 : i32
      %95 = arith.addi %c0_i32_67, %18 : i32
      %96 = arith.index_cast %95 : i32 to index
      %c0_68 = arith.constant 0 : index
      %97 = vector.load %arg32[%96, %c0_68] : memref<256x128xf32, #tpu.memory_space<vmem>>, vector<1x128xf32>
      tpu.vector_store %arg32[%96, %c0_68], %72 {strides = array<i32>} : memref<256x128xf32, #tpu.memory_space<vmem>>, vector<1x128xf32>,
      %c0_69 = arith.constant 0 : index
      %c0_70 = arith.constant 0 : index
      %98 = vector.load %arg32[%c0_69, %c0_70] : memref<256x128xf32, #tpu.memory_space<vmem>>, vector<128x128xf32>
      %cst_71 = arith.constant dense<0.000000e+00> : vector<1x128xf32>
      %99 = tpu.matmul %94, %98, %cst_71 {dimension_numbers = #tpu.dot_dimension_numbers<[1], [0], [0], [1], [0, 0, 1, 1], [], []>} : vector<1x128xf32>, vector<128x128xf32>, vector<1x128xf32> -> vector<1x128xf32>
      %c0_72 = arith.constant 0 : index
      %c0_73 = arith.constant 0 : index
      %100 = vector.load %arg29[%c0_72, %c0_73] : memref<2x128xf32, #tpu.memory_space<vmem>>, vector<1x128xf32>
      tpu.vector_store %arg29[%c0_72, %c0_73], %54 {strides = array<i32>} : memref<2x128xf32, #tpu.memory_space<vmem>>, vector<1x128xf32>,
      %c0_74 = arith.constant 0 : index
      %c0_75 = arith.constant 0 : index
      %101 = vector.load %arg30[%c0_74, %c0_75] : memref<2x128xf32, #tpu.memory_space<vmem>>, vector<1x128xf32>
      tpu.vector_store %arg30[%c0_74, %c0_75], %47 {strides = array<i32>} : memref<2x128xf32, #tpu.memory_space<vmem>>, vector<1x128xf32>,
      %c0_76 = arith.constant 0 : index
      %c0_77 = arith.constant 0 : index
      %102 = vector.load %arg31[%c0_76, %c0_77] : memref<2x128xf32, #tpu.memory_space<vmem>>, vector<1x128xf32>
      tpu.vector_store %arg31[%c0_76, %c0_77], %99 {strides = array<i32>} : memref<2x128xf32, #tpu.memory_space<vmem>>, vector<1x128xf32>,
      %c0_78 = arith.constant 0 : index
      %c0_79 = arith.constant 0 : index
      %103 = vector.load %arg33[%c0_78, %c0_79] : memref<2x128xf32, #tpu.memory_space<vmem>>, vector<1x128xf32>
      tpu.vector_store %arg33[%c0_78, %c0_79], %87 {strides = array<i32>} : memref<2x128xf32, #tpu.memory_space<vmem>>, vector<1x128xf32>,
      %c1 = arith.constant 1 : index
      %c0_80 = arith.constant 0 : index
      %104 = vector.load %arg29[%c1, %c0_80] : memref<2x128xf32, #tpu.memory_space<vmem>>, vector<1x128xf32>
      %c1_81 = arith.constant 1 : index
      %c0_82 = arith.constant 0 : index
      %105 = vector.load %arg30[%c1_81, %c0_82] : memref<2x128xf32, #tpu.memory_space<vmem>>, vector<1x128xf32>
      %c1_83 = arith.constant 1 : index
      %c0_84 = arith.constant 0 : index
      %106 = vector.load %arg31[%c1_83, %c0_84] : memref<2x128xf32, #tpu.memory_space<vmem>>, vector<1x128xf32>
      %c1_85 = arith.constant 1 : index
      %c0_86 = arith.constant 0 : index
      %107 = vector.load %arg33[%c1_85, %c0_86] : memref<2x128xf32, #tpu.memory_space<vmem>>, vector<1x128xf32>
      %c8_i32_87 = arith.constant 8 : i32
      %108 = arith.addi %c8_i32_87, %arg34 : i32
      %109 = tpu.concatenate %73, %106, %104 in 1 : vector<1x128xf32>, vector<1x128xf32>, vector<1x128xf32> -> vector<1x384xf32>
      %110 = arith.truncf %109 : vector<1x384xf32> to vector<1x384xbf16>
      %c0_88 = arith.constant 0 : index
      %c0_89 = arith.constant 0 : index
      %111 = vector.load %arg18[%c0_88, %c0_89] : memref<384x512xbf16, #tpu.memory_space<vmem>>, vector<384x512xbf16>
      %cst_90 = arith.constant dense<0.000000e+00> : vector<1x512xf32>
      %112 = tpu.matmul %110, %111, %cst_90 {dimension_numbers = #tpu.dot_dimension_numbers<[1], [0], [0], [1], [0, 0, 1, 1], [], []>} : vector<1x384xbf16>, vector<384x512xbf16>, vector<1x512xf32> -> vector<1x512xf32>
      %c0_91 = arith.constant 0 : index
      %c0_92 = arith.constant 0 : index
      %113 = vector.load %arg19[%c0_91, %c0_92] : memref<1x512xf32, #tpu.memory_space<vmem>>, vector<1x512xf32>
      %114 = arith.addf %112, %113 : vector<1x512xf32>
      %115 = vector.extract_strided_slice %114 {offsets = [0, 0], sizes = [1, 128], strides = [1, 1]} : vector<1x512xf32> to vector<1x128xf32>
      %116 = arith.negf %115 : vector<1x128xf32>
      %117 = math.exp %116 : vector<1x128xf32>
      %cst_93 = arith.constant 1.000000e+00 : f32
      %118 = vector.broadcast %cst_93 : f32 to vector<1x128xf32>
      %119 = arith.addf %118, %117 : vector<1x128xf32>
      %120 = arith.divf %118, %119 : vector<1x128xf32>
      %121 = vector.extract_strided_slice %114 {offsets = [0, 128], sizes = [1, 128], strides = [1, 1]} : vector<1x512xf32> to vector<1x128xf32>
      %122 = arith.negf %121 : vector<1x128xf32>
      %123 = math.exp %122 : vector<1x128xf32>
      %cst_94 = arith.constant 1.000000e+00 : f32
      %124 = vector.broadcast %cst_94 : f32 to vector<1x128xf32>
      %125 = arith.addf %124, %123 : vector<1x128xf32>
      %126 = arith.divf %124, %125 : vector<1x128xf32>
      %127 = vector.extract_strided_slice %114 {offsets = [0, 256], sizes = [1, 128], strides = [1, 1]} : vector<1x512xf32> to vector<1x128xf32>
      %128 = math.tanh %127 : vector<1x128xf32>
      %129 = vector.extract_strided_slice %114 {offsets = [0, 384], sizes = [1, 128], strides = [1, 1]} : vector<1x512xf32> to vector<1x128xf32>
      %130 = arith.negf %129 : vector<1x128xf32>
      %131 = math.exp %130 : vector<1x128xf32>
      %cst_95 = arith.constant 1.000000e+00 : f32
      %132 = vector.broadcast %cst_95 : f32 to vector<1x128xf32>
      %133 = arith.addf %132, %131 : vector<1x128xf32>
      %134 = arith.divf %132, %133 : vector<1x128xf32>
      %135 = arith.mulf %126, %105 : vector<1x128xf32>
      %136 = arith.mulf %120, %128 : vector<1x128xf32>
      %137 = arith.addf %135, %136 : vector<1x128xf32>
      %138 = math.tanh %137 : vector<1x128xf32>
      %139 = arith.mulf %134, %138 : vector<1x128xf32>
      %140 = arith.truncf %139 : vector<1x128xf32> to vector<1x128xbf16>
      %c0_96 = arith.constant 0 : index
      %c0_97 = arith.constant 0 : index
      %141 = vector.load %arg20[%c0_96, %c0_97] : memref<128x128xbf16, #tpu.memory_space<vmem>>, vector<128x128xbf16>
      %cst_98 = arith.constant dense<0.000000e+00> : vector<1x128xf32>
      %142 = tpu.matmul %140, %141, %cst_98 {dimension_numbers = #tpu.dot_dimension_numbers<[1], [0], [0], [1], [0, 0, 1, 1], [], []>} : vector<1x128xbf16>, vector<128x128xbf16>, vector<1x128xf32> -> vector<1x128xf32>
      %c0_99 = arith.constant 0 : index
      %c0_100 = arith.constant 0 : index
      %143 = vector.load %arg21[%c0_99, %c0_100] : memref<1x128xf32, #tpu.memory_space<vmem>>, vector<1x128xf32>
      %144 = arith.addf %142, %143 : vector<1x128xf32>
      %c0_101 = arith.constant 0 : index
      %c0_102 = arith.constant 0 : index
      %145 = vector.load %arg22[%c0_101, %c0_102] : memref<1x128xf32, #tpu.memory_space<vmem>>, vector<1x128xf32>
      %146 = arith.mulf %144, %145 : vector<1x128xf32>
      %cst_103 = arith.constant dense<0.000000e+00> : vector<1xf32>
      %147 = vector.multi_reduction <add>, %146, %cst_103 [1] : vector<1x128xf32> to vector<1xf32>
      %148 = vector.shape_cast %147 : vector<1xf32> to vector<1x1xf32>
      %c0_104 = arith.constant 0 : index
      %c0_105 = arith.constant 0 : index
      %149 = vector.load %arg23[%c0_104, %c0_105] : memref<1x1xf32, #tpu.memory_space<vmem>>, vector<1x1xf32>
      %150 = arith.addf %148, %149 : vector<1x1xf32>
      %c0_106 = arith.constant 0 : index
      %c0_107 = arith.constant 0 : index
      %151 = vector.load %arg24[%c0_106, %c0_107] : memref<1x128xf32, #tpu.memory_space<vmem>>, vector<1x128xf32>
      %152 = arith.mulf %144, %151 : vector<1x128xf32>
      %cst_108 = arith.constant dense<0.000000e+00> : vector<1xf32>
      %153 = vector.multi_reduction <add>, %152, %cst_108 [1] : vector<1x128xf32> to vector<1xf32>
      %154 = vector.shape_cast %153 : vector<1xf32> to vector<1x1xf32>
      %c0_109 = arith.constant 0 : index
      %c0_110 = arith.constant 0 : index
      %155 = vector.load %arg25[%c0_109, %c0_110] : memref<1x1xf32, #tpu.memory_space<vmem>>, vector<1x1xf32>
      %156 = arith.addf %154, %155 : vector<1x1xf32>
      %157 = arith.truncf %144 : vector<1x128xf32> to vector<1x128xbf16>
      %c0_111 = arith.constant 0 : index
      %c0_112 = arith.constant 0 : index
      %158 = vector.load %arg26[%c0_111, %c0_112] : memref<128x256xbf16, #tpu.memory_space<vmem>>, vector<128x256xbf16>
      %cst_113 = arith.constant dense<0.000000e+00> : vector<1x256xf32>
      %159 = tpu.matmul %157, %158, %cst_113 {dimension_numbers = #tpu.dot_dimension_numbers<[1], [0], [0], [1], [0, 0, 1, 1], [], []>} : vector<1x128xbf16>, vector<128x256xbf16>, vector<1x256xf32> -> vector<1x256xf32>
      %c0_114 = arith.constant 0 : index
      %c0_115 = arith.constant 0 : index
      %160 = vector.load %arg27[%c0_114, %c0_115] : memref<1x256xf32, #tpu.memory_space<vmem>>, vector<1x256xf32>
      %161 = arith.addf %159, %160 : vector<1x256xf32>
      %162 = vector.extract_strided_slice %161 {offsets = [0, 0], sizes = [1, 128], strides = [1, 1]} : vector<1x256xf32> to vector<1x128xf32>
      %163 = vector.extract_strided_slice %161 {offsets = [0, 128], sizes = [1, 128], strides = [1, 1]} : vector<1x256xf32> to vector<1x128xf32>
      %c0_116 = arith.constant 0 : index
      %c0_117 = arith.constant 0 : index
      %164 = vector.load %arg7[%c0_116, %c0_117] : memref<128x128xf32, #tpu.memory_space<vmem>>, vector<128x128xf32>
      %cst_118 = arith.constant dense<0.000000e+00> : vector<1x128xf32>
      %165 = tpu.matmul %107, %164, %cst_118 {dimension_numbers = #tpu.dot_dimension_numbers<[1], [0], [0], [1], [0, 0, 1, 1], [], []>} : vector<1x128xf32>, vector<128x128xf32>, vector<1x128xf32> -> vector<1x128xf32>
      %166 = vector.broadcast %156 : vector<1x1xf32> to vector<1x128xf32>
      %167 = arith.subf %166, %165 : vector<1x128xf32>
      %cst_119 = arith.constant 0.000000e+00 : f32
      %168 = vector.broadcast %cst_119 : f32 to vector<1x128xf32>
      %169 = arith.maximumf %167, %168 : vector<1x128xf32>
      %170 = arith.subf %107, %169 : vector<1x128xf32>
      %cst_120 = arith.constant 0.000000e+00 : f32
      %171 = vector.broadcast %cst_120 : f32 to vector<1x128xf32>
      %172 = arith.maximumf %170, %171 : vector<1x128xf32>
      %173 = vector.broadcast %108 : i32 to vector<1x128xi32>
      %174 = arith.cmpi eq, %10, %173 : vector<1x128xi32>
      %175 = vector.shape_cast %150 : vector<1x1xf32> to vector<1x1xf32>
      %176 = vector.broadcast %175 : vector<1x1xf32> to vector<1x128xf32>
      %177 = arith.select %174, %176, %172 : vector<1x128xi1>, vector<1x128xf32>
      %c0_121 = arith.constant 0 : index
      %c0_122 = arith.constant 0 : index
      %178 = vector.load %arg7[%c0_121, %c0_122] : memref<128x128xf32, #tpu.memory_space<vmem>>, vector<128x128xf32>
      %cst_123 = arith.constant dense<0.000000e+00> : vector<1x128xf32>
      %179 = tpu.matmul %177, %178, %cst_123 {dimension_numbers = #tpu.dot_dimension_numbers<[1], [0], [0], [1], [0, 0, 1, 1], [], []>} : vector<1x128xf32>, vector<128x128xf32>, vector<1x128xf32> -> vector<1x128xf32>
      %cst_124 = arith.constant 1.000000e+00 : f32
      %180 = vector.broadcast %cst_124 : f32 to vector<1x128xf32>
      %181 = arith.subf %180, %179 : vector<1x128xf32>
      %cst_125 = arith.constant 0.000000e+00 : f32
      %182 = vector.broadcast %cst_125 : f32 to vector<1x128xf32>
      %183 = arith.maximumf %181, %182 : vector<1x128xf32>
      %184 = arith.minimumf %177, %183 : vector<1x128xf32>
      %c128_i32 = arith.constant 128 : i32
      %185 = arith.addi %c128_i32, %108 : i32
      %186 = arith.index_cast %185 : i32 to index
      %c0_126 = arith.constant 0 : index
      %187 = vector.load %arg32[%186, %c0_126] : memref<256x128xf32, #tpu.memory_space<vmem>>, vector<1x128xf32>
      tpu.vector_store %arg32[%186, %c0_126], %162 {strides = array<i32>} : memref<256x128xf32, #tpu.memory_space<vmem>>, vector<1x128xf32>,
      %c128 = arith.constant 128 : index
      %c0_127 = arith.constant 0 : index
      %188 = vector.load %arg32[%c128, %c0_127] : memref<256x128xf32, #tpu.memory_space<vmem>>, vector<128x128xf32>
      %cst_128 = arith.constant dense<0.000000e+00> : vector<1x128xf32>
      %189 = tpu.matmul %184, %188, %cst_128 {dimension_numbers = #tpu.dot_dimension_numbers<[1], [0], [0], [1], [0, 0, 1, 1], [], []>} : vector<1x128xf32>, vector<128x128xf32>, vector<1x128xf32> -> vector<1x128xf32>
      %c1_129 = arith.constant 1 : index
      %c0_130 = arith.constant 0 : index
      %190 = vector.load %arg29[%c1_129, %c0_130] : memref<2x128xf32, #tpu.memory_space<vmem>>, vector<1x128xf32>
      tpu.vector_store %arg29[%c1_129, %c0_130], %144 {strides = array<i32>} : memref<2x128xf32, #tpu.memory_space<vmem>>, vector<1x128xf32>,
      %c1_131 = arith.constant 1 : index
      %c0_132 = arith.constant 0 : index
      %191 = vector.load %arg30[%c1_131, %c0_132] : memref<2x128xf32, #tpu.memory_space<vmem>>, vector<1x128xf32>
      tpu.vector_store %arg30[%c1_131, %c0_132], %137 {strides = array<i32>} : memref<2x128xf32, #tpu.memory_space<vmem>>, vector<1x128xf32>,
      %c1_133 = arith.constant 1 : index
      %c0_134 = arith.constant 0 : index
      %192 = vector.load %arg31[%c1_133, %c0_134] : memref<2x128xf32, #tpu.memory_space<vmem>>, vector<1x128xf32>
      tpu.vector_store %arg31[%c1_133, %c0_134], %189 {strides = array<i32>} : memref<2x128xf32, #tpu.memory_space<vmem>>, vector<1x128xf32>,
      %c1_135 = arith.constant 1 : index
      %c0_136 = arith.constant 0 : index
      %193 = vector.load %arg33[%c1_135, %c0_136] : memref<2x128xf32, #tpu.memory_space<vmem>>, vector<1x128xf32>
      tpu.vector_store %arg33[%c1_135, %c0_136], %177 {strides = array<i32>} : memref<2x128xf32, #tpu.memory_space<vmem>>, vector<1x128xf32>,
      %194 = arith.index_cast %arg34 : i32 to index
      %c0_137 = arith.constant 0 : index
      %195 = vector.load %arg28[%194, %c0_137] : memref<8x128xf32, #tpu.memory_space<vmem>>, vector<1x128xf32>
      tpu.vector_store %arg28[%194, %c0_137], %163 {strides = array<i32>} : memref<8x128xf32, #tpu.memory_space<vmem>>, vector<1x128xf32>,
    }
    %c8_i32_19 = arith.constant 8 : i32
    return
  }
  func.func @transform_0(%arg0: i32) -> (i32, i32) {
    %c0_i32 = arith.constant 0 : i32
    %c0_i32_0 = arith.constant 0 : i32
    %c0_i32_1 = arith.constant 0 : i32
    return %c0_i32, %c0_i32_0 : i32, i32
  }
  func.func @transform_1(%arg0: i32) -> (i32, i32) {
    %c0_i32 = arith.constant 0 : i32
    %c0_i32_0 = arith.constant 0 : i32
    %c0_i32_1 = arith.constant 0 : i32
    return %c0_i32, %c0_i32_0 : i32, i32
  }
  func.func @transform_2(%arg0: i32) -> (i32, i32) {
    %c0_i32 = arith.constant 0 : i32
    %c0_i32_0 = arith.constant 0 : i32
    %c0_i32_1 = arith.constant 0 : i32
    return %c0_i32, %c0_i32_0 : i32, i32
  }
  func.func @transform_3(%arg0: i32) -> (i32, i32) {
    %c0_i32 = arith.constant 0 : i32
    %c0_i32_0 = arith.constant 0 : i32
    %c0_i32_1 = arith.constant 0 : i32
    return %c0_i32, %c0_i32_0 : i32, i32
  }
  func.func @transform_4(%arg0: i32) -> (i32, i32) {
    %c0_i32 = arith.constant 0 : i32
    %c0_i32_0 = arith.constant 0 : i32
    %c0_i32_1 = arith.constant 0 : i32
    return %c0_i32, %c0_i32_0 : i32, i32
  }
  func.func @transform_5(%arg0: i32) -> (i32, i32) {
    %c0_i32 = arith.constant 0 : i32
    %c0_i32_0 = arith.constant 0 : i32
    %c0_i32_1 = arith.constant 0 : i32
    return %c0_i32, %c0_i32_0 : i32, i32
  }
  func.func @transform_6(%arg0: i32) -> (i32, i32) {
    %c0_i32 = arith.constant 0 : i32
    %c0_i32_0 = arith.constant 0 : i32
    %c0_i32_1 = arith.constant 0 : i32
    return %c0_i32, %c0_i32_0 : i32, i32
  }
  func.func @transform_7(%arg0: i32) -> (i32, i32) {
    %c0_i32 = arith.constant 0 : i32
    %c0_i32_0 = arith.constant 0 : i32
    %c0_i32_1 = arith.constant 0 : i32
    return %c0_i32, %c0_i32_0 : i32, i32
  }
  func.func @transform_8(%arg0: i32) -> (i32, i32) {
    %c0_i32 = arith.constant 0 : i32
    %c0_i32_0 = arith.constant 0 : i32
    %c0_i32_1 = arith.constant 0 : i32
    return %c0_i32, %c0_i32_0 : i32, i32
  }
  func.func @transform_9(%arg0: i32) -> (i32, i32) {
    %c0_i32 = arith.constant 0 : i32
    %c0_i32_0 = arith.constant 0 : i32
    %c0_i32_1 = arith.constant 0 : i32
    return %c0_i32, %c0_i32_0 : i32, i32
  }
  func.func @transform_10(%arg0: i32) -> (i32, i32) {
    %c0_i32 = arith.constant 0 : i32
    %c0_i32_0 = arith.constant 0 : i32
    %c0_i32_1 = arith.constant 0 : i32
    return %c0_i32, %c0_i32_0 : i32, i32
  }
  func.func @transform_11(%arg0: i32) -> (i32, i32) {
    %c0_i32 = arith.constant 0 : i32
    %c0_i32_0 = arith.constant 0 : i32
    %c0_i32_1 = arith.constant 0 : i32
    return %c0_i32, %c0_i32_0 : i32, i32
  }
  func.func @transform_12(%arg0: i32) -> (i32, i32) {
    %c0_i32 = arith.constant 0 : i32
    %c0_i32_0 = arith.constant 0 : i32
    %c0_i32_1 = arith.constant 0 : i32
    return %c0_i32, %c0_i32_0 : i32, i32
  }
  func.func @transform_13(%arg0: i32) -> (i32, i32) {
    %c0_i32 = arith.constant 0 : i32
    %c0_i32_0 = arith.constant 0 : i32
    %c0_i32_1 = arith.constant 0 : i32
    return %c0_i32, %c0_i32_0 : i32, i32
  }
  func.func @transform_14(%arg0: i32) -> (i32, i32) {
    %c0_i32 = arith.constant 0 : i32
    %c0_i32_0 = arith.constant 0 : i32
    %c0_i32_1 = arith.constant 0 : i32
    return %c0_i32, %c0_i32_0 : i32, i32
  }
  func.func @transform_15(%arg0: i32) -> (i32, i32) {
    %c0_i32 = arith.constant 0 : i32
    %c0_i32_0 = arith.constant 0 : i32
    %c0_i32_1 = arith.constant 0 : i32
    return %c0_i32, %c0_i32_0 : i32, i32
  }
  func.func @transform_16(%arg0: i32) -> (i32, i32) {
    %c0_i32 = arith.constant 0 : i32
    %c0_i32_0 = arith.constant 0 : i32
    %c0_i32_1 = arith.constant 0 : i32
    return %c0_i32, %c0_i32_0 : i32, i32
  }
  func.func @transform_17(%arg0: i32) -> (i32, i32) {
    %c0_i32 = arith.constant 0 : i32
    %c0_i32_0 = arith.constant 0 : i32
    %c0_i32_1 = arith.constant 0 : i32
    return %c0_i32, %c0_i32_0 : i32, i32
  }
  func.func @transform_18(%arg0: i32) -> (i32, i32) {
    %c0_i32 = arith.constant 0 : i32
    %c0_i32_0 = arith.constant 0 : i32
    %c0_i32_1 = arith.constant 0 : i32
    return %c0_i32, %c0_i32_0 : i32, i32
  }
  func.func @transform_19(%arg0: i32) -> (i32, i32) {
    %c0_i32 = arith.constant 0 : i32
    %c0_i32_0 = arith.constant 0 : i32
    %c0_i32_1 = arith.constant 0 : i32
    return %c0_i32, %c0_i32_0 : i32, i32
  }
  func.func @transform_20(%arg0: i32) -> (i32, i32) {
    %c0_i32 = arith.constant 0 : i32
    %c0_i32_0 = arith.constant 0 : i32
    %c0_i32_1 = arith.constant 0 : i32
    return %c0_i32, %c0_i32_0 : i32, i32
  }
  func.func @transform_21(%arg0: i32) -> (i32, i32) {
    %c0_i32 = arith.constant 0 : i32
    %c0_i32_0 = arith.constant 0 : i32
    %c0_i32_1 = arith.constant 0 : i32
    return %c0_i32, %c0_i32_0 : i32, i32
  }
  func.func @transform_22(%arg0: i32) -> (i32, i32) {
    %c0_i32 = arith.constant 0 : i32
    %c0_i32_0 = arith.constant 0 : i32
    %c0_i32_1 = arith.constant 0 : i32
    return %c0_i32, %c0_i32_0 : i32, i32
  }
  func.func @transform_23(%arg0: i32) -> (i32, i32) {
    %c0_i32 = arith.constant 0 : i32
    %c0_i32_0 = arith.constant 0 : i32
    %c0_i32_1 = arith.constant 0 : i32
    return %c0_i32, %c0_i32_0 : i32, i32
  }
  func.func @transform_24(%arg0: i32) -> (i32, i32) {
    %c0_i32 = arith.constant 0 : i32
    %c0_i32_0 = arith.constant 0 : i32
    %c0_i32_1 = arith.constant 0 : i32
    return %c0_i32, %c0_i32_0 : i32, i32
  }
  func.func @transform_25(%arg0: i32) -> (i32, i32) {
    %c0_i32 = arith.constant 0 : i32
    %c0_i32_0 = arith.constant 0 : i32
    %c0_i32_1 = arith.constant 0 : i32
    return %c0_i32, %c0_i32_0 : i32, i32
  }
  func.func @transform_26(%arg0: i32) -> (i32, i32) {
    %c0_i32 = arith.constant 0 : i32
    %c0_i32_0 = arith.constant 0 : i32
    %c0_i32_1 = arith.constant 0 : i32
    return %c0_i32, %c0_i32_0 : i32, i32
  }
  func.func @transform_27(%arg0: i32) -> (i32, i32) {
    %c0_i32 = arith.constant 0 : i32
    %c0_i32_0 = arith.constant 0 : i32
    %c0_i32_1 = arith.constant 0 : i32
    return %c0_i32, %c0_i32_0 : i32, i32
  }
  func.func @transform_28(%arg0: i32) -> (i32, i32) {
    %c0_i32 = arith.constant 0 : i32
    %c0_i32_0 = arith.constant 0 : i32
    %c0_i32_1 = arith.constant 0 : i32
    return %c0_i32, %c0_i32_0 : i32, i32
  }
  func.func @transform_29(%arg0: i32) -> (i32, i32) {
    %c0_i32 = arith.constant 0 : i32
    %c0_i32_0 = arith.constant 0 : i32
    %c0_i32_1 = arith.constant 0 : i32
    return %c0_i32, %c0_i32_0 : i32, i32
  }
  func.func @transform_30(%arg0: i32) -> (i32, i32) {
    %c0_i32 = arith.constant 0 : i32
    %c0_i32_0 = arith.constant 0 : i32
    %c0_i32_1 = arith.constant 0 : i32
    return %c0_i32, %c0_i32_0 : i32, i32
  }
  func.func @transform_31(%arg0: i32) -> (i32, i32) {
    %c0_i32 = arith.constant 0 : i32
    %c0_i32_0 = arith.constant 0 : i32
    %c0_i32_1 = arith.constant 0 : i32
    return %c0_i32, %c0_i32_0 : i32, i32
  }
  func.func @transform_32(%arg0: i32) -> (i32, i32) {
    %c0_i32 = arith.constant 0 : i32
    %c0_i32_0 = arith.constant 0 : i32
    %c0_i32_1 = arith.constant 0 : i32
    return %c0_i32, %c0_i32_0 : i32, i32
  }
}

</mosaic_0001>

<bundles_post_ra>
// kernel: tpu_custom_call.1
= control target key start
LH: loop header
LB: loop body
LE: loop exit
PB: predicated region body
PF: predicated region fallthrough
CT: control target
= control target key end

     0   :  { %s4910_s6 = smov 1   ;;  %s4911_s10 = smov 2   ;;  %s5468_s0 = inlined_call_operand.smem [shape: u32[33], index: -1, kind: input, shape index: {}] }
   0x1   :  { %s4980_s5 = sld [smem:[%s5468_s0]]   ;;  %s4912_s14 = smov 3  }
   0x2   :  { %s4985_s9 = sld [smem:[%s5468_s0 + %s4910_s6]]   ;;  %s4913_s18 = smov 4  }
   0x3   :  { %s4990_s13 = sld [smem:[%s5468_s0 + %s4911_s10]]   ;;  %s4914_s22 = smov 5  }
   0x4   :  { %s4995_s17 = sld [smem:[%s5468_s0 + %s4912_s14]]   ;;  %s4915_s26 = smov 6  }
   0x5   :  { %s5000_s21 = sld [smem:[%s5468_s0 + %s4913_s18]]   ;;  %s4916_s30 = smov 7  }
   0x6   :  { %s5005_s25 = sld [smem:[%s5468_s0 + %s4914_s22]]   ;;  %s4917_s4 = smov 8  }
   0x7   :  { %5475 = sst [smem:[#allocation50_spill]] %s4980_s5  ;;  %s4918_s10 = smov 9  }
   0x8   :  { %5476 = sst [smem:[#allocation51_spill]] %s4985_s9  ;;  %s4919_s15 = smov 10  }
   0x9   :  { %s5010_s29 = sld [smem:[%s5468_s0 + %s4915_s26]]   ;;  %s4920_s20 = smov 11  }
   0xa   :  { %s5015_s3 = sld [smem:[%s5468_s0 + %s4916_s30]]   ;;  %s4921_s26 = smov 12  }
   0xb   :  { %s5020_s8 = sld [smem:[%s5468_s0 + %s4917_s4]]   ;;  %s4922_s1 = smov 13  }
   0xc   :  { %s5025_s14 = sld [smem:[%s5468_s0 + %s4918_s10]]   ;;  %s4923_s7 = smov 15  }
   0xd   :  { %s5030_s19 = sld [smem:[%s5468_s0 + %s4919_s15]]   ;;  %s4924_s15 = smov 16  }
   0xe   :  { %s5035_s24 = sld [smem:[%s5468_s0 + %s4920_s20]]   ;;  %s4925_s22 = smov 17  }
   0xf   :  { %s3175_s30 = sld [smem:[%s5468_s0 + %s4921_s26]]   ;;  %s4926_s28 = smov 18  }
  0x10   :  { %s5043_s6 = sld [smem:[%s5468_s0 + %s4922_s1]]   ;;  %s4930_s1 = smov 23  }
  0x11   :  { %5477 = sst [smem:[#allocation52_spill]] %s5020_s8  ;;  %s4933_s8 = smov 27  }
  0x12   :  { %s5048_s12 = sld [smem:[%s5468_s0 + %s4923_s7]]   ;;  %s4927_s7 = smov 19  }
  0x13   :  { %5478 = sst [smem:[#allocation53_spill]] %s5030_s19  ;;  %s4934_s5 = smov 28  }
  0x14   :  { %s5053_s20 = sld [smem:[%s5468_s0 + %s4924_s15]]   ;;  %s4928_s15 = smov 20  }
  0x15   :  { %s5058_s27 = sld [smem:[%s5468_s0 + %s4925_s22]]   ;;  %v71_v0 = vstv %s3175_s30  ;;  %s4929_s22 = smov 21  }
  0x16   :  { %s5063_s4 = sld [smem:[%s5468_s0 + %s4926_s28]]   ;;  %72 = vst [vmem:[#allocation2] sm:$0x1] %v71_v0  ;;  %s4931_s30 = smov 25  }
  0x17   :  { %s5068_s19 = sld [smem:[%s5468_s0 + %s4927_s7]]  }
  0x18   :  { %s5073_s23 = sld [smem:[%s5468_s0 + %s4928_s15]]   ;;  %s4932_s15 = smov 26  }
  0x19   :  { %s5078_s28 = sld [smem:[%s5468_s0 + %s4929_s22]]  }
  0x1a   :  { %s5083_s7 = sld [smem:[%s5468_s0 + %s4930_s1]]  }
  0x1b   :  { %s5088_s16 = sld [smem:[%s5468_s0 + %s4931_s30]]   ;;  %s4935_s30 = smov 29  }
  0x1c   :  { %s5108_s9 = sld [smem:[%s5468_s0 + %s4935_s30]]   ;;  %s4939_s30 = smov 14  }
  0x1d   :  { %5479 = sst [smem:[#allocation54_spill]] %s5068_s19 }
  0x1e   :  { %5480 = sst [smem:[#allocation55_spill]] %s5073_s23  ;;  %s4936_s23 = smov 30  }
  0x1f   :  { %5481 = sst [smem:[#allocation56_spill]] %s5078_s28 }
  0x20   :  { %5482 = sst [smem:[#allocation57_spill]] %s5083_s7 }
  0x21   :  { %5483 = sst [smem:[#allocation58_spill]] %s5088_s16  ;;  %s4941_s16 = smov 24  }
  0x22   :  { %s5093_s19 = sld [smem:[%s5468_s0 + %s4932_s15]]   ;;  %s4940_s15 = smov 22  }
  0x23   :  { %s5098_s28 = sld [smem:[%s5468_s0 + %s4933_s8]]   ;;  %s4937_s8 = smov 31  }
  0x24   :  { %s5103_s7 = sld [smem:[%s5468_s0 + %s4934_s5]]   ;;  %s4938_s5 = smov 32  }
  0x25   :  { %5487 = sst [smem:[#allocation62_spill]] %s5108_s9 }
  0x26   :  { %s3177_s9 = sld [smem:[%s5468_s0 + %s4939_s30]]  }
  0x27   :  { %s3187_s26 = sld [smem:[%s5468_s0 + %s4941_s16]]  }
  0x28   :  { %5484 = sst [smem:[#allocation59_spill]] %s5093_s19 }
  0x29   :  { %5485 = sst [smem:[#allocation60_spill]] %s5098_s28 }
  0x2a   :  { %5486 = sst [smem:[#allocation61_spill]] %s5103_s7 }
  0x2b   :  { %s5113_s19 = sld [smem:[%s5468_s0 + %s4936_s23]]  }
  0x2c   :  { %s5118_s28 = sld [smem:[%s5468_s0 + %s4937_s8]]   ;;  %v73_v1 = vstv %s3177_s9 }
  0x2d   :  { %s5123_s7 = sld [smem:[%s5468_s0 + %s4938_s5]]   ;;  %74 = vst [vmem:[#allocation3] sm:$0x1] %v73_v1  ;;  %v77_v3 = vstv %s3187_s26 }
  0x2e   :  { %78 = vst [vmem:[#allocation5] sm:$0x1] %v77_v3 }
  0x31   :  { %5488 = sst [smem:[#allocation63_spill]] %s5113_s19 }
  0x32   :  { %s3185_s19 = sld [smem:[%s5468_s0 + %s4940_s15]]  }
  0x38   :  { %v75_v2 = vstv %s3185_s19 }
  0x39   :  { %76 = vst [vmem:[#allocation4] sm:$0x1] %v75_v2 }
  0x3a   :  { %79 = vsyncpa [#allocation7], 0 }
  0x3b   :  { %80 = vsyncpa [#allocation10], 0 }
  0x3c   :  { %81 = vsyncpa [#allocation13], 0 }
  0x3d   :  { %82 = vsyncpa [#allocation16], 0 }
  0x3e   :  { %83 = vsyncpa [#allocation19], 0 }
  0x3f   :  { %84 = vsyncpa [#allocation22], 0 }
  0x40   :  { %85 = vsyncpa [#allocation25], 0 }
  0x41   :  { %86 = vsyncpa [#allocation28], 0 }
  0x42   :  { %87 = vsyncpa [#allocation8], 0 }
  0x43   :  { %88 = vsyncpa [#allocation31], 0 }
  0x44   :  { %89 = vsyncpa [#allocation34], 0 }
  0x45   :  { %90 = vsyncpa [#allocation37], 0  ;;  %s4942_s0 = smov [#allocation9]   ;;  %s4943_s19 = smov [#allocation12]  }
  0x46   :  { %s111_s9 = sshll.u32 %s4942_s0, 4  ;;  %s133_s16 = sshll.u32 %s4943_s19, 4  ;;  %s112_s9 = int_to_ptr.vmem [resolvable:$true] %s111_s9  ;;  %s134_s16 = int_to_ptr.vmem [resolvable:$true] %s133_s16 }
  0x47   :  { %s4438_s5 = scalar_lea.hbm %s4995_s17, 32 }
  0x48   :  { %p4439_p0 = scmp.ne.s32.totalorder %s4995_s17, %s4438_s5  ;;  %p4442_p1 = scmp.lt.u32.totalorder %s4438_s5, %s4995_s17 }
  0x4a   :  { %p4444_p2 = pnand %p4442_p1, %p4439_p0 }
  0x4c   :  { %4447 = shalt.err (!%p4444_p2)
}
  0x4d   :  { %s4448_s1 = scalar_lea.vmem %s112_s9, 32  ;;  %p4453_p4 = scmp.lt.s32.totalorder %s112_s9, %s112_s9 }
  0x4e   :  { %p4449_p3 = scmp.ne.s32.totalorder %s112_s9, %s4448_s1  ;;  %p4454_p5 = scmp.lt.s32.totalorder %s4448_s1, %s4448_s1 }
  0x50   :  { %p4455_p6 = por %p4454_p5, %p4453_p4 }
  0x52   :  { %p4456_p7 = pnand %p4455_p6, %p4449_p3 }
  0x54   :  { %4459 = shalt.err (!%p4456_p7)
}
  0x55   :  { %114 = dma.hbm_to_vmem [thread:$0]  %s4995_s17, 32, %s112_s9, [#allocation10]  }
  0x56   :  { %s4460_s2 = scalar_lea.hbm %s5005_s25, 32 }
  0x57   :  { %p4461_p8 = scmp.ne.s32.totalorder %s5005_s25, %s4460_s2  ;;  %p4464_p9 = scmp.lt.u32.totalorder %s4460_s2, %s5005_s25 }
  0x59   :  { %p4466_p10 = pnand %p4464_p9, %p4461_p8 }
  0x5b   :  { %4469 = shalt.err (!%p4466_p10)
}
  0x5c   :  { %s4470_s30 = scalar_lea.vmem %s134_s16, 32  ;;  %p4475_p12 = scmp.lt.s32.totalorder %s134_s16, %s134_s16 }
  0x5d   :  { %p4471_p11 = scmp.ne.s32.totalorder %s134_s16, %s4470_s30  ;;  %p4476_p13 = scmp.lt.s32.totalorder %s4470_s30, %s4470_s30 }
  0x5f   :  { %p4477_p0 = por %p4476_p13, %p4475_p12 }
  0x61   :  { %p4478_p1 = pnand %p4477_p0, %p4471_p11 }
  0x63   :  { %4481 = shalt.err (!%p4478_p1)
}
  0x64   :  { %136 = dma.hbm_to_vmem [thread:$0]  %s5005_s25, 32, %s134_s16, [#allocation13]  }
  0x65   :  { %s4944_s10 = smov [#allocation15]   ;;  %s4482_s17 = scalar_lea.hbm %s5015_s3, 12288 }
  0x66   :  { %s154_s11 = sshll.u32 %s4944_s10, 4  ;;  %p4483_p2 = scmp.ne.s32.totalorder %s5015_s3, %s4482_s17  ;;  %s155_s11 = int_to_ptr.vmem [resolvable:$true] %s154_s11 }
  0x67   :  { %p4486_p3 = scmp.lt.u32.totalorder %s4482_s17, %s5015_s3 }
  0x69   :  { %p4488_p4 = pnand %p4486_p3, %p4483_p2 }
  0x6b   :  { %4491 = shalt.err (!%p4488_p4)
}
  0x6c   :  { %s4492_s15 = scalar_lea.vmem %s155_s11, 12288  ;;  %p4497_p6 = scmp.lt.s32.totalorder %s155_s11, %s155_s11 }
  0x6d   :  { %p4493_p5 = scmp.ne.s32.totalorder %s155_s11, %s4492_s15  ;;  %p4498_p7 = scmp.lt.s32.totalorder %s4492_s15, %s4492_s15 }
  0x6f   :  { %p4499_p8 = por %p4498_p7, %p4497_p6 }
  0x71   :  { %p4500_p9 = pnand %p4499_p8, %p4493_p5 }
  0x73   :  { %4503 = shalt.err (!%p4500_p9)
}
  0x74   :  { %s4945_s23 = smov 256   ;;  %s4946_s25 = smov 16  }
  0x75   :  { %160 = dma.hbm_to_vmem [thread:$0]  %s5015_s3, 12288, %s155_s11, [#allocation16], %s4945_s23, %s4945_s23, %s4946_s25  }
  0x76   :  { %s4947_s18 = smov [#allocation18]   ;;  %s4504_s8 = scalar_lea.hbm %s5035_s24, 16 }
  0x77   :  { %s183_s22 = sshll.u32 %s4947_s18, 4  ;;  %p4505_p10 = scmp.ne.s32.totalorder %s5035_s24, %s4504_s8  ;;  %s184_s22 = int_to_ptr.vmem [resolvable:$true] %s183_s22 }
  0x78   :  { %p4508_p11 = scmp.lt.u32.totalorder %s4504_s8, %s5035_s24 }
  0x7a   :  { %p4510_p12 = pnand %p4508_p11, %p4505_p10 }
  0x7c   :  { %4513 = shalt.err (!%p4510_p12)
}
  0x7d   :  { %s4514_s26 = scalar_lea.vmem %s184_s22, 16  ;;  %s4518_s0 = scalar_lea.vmem %s184_s22, 32 }
  0x7e   :  { %p4515_p13 = scmp.ne.s32.totalorder %s184_s22, %s4514_s26  ;;  %p4519_p0 = scmp.lt.s32.totalorder %s184_s22, %s184_s22 }
  0x7f   :  { %p4520_p1 = scmp.lt.s32.totalorder %s4518_s0, %s4514_s26 }
  0x81   :  { %p4521_p2 = por %p4520_p1, %p4519_p0 }
  0x83   :  { %p4522_p3 = pnand %p4521_p2, %p4515_p13 }
  0x85   :  { %4525 = shalt.err (!%p4522_p3)
}
  0x86   :  { %186 = dma.hbm_to_vmem [thread:$0]  %s5035_s24, 16, %s184_s22, [#allocation19]  }
  0x87   :  { %s4948_s3 = smov [#allocation21]   ;;  %s4949_s19 = smov [#allocation24]  }
  0x88   :  { %s206_s9 = sshll.u32 %s4948_s3, 4  ;;  %s228_s16 = sshll.u32 %s4949_s19, 4  ;;  %s207_s9 = int_to_ptr.vmem [resolvable:$true] %s206_s9  ;;  %s5153_s16 = int_to_ptr.vmem [resolvable:$true] %s228_s16 }
  0x89   :  { %s4526_s5 = scalar_lea.hbm %s5048_s12, 2048 }
  0x8a   :  { %p4527_p4 = scmp.ne.s32.totalorder %s5048_s12, %s4526_s5  ;;  %p4530_p5 = scmp.lt.u32.totalorder %s4526_s5, %s5048_s12 }
  0x8c   :  { %p4532_p6 = pnand %p4530_p5, %p4527_p4 }
  0x8e   :  { %4535 = shalt.err (!%p4532_p6)
}
  0x8f   :  { %s4536_s1 = scalar_lea.vmem %s207_s9, 2048  ;;  %p4541_p8 = scmp.lt.s32.totalorder %s207_s9, %s207_s9 }
  0x90   :  { %p4537_p7 = scmp.ne.s32.totalorder %s207_s9, %s4536_s1  ;;  %p4542_p9 = scmp.lt.s32.totalorder %s4536_s1, %s4536_s1 }
  0x92   :  { %p4543_p10 = por %p4542_p9, %p4541_p8 }
  0x94   :  { %p4544_p11 = pnand %p4543_p10, %p4537_p7 }
  0x96   :  { %4547 = shalt.err (!%p4544_p11)
}
  0x97   :  { %s4950_s24 = smov 128   ;;  %s4951_s2 = smov 8  }
  0x98   :  { %212 = dma.hbm_to_vmem [thread:$0]  %s5048_s12, 2048, %s207_s9, [#allocation22], %s4950_s24, %s4950_s24, %s4951_s2  }
  0x99   :  { %s4548_s30 = scalar_lea.hbm %s5058_s27, 12288 }
  0x9a   :  { %p4549_p12 = scmp.ne.s32.totalorder %s5058_s27, %s4548_s30  ;;  %p4552_p13 = scmp.lt.u32.totalorder %s4548_s30, %s5058_s27 }
  0x9c   :  { %p4554_p0 = pnand %p4552_p13, %p4549_p12 }
  0x9e   :  { %4557 = shalt.err (!%p4554_p0)
}
  0x9f   :  { %s4558_s10 = scalar_lea.vmem %s5153_s16, 12288  ;;  %p4563_p2 = scmp.lt.s32.totalorder %s5153_s16, %s5153_s16 }
  0xa0   :  { %p4559_p1 = scmp.ne.s32.totalorder %s5153_s16, %s4558_s10  ;;  %p4564_p3 = scmp.lt.s32.totalorder %s4558_s10, %s4558_s10 }
  0xa2   :  { %p4565_p4 = por %p4564_p3, %p4563_p2 }
  0xa4   :  { %p4566_p5 = pnand %p4565_p4, %p4559_p1 }
  0xa6   :  { %4569 = shalt.err (!%p4566_p5)
}
  0xa7   :  { %234 = dma.hbm_to_vmem [thread:$0]  %s5058_s27, 12288, %s5153_s16, [#allocation25], %s4945_s23, %s4945_s23, %s4946_s25  }
  0xa8   :  { %s4952_s12 = smov [#allocation6]   ;;  %s4953_s17 = smov [#allocation11]  }
  0xa9   :  { %s101_s11 = sshll.u32 %s4952_s12, 4  ;;  %s120_s15 = sshll.u32 %s4953_s17, 4  ;;  %s102_s11 = int_to_ptr.vmem [resolvable:$true] %s101_s11  ;;  %s5174_s15 = int_to_ptr.vmem [resolvable:$true] %s120_s15 }
  0xaa   :  { %s4570_s18 = scalar_lea.hbm %s4990_s13, 32 }
  0xab   :  { %p4571_p6 = scmp.ne.s32.totalorder %s4990_s13, %s4570_s18  ;;  %p4574_p7 = scmp.lt.u32.totalorder %s4570_s18, %s4990_s13 }
  0xad   :  { %p4576_p8 = pnand %p4574_p7, %p4571_p6 }
  0xaf   :  { %4579 = shalt.err (!%p4576_p8)
}
  0xb0   :  { %s4580_s22 = scalar_lea.vmem %s102_s11, 32  ;;  %p4585_p10 = scmp.lt.s32.totalorder %s102_s11, %s102_s11 }
  0xb1   :  { %p4581_p9 = scmp.ne.s32.totalorder %s102_s11, %s4580_s22  ;;  %p4586_p11 = scmp.lt.s32.totalorder %s4580_s22, %s4580_s22 }
  0xb3   :  { %p4587_p12 = por %p4586_p11, %p4585_p10 }
  0xb5   :  { %p4588_p13 = pnand %p4587_p12, %p4581_p9 }
  0xb7   :  { %4591 = shalt.err (!%p4588_p13)
}
  0xb8   :  { %104 = dma.hbm_to_vmem [thread:$0]  %s4990_s13, 32, %s102_s11, [#allocation7]  }
  0xb9   :  { %s4592_s27 = scalar_lea.hbm %s5000_s21, 4096 }
  0xba   :  { %p4593_p0 = scmp.ne.s32.totalorder %s5000_s21, %s4592_s27  ;;  %p4596_p1 = scmp.lt.u32.totalorder %s4592_s27, %s5000_s21 }
  0xbc   :  { %p4598_p2 = pnand %p4596_p1, %p4593_p0 }
  0xbe   :  { %4601 = shalt.err (!%p4598_p2)
}
  0xbf   :  { %s4602_s23 = scalar_lea.vmem %s5174_s15, 4096  ;;  %p4607_p4 = scmp.lt.s32.totalorder %s5174_s15, %s5174_s15 }
  0xc0   :  { %p4603_p3 = scmp.ne.s32.totalorder %s5174_s15, %s4602_s23  ;;  %p4608_p5 = scmp.lt.s32.totalorder %s4602_s23, %s4602_s23 }
  0xc2   :  { %p4609_p6 = por %p4608_p5, %p4607_p4 }
  0xc4   :  { %p4610_p7 = pnand %p4609_p6, %p4603_p3 }
  0xc6   :  { %4613 = shalt.err (!%p4610_p7)
}
  0xc7   :  { %126 = dma.hbm_to_vmem [thread:$0]  %s5000_s21, 4096, %s5174_s15, [#allocation10], %s4950_s24, %s4950_s24, %s4951_s2  }
  0xc8   :  { %s4954_s13 = smov [#allocation14]   ;;  %s4955_s8 = smov [#allocation17]  }
  0xc9   :  { %s142_s25 = sshll.u32 %s4954_s13, 4  ;;  %s168_s26 = sshll.u32 %s4955_s8, 4  ;;  %s143_s25 = int_to_ptr.vmem [resolvable:$true] %s142_s25  ;;  %s5192_s26 = int_to_ptr.vmem [resolvable:$true] %s168_s26 }
  0xca   :  { %s4614_s0 = scalar_lea.hbm %s5010_s29, 2048 }
  0xcb   :  { %p4615_p8 = scmp.ne.s32.totalorder %s5010_s29, %s4614_s0  ;;  %p4618_p9 = scmp.lt.u32.totalorder %s4614_s0, %s5010_s29 }
  0xcd   :  { %p4620_p10 = pnand %p4618_p9, %p4615_p8 }
  0xcf   :  { %4623 = shalt.err (!%p4620_p10)
}
  0xd0   :  { %s4624_s3 = scalar_lea.vmem %s143_s25, 2048  ;;  %p4629_p12 = scmp.lt.s32.totalorder %s143_s25, %s143_s25 }
  0xd1   :  { %p4625_p11 = scmp.ne.s32.totalorder %s143_s25, %s4624_s3  ;;  %p4630_p13 = scmp.lt.s32.totalorder %s4624_s3, %s4624_s3 }
  0xd3   :  { %p4631_p0 = por %p4630_p13, %p4629_p12 }
  0xd5   :  { %p4632_p1 = pnand %p4631_p0, %p4625_p11 }
  0xd7   :  { %4635 = shalt.err (!%p4632_p1)
}
  0xd8   :  { %148 = dma.hbm_to_vmem [thread:$0]  %s5010_s29, 2048, %s143_s25, [#allocation13], %s4950_s24, %s4950_s24, %s4951_s2  }
  0xd9   :  { %s4636_s21 = scalar_lea.hbm %s5025_s14, 1024 }
  0xda   :  { %p4637_p2 = scmp.ne.s32.totalorder %s5025_s14, %s4636_s21  ;;  %p4640_p3 = scmp.lt.u32.totalorder %s4636_s21, %s5025_s14 }
  0xdc   :  { %p4642_p4 = pnand %p4640_p3, %p4637_p2 }
  0xde   :  { %4645 = shalt.err (!%p4642_p4)
}
  0xdf   :  { %s4646_s9 = scalar_lea.vmem %s5192_s26, 1024  ;;  %p4651_p6 = scmp.lt.s32.totalorder %s5192_s26, %s5192_s26 }
  0xe0   :  { %p4647_p5 = scmp.ne.s32.totalorder %s5192_s26, %s4646_s9  ;;  %p4652_p7 = scmp.lt.s32.totalorder %s4646_s9, %s4646_s9 }
  0xe2   :  { %p4653_p8 = por %p4652_p7, %p4651_p6 }
  0xe4   :  { %p4654_p9 = pnand %p4653_p8, %p4647_p5 }
  0xe6   :  { %4657 = shalt.err (!%p4654_p9)
}
  0xe7   :  { %s4956_s19 = smov 64   ;;  %s4957_s29 = smov 4  }
  0xe8   :  { %174 = dma.hbm_to_vmem [thread:$0]  %s5025_s14, 1024, %s5192_s26, [#allocation16], %s4956_s19, %s4956_s19, %s4957_s29  }
  0xe9   :  { %s4958_s16 = smov [#allocation20]   ;;  %s4959_s1 = smov [#allocation23]  }
  0xea   :  { %s195_s5 = sshll.u32 %s4958_s16, 4  ;;  %s219_s30 = sshll.u32 %s4959_s1, 4  ;;  %s196_s5 = int_to_ptr.vmem [resolvable:$true] %s195_s5  ;;  %s220_s30 = int_to_ptr.vmem [resolvable:$true] %s219_s30 }
  0xeb   :  { %s4658_s10 = scalar_lea.hbm %s5043_s6, 16 }
  0xec   :  { %p4659_p10 = scmp.ne.s32.totalorder %s5043_s6, %s4658_s10  ;;  %p4662_p11 = scmp.lt.u32.totalorder %s4658_s10, %s5043_s6 }
  0xee   :  { %p4664_p12 = pnand %p4662_p11, %p4659_p10 }
  0xf0   :  { %4667 = shalt.err (!%p4664_p12)
}
  0xf1   :  { %s4668_s12 = scalar_lea.vmem %s196_s5, 16  ;;  %s4672_s11 = scalar_lea.vmem %s196_s5, 32 }
  0xf2   :  { %p4669_p13 = scmp.ne.s32.totalorder %s196_s5, %s4668_s12  ;;  %p4673_p0 = scmp.lt.s32.totalorder %s196_s5, %s196_s5 }
  0xf3   :  { %p4674_p1 = scmp.lt.s32.totalorder %s4672_s11, %s4668_s12 }
  0xf5   :  { %p4675_p2 = por %p4674_p1, %p4673_p0 }
  0xf7   :  { %p4676_p3 = pnand %p4675_p2, %p4669_p13 }
  0xf9   :  { %4679 = shalt.err (!%p4676_p3)
}
  0xfa   :  { %198 = dma.hbm_to_vmem [thread:$0]  %s5043_s6, 16, %s196_s5, [#allocation19]  }
  0xfb   :  { %s4680_s14 = scalar_lea.hbm %s5053_s20, 32 }
  0xfc   :  { %p4681_p4 = scmp.ne.s32.totalorder %s5053_s20, %s4680_s14  ;;  %p4684_p5 = scmp.lt.u32.totalorder %s4680_s14, %s5053_s20 }
  0xfe   :  { %p4686_p6 = pnand %p4684_p5, %p4681_p4 }
 0x100   :  { %4689 = shalt.err (!%p4686_p6)
}
 0x101   :  { %s4690_s17 = scalar_lea.vmem %s220_s30, 32  ;;  %p4695_p8 = scmp.lt.s32.totalorder %s220_s30, %s220_s30 }
 0x102   :  { %p4691_p7 = scmp.ne.s32.totalorder %s220_s30, %s4690_s17  ;;  %p4696_p9 = scmp.lt.s32.totalorder %s4690_s17, %s4690_s17 }
 0x104   :  { %p4697_p10 = por %p4696_p9, %p4695_p8 }
 0x106   :  { %p4698_p11 = pnand %p4697_p10, %p4691_p7 }
 0x108   :  { %4701 = shalt.err (!%p4698_p11)
}
 0x109   :  { %222 = dma.hbm_to_vmem [thread:$0]  %s5053_s20, 32, %s220_s30, [#allocation22]  }
 0x10a   :  { %s4960_s15 = smov [#allocation26]   ;;  %s4961_s6 = smov [#allocation27]  }
 0x10b   :  { %s241_s18 = sshll.u32 %s4960_s15, 4  ;;  %s262_s22 = sshll.u32 %s4961_s6, 4  ;;  %s242_s18 = int_to_ptr.vmem [resolvable:$true] %s241_s18  ;;  %s5218_s22 = int_to_ptr.vmem [resolvable:$true] %s262_s22 }
 0x10c   :  { %s4702_s27 = scalar_lea.hbm %s5063_s4, 64 }
 0x10d   :  { %p4703_p12 = scmp.ne.s32.totalorder %s5063_s4, %s4702_s27  ;;  %p4706_p13 = scmp.lt.u32.totalorder %s4702_s27, %s5063_s4 }
 0x10f   :  { %p4708_p0 = pnand %p4706_p13, %p4703_p12 }
 0x111   :  { %4711 = shalt.err (!%p4708_p0)
}
 0x112   :  { %s4712_s23 = scalar_lea.vmem %s242_s18, 64  ;;  %p4717_p2 = scmp.lt.s32.totalorder %s242_s18, %s242_s18 }
 0x113   :  { %p4713_p1 = scmp.ne.s32.totalorder %s242_s18, %s4712_s23  ;;  %p4718_p3 = scmp.lt.s32.totalorder %s4712_s23, %s4712_s23 }
 0x115   :  { %p4719_p4 = por %p4718_p3, %p4717_p2 }
 0x117   :  { %p4720_p5 = pnand %p4719_p4, %p4713_p1 }
 0x119   :  { %4723 = shalt.err (!%p4720_p5)
}
 0x11a   :  { %s5489_s20 = sld [smem:[#allocation58_spill]] }
 0x11b   :  { %244 = dma.hbm_to_vmem [thread:$0]  %s5063_s4, 64, %s242_s18, [#allocation25]  }
 0x120   :  { %s4724_s13 = scalar_lea.hbm %s5489_s20, 2048 }
 0x121   :  { %p4725_p6 = scmp.ne.s32.totalorder %s5489_s20, %s4724_s13  ;;  %p4728_p7 = scmp.lt.u32.totalorder %s4724_s13, %s5489_s20 }
 0x123   :  { %p4730_p8 = pnand %p4728_p7, %p4725_p6 }
 0x125   :  { %4733 = shalt.err (!%p4730_p8)
}
 0x126   :  { %s4734_s25 = scalar_lea.vmem %s5218_s22, 2048  ;;  %p4739_p10 = scmp.lt.s32.totalorder %s5218_s22, %s5218_s22 }
 0x127   :  { %p4735_p9 = scmp.ne.s32.totalorder %s5218_s22, %s4734_s25  ;;  %p4740_p11 = scmp.lt.s32.totalorder %s4734_s25, %s4734_s25 }
 0x129   :  { %p4741_p12 = por %p4740_p11, %p4739_p10 }
 0x12b   :  { %p4742_p13 = pnand %p4741_p12, %p4735_p9 }
 0x12d   :  { %4745 = shalt.err (!%p4742_p13)
}
 0x12e   :  { %268 = dma.hbm_to_vmem [thread:$0]  %s5489_s20, 2048, %s5218_s22, [#allocation28], %s4950_s24, %s4950_s24, %s4951_s2  }
 0x12f   :  { %4882 = dma.done.wait [#allocation7], 32  }
 0x130   :  { %4883 = vsyncadd [#allocation7], 4294967264 }
 0x131   :  { %4884 = dma.done.wait [#allocation10], 4128  }
 0x132   :  { %4885 = vsyncadd [#allocation10], 4294963168 }
 0x133   :  { %4886 = dma.done.wait [#allocation13], 2080  }
 0x134   :  { %4887 = vsyncadd [#allocation13], 4294965216 }
 0x135   :  { %4888 = dma.done.wait [#allocation16], 13312  }
 0x136   :  { %4889 = vsyncadd [#allocation16], 4294953984 }
 0x137   :  { %4890 = dma.done.wait [#allocation19], 32  }
 0x138   :  { %4891 = vsyncadd [#allocation19], 4294967264 }
 0x139   :  { %4892 = dma.done.wait [#allocation22], 2080  }
 0x13a   :  { %4893 = vsyncadd [#allocation22], 4294965216 }
 0x13b   :  { %4894 = dma.done.wait [#allocation25], 12352  }
 0x13c   :  { %4895 = vsyncadd [#allocation25], 4294954944 }
 0x13d   :  { %4896 = dma.done.wait [#allocation28], 2048  }
 0x13e   :  { %4897 = vsyncadd [#allocation28], 4294965248  ;;  %s5490_s4 = sld [smem:[#allocation51_spill]]  ;;  %v386_v4 = vlaneseq  ;;  %v316_v7 = vld [vmem:[#allocation6] sm:$0x3]  ;;  %v320_v9 = vld [vmem:[#allocation11] sm:$0xff] }
 0x13f   :  { %v318_v8 = vld [vmem:[#allocation9] sm:$0x3]  ;;  %317 = vst [vmem:[#allocation32] sm:$0x3] %v316_v7  ;;  %v321_v10 = vld [vmem:[#allocation11 + $0x8] sm:$0xff]  ;;  %v322_v11 = vld [vmem:[#allocation11 + $0x10] sm:$0xff] }
 0x140   :  { %v5237_v5 = vand.u32 127, %v386_v4  ;;  %319 = vst [vmem:[#allocation33] sm:$0x3] %v318_v8  ;;  %352 = vst [vmem:[#allocation35] sm:$0xff] %v320_v9  ;;  %v323_v12 = vld [vmem:[#allocation11 + $0x18] sm:$0xff]  ;;  %v324_v13 = vld [vmem:[#allocation11 + $0x20] sm:$0xff] }
 0x141   :  { %353 = vst [vmem:[#allocation35 + $0x8] sm:$0xff] %v321_v10  ;;  %354 = vst [vmem:[#allocation35 + $0x10] sm:$0xff] %v322_v11  ;;  %v325_v14 = vld [vmem:[#allocation11 + $0x28] sm:$0xff]  ;;  %v326_v15 = vld [vmem:[#allocation11 + $0x30] sm:$0xff]  ;;  %s5240_s8 = smov 0  }
 0x142   :  { %355 = vst [vmem:[#allocation35 + $0x18] sm:$0xff] %v323_v12  ;;  %356 = vst [vmem:[#allocation35 + $0x20] sm:$0xff] %v324_v13  ;;  %v327_v16 = vld [vmem:[#allocation11 + $0x38] sm:$0xff]  ;;  %v328_v17 = vld [vmem:[#allocation11 + $0x40] sm:$0xff] }
 0x143   :  { %357 = vst [vmem:[#allocation35 + $0x28] sm:$0xff] %v325_v14  ;;  %358 = vst [vmem:[#allocation35 + $0x30] sm:$0xff] %v326_v15  ;;  %v329_v18 = vld [vmem:[#allocation11 + $0x48] sm:$0xff]  ;;  %v330_v19 = vld [vmem:[#allocation11 + $0x50] sm:$0xff] }
 0x144   :  { %v314_v6 = vld [vmem:[%s5490_s4] sm:$0x3]  ;;  %359 = vst [vmem:[#allocation35 + $0x38] sm:$0xff] %v327_v16  ;;  %360 = vst [vmem:[#allocation35 + $0x40] sm:$0xff] %v328_v17  ;;  %v332_v21 = vld [vmem:[#allocation11 + $0x60] sm:$0xff] }
 0x145   :  { %315 = vst [vmem:[#allocation30] sm:$0x3] %v314_v6  ;;  %v331_v20 = vld [vmem:[#allocation11 + $0x58] sm:$0xff]  ;;  %361 = vst [vmem:[#allocation35 + $0x48] sm:$0xff] %v329_v18  ;;  %v333_v22 = vld [vmem:[#allocation11 + $0x68] sm:$0xff] }
 0x146   :  { %362 = vst [vmem:[#allocation35 + $0x50] sm:$0xff] %v330_v19  ;;  %363 = vst [vmem:[#allocation35 + $0x58] sm:$0xff] %v331_v20  ;;  %v334_v23 = vld [vmem:[#allocation11 + $0x70] sm:$0xff]  ;;  %v335_v24 = vld [vmem:[#allocation11 + $0x78] sm:$0xff] }
 0x147   :  { %364 = vst [vmem:[#allocation35 + $0x60] sm:$0xff] %v332_v21  ;;  %365 = vst [vmem:[#allocation35 + $0x68] sm:$0xff] %v333_v22  ;;  %v336_v25 = vld [vmem:[#allocation11 + $0x80] sm:$0xff]  ;;  %v337_v26 = vld [vmem:[#allocation11 + $0x88] sm:$0xff] }
 0x148   :  { %366 = vst [vmem:[#allocation35 + $0x70] sm:$0xff] %v334_v23  ;;  %367 = vst [vmem:[#allocation35 + $0x78] sm:$0xff] %v335_v24  ;;  %v338_v27 = vld [vmem:[#allocation11 + $0x90] sm:$0xff]  ;;  %v339_v28 = vld [vmem:[#allocation11 + $0x98] sm:$0xff] }
 0x149   :  { %368 = vst [vmem:[#allocation35 + $0x80] sm:$0xff] %v336_v25  ;;  %369 = vst [vmem:[#allocation35 + $0x88] sm:$0xff] %v337_v26  ;;  %v340_v29 = vld [vmem:[#allocation11 + $0xa0] sm:$0xff]  ;;  %v341_v30 = vld [vmem:[#allocation11 + $0xa8] sm:$0xff] }
 0x14a   :  { %370 = vst [vmem:[#allocation35 + $0x90] sm:$0xff] %v338_v27  ;;  %371 = vst [vmem:[#allocation35 + $0x98] sm:$0xff] %v339_v28  ;;  %v342_v31 = vld [vmem:[#allocation11 + $0xb0] sm:$0xff]  ;;  %v343_v32 = vld [vmem:[#allocation11 + $0xb8] sm:$0xff] }
 0x14b   :  { %372 = vst [vmem:[#allocation35 + $0xa0] sm:$0xff] %v340_v29  ;;  %373 = vst [vmem:[#allocation35 + $0xa8] sm:$0xff] %v341_v30  ;;  %v344_v33 = vld [vmem:[#allocation11 + $0xc0] sm:$0xff]  ;;  %v345_v34 = vld [vmem:[#allocation11 + $0xc8] sm:$0xff] }
 0x14c   :  { %374 = vst [vmem:[#allocation35 + $0xb0] sm:$0xff] %v342_v31  ;;  %375 = vst [vmem:[#allocation35 + $0xb8] sm:$0xff] %v343_v32  ;;  %v346_v35 = vld [vmem:[#allocation11 + $0xd0] sm:$0xff]  ;;  %v347_v36 = vld [vmem:[#allocation11 + $0xd8] sm:$0xff] }
 0x14d   :  { %376 = vst [vmem:[#allocation35 + $0xc0] sm:$0xff] %v344_v33  ;;  %377 = vst [vmem:[#allocation35 + $0xc8] sm:$0xff] %v345_v34  ;;  %v348_v37 = vld [vmem:[#allocation11 + $0xe0] sm:$0xff]  ;;  %v349_v38 = vld [vmem:[#allocation11 + $0xe8] sm:$0xff] }
 0x14e   :  { %378 = vst [vmem:[#allocation35 + $0xd0] sm:$0xff] %v346_v35  ;;  %379 = vst [vmem:[#allocation35 + $0xd8] sm:$0xff] %v347_v36  ;;  %v350_v39 = vld [vmem:[#allocation11 + $0xf0] sm:$0xff]  ;;  %v351_v40 = vld [vmem:[#allocation11 + $0xf8] sm:$0xff] }
 0x14f   :  { %380 = vst [vmem:[#allocation35 + $0xe0] sm:$0xff] %v348_v37  ;;  %381 = vst [vmem:[#allocation35 + $0xe8] sm:$0xff] %v349_v38  ;;  %v384_v41 = vld [vmem:[#allocation12] sm:$0x3] }
 0x150   :  { %382 = vst [vmem:[#allocation35 + $0xf0] sm:$0xff] %v350_v39  ;;  %383 = vst [vmem:[#allocation35 + $0xf8] sm:$0xff] %v351_v40 }
 0x151   :  { %385 = vst [vmem:[#allocation36] sm:$0x3] %v384_v41 }
 0x152 LB: > { %v4054_v42 = vld [vmem:[#allocation15 + $0x4] ss:$16 sps:$4 sm:$0xff]   ;;  %v4056_v43 = vld [vmem:[#allocation15 + $0xc] ss:$16 sps:$4 sm:$0xff]   ;;  %v4962_v44 = vmov 0   ;;  %s5491_s26 = sld [smem:[#allocation50_spill]]  ;;  %s4908_s8 = sphi %s5240_s8, %s393_s8  }
 0x153   : > { %4052 = vset.pattern.permute.xlu1 %v4962_v44  ;;  %4053 = vset.pattern.permute.xlu0 %v4962_v44  ;;  %v4058_v45 = vld [vmem:[#allocation15] ss:$16 sps:$4 sm:$0xff]   ;;  %v4059_v46 = vld [vmem:[#allocation15 + $0x8] ss:$16 sps:$4 sm:$0xff]   ;;  %v4060_v47 = vld [vmem:[#allocation15 + $0x24] ss:$16 sps:$4 sm:$0xff]  }
 0x154   : > { %1002 = vmatprep.subr.bf16.mxu0 %v4054_v42  ;;  %1084 = vmatprep.subr.bf16.mxu1 %v4056_v43  ;;  %v4062_v48 = vld [vmem:[#allocation15 + $0x2c] ss:$16 sps:$4 sm:$0xff]   ;;  %v4064_v49 = vld [vmem:[#allocation15 + $0x20] ss:$16 sps:$4 sm:$0xff]   ;;  %v4065_v50 = vld [vmem:[#allocation15 + $0x28] ss:$16 sps:$4 sm:$0xff]  }
 0x155   : > { %1003 = vmatpush1.bf16.msra.mxu0 %v4058_v45  ;;  %1085 = vmatpush1.bf16.msra.mxu1 %v4059_v46  ;;  %v4066_v51 = vld [vmem:[#allocation15 + $0x44] ss:$16 sps:$4 sm:$0xff]   ;;  %v4068_v52 = vld [vmem:[#allocation15 + $0x4c] ss:$16 sps:$4 sm:$0xff]   ;;  %v4070_v53 = vld [vmem:[#allocation15 + $0x40] ss:$16 sps:$4 sm:$0xff]  }
 0x156   : > { %1004 = vmatprep.subr.bf16.mxu0 %v4060_v47  ;;  %1086 = vmatprep.subr.bf16.mxu1 %v4062_v48  ;;  %v4071_v54 = vld [vmem:[#allocation15 + $0x48] ss:$16 sps:$4 sm:$0xff]   ;;  %v4072_v55 = vld [vmem:[#allocation15 + $0x64] ss:$16 sps:$4 sm:$0xff]   ;;  %v4074_v56 = vld [vmem:[#allocation15 + $0x6c] ss:$16 sps:$4 sm:$0xff]  }
 0x157   : > { %v4076_v57 = vld [vmem:[#allocation15 + $0x60] ss:$16 sps:$4 sm:$0xff]   ;;  %v4077_v58 = vld [vmem:[#allocation15 + $0x68] ss:$16 sps:$4 sm:$0xff]   ;;  %v4078_v59 = vld [vmem:[#allocation15 + $0x84] ss:$16 sps:$4 sm:$0xff]  }
 0x158   : > { %v4080_v60 = vld [vmem:[#allocation15 + $0x8c] ss:$16 sps:$4 sm:$0xff]   ;;  %v4082_v61 = vld [vmem:[#allocation15 + $0x80] ss:$16 sps:$4 sm:$0xff]   ;;  %v4083_v62 = vld [vmem:[#allocation15 + $0x88] ss:$16 sps:$4 sm:$0xff]   ;;  %s394_s0 = scalar_lea.vmem %s5491_s26, %s4908_s8 }
 0x159   : > { %1005 = vmatpush1.bf16.msra.mxu0 %v4064_v49  ;;  %1087 = vmatpush1.bf16.msra.mxu1 %v4065_v50  ;;  %v4084_v63 = vld [vmem:[#allocation15 + $0xa4] ss:$16 sps:$4 sm:$0xff]   ;;  %v4086_v0 = vld [vmem:[#allocation15 + $0xac] ss:$16 sps:$4 sm:$0xff]   ;;  %v4088_v1 = vld [vmem:[#allocation15 + $0xa0] ss:$16 sps:$4 sm:$0xff]  }
 0x15a   : > { %1006 = vmatprep.subr.bf16.mxu0 %v4066_v51  ;;  %1088 = vmatprep.subr.bf16.mxu1 %v4068_v52  ;;  %v4089_v2 = vld [vmem:[#allocation15 + $0xa8] ss:$16 sps:$4 sm:$0xff]   ;;  %v4090_v3 = vld [vmem:[#allocation15 + $0xc4] ss:$16 sps:$4 sm:$0xff]   ;;  %v4092_v6 = vld [vmem:[#allocation15 + $0xcc] ss:$16 sps:$4 sm:$0xff]  }
 0x15b   : > { %v4094_v7 = vld [vmem:[#allocation15 + $0xc0] ss:$16 sps:$4 sm:$0xff]   ;;  %v4095_v8 = vld [vmem:[#allocation15 + $0xc8] ss:$16 sps:$4 sm:$0xff]   ;;  %v4096_v9 = vld [vmem:[#allocation15 + $0xe4] ss:$16 sps:$4 sm:$0xff]  }
 0x15c   : > { %v4098_v10 = vld [vmem:[#allocation15 + $0xec] ss:$16 sps:$4 sm:$0xff]   ;;  %v4100_v11 = vld [vmem:[#allocation15 + $0xe0] ss:$16 sps:$4 sm:$0xff]   ;;  %v4101_v12 = vld [vmem:[#allocation15 + $0xe8] ss:$16 sps:$4 sm:$0xff]  }
 0x15d   : > { %1007 = vmatpush1.bf16.msra.mxu0 %v4070_v53  ;;  %1089 = vmatpush1.bf16.msra.mxu1 %v4071_v54  ;;  %v4102_v13 = vld [vmem:[#allocation15 + $0x104] ss:$16 sps:$4 sm:$0xff]   ;;  %v4104_v14 = vld [vmem:[#allocation15 + $0x10c] ss:$16 sps:$4 sm:$0xff]   ;;  %v4106_v15 = vld [vmem:[#allocation15 + $0x100] ss:$16 sps:$4 sm:$0xff]  }
 0x15e   : > { %1008 = vmatprep.subr.bf16.mxu0 %v4072_v55  ;;  %1090 = vmatprep.subr.bf16.mxu1 %v4074_v56  ;;  %v4107_v16 = vld [vmem:[#allocation15 + $0x108] ss:$16 sps:$4 sm:$0xff]   ;;  %v4108_v17 = vld [vmem:[#allocation15 + $0x124] ss:$16 sps:$4 sm:$0xff]   ;;  %v4110_v18 = vld [vmem:[#allocation15 + $0x12c] ss:$16 sps:$4 sm:$0xff]  }
 0x15f   : > { %v4112_v19 = vld [vmem:[#allocation15 + $0x120] ss:$16 sps:$4 sm:$0xff]   ;;  %v4113_v20 = vld [vmem:[#allocation15 + $0x128] ss:$16 sps:$4 sm:$0xff]   ;;  %v4114_v21 = vld [vmem:[#allocation15 + $0x144] ss:$16 sps:$4 sm:$0xff]  }
 0x160   : > { %v4116_v22 = vld [vmem:[#allocation15 + $0x14c] ss:$16 sps:$4 sm:$0xff]   ;;  %v4118_v23 = vld [vmem:[#allocation15 + $0x140] ss:$16 sps:$4 sm:$0xff]   ;;  %v4119_v24 = vld [vmem:[#allocation15 + $0x148] ss:$16 sps:$4 sm:$0xff]  }
 0x161   : > { %1009 = vmatpush1.bf16.msra.mxu0 %v4076_v57  ;;  %1091 = vmatpush1.bf16.msra.mxu1 %v4077_v58  ;;  %v4120_v25 = vld [vmem:[#allocation15 + $0x164] ss:$16 sps:$4 sm:$0xff]   ;;  %v4122_v26 = vld [vmem:[#allocation15 + $0x16c] ss:$16 sps:$4 sm:$0xff]   ;;  %v4124_v28 = vld [vmem:[#allocation15 + $0x160] ss:$16 sps:$4 sm:$0xff]  }
 0x162   : > { %1010 = vmatprep.subr.bf16.mxu0 %v4078_v59  ;;  %1092 = vmatprep.subr.bf16.mxu1 %v4080_v60  ;;  %v398_v27 = vld [vmem:[#allocation33] sm:$0x1]  ;;  %v4125_v30 = vld [vmem:[#allocation15 + $0x168] ss:$16 sps:$4 sm:$0xff]   ;;  %v4128_v32 = vld [vmem:[#allocation15 + $0x18c] ss:$16 sps:$4 sm:$0xff]  }
 0x163   : > { %v402_v29 = vpack.c.bf16 %v398_v27, %v398_v27  ;;  %v4126_v31 = vld [vmem:[#allocation15 + $0x184] ss:$16 sps:$4 sm:$0xff]   ;;  %v4130_v33 = vld [vmem:[#allocation15 + $0x180] ss:$16 sps:$4 sm:$0xff]   ;;  %v4131_v34 = vld [vmem:[#allocation15 + $0x188] ss:$16 sps:$4 sm:$0xff]  }
 0x164   : > { %v4132_v35 = vld [vmem:[#allocation15 + $0x1a4] ss:$16 sps:$4 sm:$0xff]   ;;  %v4134_v36 = vld [vmem:[#allocation15 + $0x1ac] ss:$16 sps:$4 sm:$0xff]   ;;  %v4136_v37 = vld [vmem:[#allocation15 + $0x1a0] ss:$16 sps:$4 sm:$0xff]  }
 0x165   : > { %1011 = vmatpush1.bf16.msra.mxu0 %v4082_v61  ;;  %1093 = vmatpush1.bf16.msra.mxu1 %v4083_v62  ;;  %v4137_v38 = vld [vmem:[#allocation15 + $0x1a8] ss:$16 sps:$4 sm:$0xff]   ;;  %v4138_v39 = vld [vmem:[#allocation15 + $0x1c4] ss:$16 sps:$4 sm:$0xff]   ;;  %v4140_v40 = vld [vmem:[#allocation15 + $0x1cc] ss:$16 sps:$4 sm:$0xff]  }
 0x166   : > { %1012 = vmatprep.subr.bf16.mxu0 %v4084_v63  ;;  %1094 = vmatprep.subr.bf16.mxu1 %v4086_v0  ;;  %v4142_v41 = vld [vmem:[#allocation15 + $0x1c0] ss:$16 sps:$4 sm:$0xff]   ;;  %v4143_v42 = vld [vmem:[#allocation15 + $0x1c8] ss:$16 sps:$4 sm:$0xff]   ;;  %v4144_v43 = vld [vmem:[#allocation15 + $0x1e4] ss:$16 sps:$4 sm:$0xff]  }
 0x167   : > { %1034 = vmatprep.mubr.bf16.mxu0 %v402_v29  ;;  %1116 = vmatprep.mubr.bf16.mxu1 %v402_v29  ;;  %v4146_v45 = vld [vmem:[#allocation15 + $0x1ec] ss:$16 sps:$4 sm:$0xff]   ;;  %v4148_v46 = vld [vmem:[#allocation15 + $0x1e0] ss:$16 sps:$4 sm:$0xff]   ;;  %v4149_v47 = vld [vmem:[#allocation15 + $0x1e8] ss:$16 sps:$4 sm:$0xff]  }
 0x168   : > { %v395_v48 = vld [vmem:[%s394_s0] sm:$0x1]  ;;  %v4155_v50 = vld [vmem:[#allocation15 + $0x20c] ss:$16 sps:$4 sm:$0xff]   ;;  %v4150_v52 = vld [vmem:[#allocation15 + $0x200] ss:$16 sps:$4 sm:$0xff]  }
 0x169   : > { %1013 = vmatpush1.bf16.msra.mxu0 %v4088_v1  ;;  %1095 = vmatpush1.bf16.msra.mxu1 %v4089_v2  ;;  %v4152_v49 = vld [vmem:[#allocation15 + $0x204] ss:$16 sps:$4 sm:$0xff]   ;;  %v401_v51 = vpack.c.bf16 %v395_v48, %v395_v48  ;;  %v4153_v53 = vld [vmem:[#allocation15 + $0x208] ss:$16 sps:$4 sm:$0xff]   ;;  %v4161_v55 = vld [vmem:[#allocation15 + $0x22c] ss:$16 sps:$4 sm:$0xff]  }
 0x16a   : > { %1014 = vmatprep.subr.bf16.mxu0 %v4090_v3  ;;  %1096 = vmatprep.subr.bf16.mxu1 %v4092_v6  ;;  %v4158_v54 = vld [vmem:[#allocation15 + $0x224] ss:$16 sps:$4 sm:$0xff]   ;;  %v4156_v56 = vld [vmem:[#allocation15 + $0x220] ss:$16 sps:$4 sm:$0xff]   ;;  %v4159_v57 = vld [vmem:[#allocation15 + $0x228] ss:$16 sps:$4 sm:$0xff]  }
 0x16b   : > { %v4164_v58 = vld [vmem:[#allocation15 + $0x244] ss:$16 sps:$4 sm:$0xff]   ;;  %v4167_v59 = vld [vmem:[#allocation15 + $0x24c] ss:$16 sps:$4 sm:$0xff]   ;;  %v4162_v60 = vld [vmem:[#allocation15 + $0x240] ss:$16 sps:$4 sm:$0xff]  }
 0x16c   : > { %v4165_v61 = vld [vmem:[#allocation15 + $0x248] ss:$16 sps:$4 sm:$0xff]   ;;  %v4170_v62 = vld [vmem:[#allocation15 + $0x264] ss:$16 sps:$4 sm:$0xff]   ;;  %v4173_v63 = vld [vmem:[#allocation15 + $0x26c] ss:$16 sps:$4 sm:$0xff]  }
 0x16d   : > { %1015 = vmatpush1.bf16.msra.mxu0 %v4094_v7  ;;  %1097 = vmatpush1.bf16.msra.mxu1 %v4095_v8  ;;  %v4168_v0 = vld [vmem:[#allocation15 + $0x260] ss:$16 sps:$4 sm:$0xff]   ;;  %v4171_v1 = vld [vmem:[#allocation15 + $0x268] ss:$16 sps:$4 sm:$0xff]   ;;  %v4176_v2 = vld [vmem:[#allocation15 + $0x284] ss:$16 sps:$4 sm:$0xff]  }
 0x16e   : > { %1016 = vmatprep.subr.bf16.mxu0 %v4096_v9  ;;  %1098 = vmatprep.subr.bf16.mxu1 %v4098_v10  ;;  %v4179_v3 = vld [vmem:[#allocation15 + $0x28c] ss:$16 sps:$4 sm:$0xff]   ;;  %v4174_v6 = vld [vmem:[#allocation15 + $0x280] ss:$16 sps:$4 sm:$0xff]   ;;  %v4177_v7 = vld [vmem:[#allocation15 + $0x288] ss:$16 sps:$4 sm:$0xff]  }
 0x16f   : > { %v4182_v8 = vld [vmem:[#allocation15 + $0x2a4] ss:$16 sps:$4 sm:$0xff]   ;;  %v4185_v9 = vld [vmem:[#allocation15 + $0x2ac] ss:$16 sps:$4 sm:$0xff]   ;;  %v4180_v10 = vld [vmem:[#allocation15 + $0x2a0] ss:$16 sps:$4 sm:$0xff]  }
 0x170   : > { %v4202_v27 = vld [vmem:[#allocation17 + $0x20] sm:$0xff]   ;;  %vm4964_vm0 = vmmov 0   ;;  %v4204_v29 = vld [vmem:[#allocation17 + $0x30] sm:$0xff]   ;;  %s5492_s3 = sld [smem:[#allocation52_spill]]  ;;  %s5493_s21 = sld [smem:[#allocation53_spill]]  ;;  %vm1298_vm1 = vcmask 1040384  }
 0x171   : > { %1017 = vmatpush1.bf16.msra.mxu0 %v4100_v11  ;;  %1099 = vmatpush1.bf16.msra.mxu1 %v4101_v12  ;;  %v4183_v11 = vld [vmem:[#allocation15 + $0x2a8] ss:$16 sps:$4 sm:$0xff]   ;;  %v4188_v12 = vld [vmem:[#allocation15 + $0x2c4] ss:$16 sps:$4 sm:$0xff]   ;;  %s3154_s9 = scalar_lea.vmem [#allocation35], %s4908_s8  ;;  %s400_s19 = sadd.s32 8, %s4908_s8 }
 0x172   : > { %1018 = vmatprep.subr.bf16.mxu0 %v4102_v13  ;;  %1100 = vmatprep.subr.bf16.mxu1 %v4104_v14  ;;  %v4191_v13 = vld [vmem:[#allocation15 + $0x2cc] ss:$16 sps:$4 sm:$0xff]   ;;  %v4186_v14 = vld [vmem:[#allocation15 + $0x2c0] ss:$16 sps:$4 sm:$0xff]   ;;  %s5494_s29 = sld [smem:[#allocation54_spill]]  ;;  %s5495_s16 = sld [smem:[#allocation55_spill]] }
 0x173   : > { %s5496_s5 = sld [smem:[#allocation57_spill]]  ;;  %s5497_s1 = sld [smem:[#allocation56_spill]] }
 0x174   : > { %s5498_s30 = sld [smem:[#allocation59_spill]]  ;;  %s3059_s10 = scalar_lea.vmem [#allocation29], %s4908_s8 }
 0x175   : > { %1019 = vmatpush1.bf16.msra.mxu0 %v4106_v15  ;;  %1101 = vmatpush1.bf16.msra.mxu1 %v4107_v16  ;;  %v4189_v15 = vld [vmem:[#allocation15 + $0x2c8] ss:$16 sps:$4 sm:$0xff]   ;;  %v4194_v16 = vld [vmem:[#allocation15 + $0x2e4] ss:$16 sps:$4 sm:$0xff]   ;;  %s393_s8 = sadd.s32 1, %s4908_s8  }
 0x176   : > { %1020 = vmatprep.subr.bf16.mxu0 %v4108_v17  ;;  %1102 = vmatprep.subr.bf16.mxu1 %v4110_v18  ;;  %v4197_v17 = vld [vmem:[#allocation15 + $0x2ec] ss:$16 sps:$4 sm:$0xff]   ;;  %v4192_v18 = vld [vmem:[#allocation15 + $0x2e0] ss:$16 sps:$4 sm:$0xff]   ;;  %v500_v48 = vld [vmem:[%s5492_s3] sm:$0xf] }
 0x177   : > { %p390_p0 = scmp.ge.s32.totalorder %s393_s8, 8  }
 0x178   :  { %s4966_s12 = smov (%p390_p0), [#allocation30]   ;;  %s4967_s14 = smov (%p390_p0), [#allocation33]  }
 0x179   : > { %1021 = vmatpush1.bf16.msra.mxu0 %v4112_v19  ;;  %1103 = vmatpush1.bf16.msra.mxu1 %v4113_v20  ;;  %v4195_v19 = vld [vmem:[#allocation15 + $0x2e8] ss:$16 sps:$4 sm:$0xff]   ;;  %v396_v20 = vld [vmem:[#allocation30] sm:$0x1]  ;;  %s3077_s11 = sshll.u32 (%p390_p0), %s4966_s12, 4  ;;  %s3097_s17 = sshll.u32 (%p390_p0), %s4967_s14, 4  ;;  %s3078_s11 = int_to_ptr.vmem [resolvable:$true] %s3077_s11  ;;  %s3098_s17 = int_to_ptr.vmem [resolvable:$true] %s3097_s17 }
 0x17a   : > { %1022 = vmatprep.subr.bf16.mxu0 %v4114_v21  ;;  %1104 = vmatprep.subr.bf16.mxu1 %v4116_v22  ;;  %v403_v21 = vpack.c.bf16 %v396_v20, %v396_v20  ;;  %v4198_v22 = vld [vmem:[#allocation17] sm:$0xff]   ;;  %s4746_s15 = scalar_lea.vmem (%p390_p0), %s3078_s11, 32  ;;  %p4751_p2 = scmp.lt.s32.totalorder (%p390_p0), %s3078_s11, %s3078_s11 }
 0x17b   :  { %p4747_p1 = scmp.ne.s32.totalorder (%p390_p0), %s3078_s11, %s4746_s15  ;;  %p4752_p3 = scmp.lt.s32.totalorder (%p390_p0), %s4746_s15, %s4746_s15 }
 0x17d   : > { %1023 = vmatpush1.bf16.msra.mxu0 %v4118_v23  ;;  %1105 = vmatpush1.bf16.msra.mxu1 %v4119_v24  ;;  %v4963_v23 = vmov 0.0   ;;  %v4199_v24 = vld [vmem:[#allocation17 + $0x8] sm:$0xff]   ;;  %p4753_p4 = por (%p390_p0), %p4752_p3, %p4751_p2 }
 0x17e   : > { %1024 = vmatprep.subr.bf16.mxu0 %v4120_v25  ;;  %1106 = vmatprep.subr.bf16.mxu1 %v4122_v26  ;;  %v4200_v25 = vld [vmem:[#allocation17 + $0x10] sm:$0xff]   ;;  %v4201_v26 = vld [vmem:[#allocation17 + $0x18] sm:$0xff]  }
 0x17f   :  { %p4754_p5 = pnand (%p390_p0), %p4753_p4, %p4747_p1 }
 0x181   : > { %1025 = vmatpush1.bf16.msra.mxu0 %v4124_v28  ;;  %1107 = vmatpush1.bf16.msra.mxu1 %v4125_v30  ;;  %v4203_v28 = vld [vmem:[#allocation17 + $0x28] sm:$0xff]   ;;  %v4205_v30 = vld [vmem:[#allocation17 + $0x38] sm:$0xff]  }
 0x182   : > { %1026 = vmatprep.subr.bf16.mxu0 %v4126_v31  ;;  %1108 = vmatprep.subr.bf16.mxu1 %v4128_v32  ;;  %v4206_v31 = vld [vmem:[#allocation21] ss:$8 sps:$4 sm:$0xff]   ;;  %v4208_v32 = vld [vmem:[#allocation21 + $0x4] ss:$8 sps:$4 sm:$0xff]  }
 0x185   : > { %1027 = vmatpush1.bf16.msra.mxu0 %v4130_v33  ;;  %1109 = vmatpush1.bf16.msra.mxu1 %v4131_v34  ;;  %v4211_v33 = vld [vmem:[#allocation21 + $0x14] ss:$8 sps:$4 sm:$0xff]   ;;  %v4209_v34 = vld [vmem:[#allocation21 + $0x10] ss:$8 sps:$4 sm:$0xff]  }
 0x186   : > { %1028 = vmatprep.subr.bf16.mxu0 %v4132_v35  ;;  %1110 = vmatprep.subr.bf16.mxu1 %v4134_v36  ;;  %v4214_v35 = vld [vmem:[#allocation21 + $0x24] ss:$8 sps:$4 sm:$0xff]   ;;  %v4212_v36 = vld [vmem:[#allocation21 + $0x20] ss:$8 sps:$4 sm:$0xff]  }
 0x189   : > { %1029 = vmatpush1.bf16.msra.mxu0 %v4136_v37  ;;  %1111 = vmatpush1.bf16.msra.mxu1 %v4137_v38  ;;  %v4217_v37 = vld [vmem:[#allocation21 + $0x34] ss:$8 sps:$4 sm:$0xff]   ;;  %v4215_v38 = vld [vmem:[#allocation21 + $0x30] ss:$8 sps:$4 sm:$0xff]  }
 0x18a   : > { %1030 = vmatprep.subr.bf16.mxu0 %v4138_v39  ;;  %1112 = vmatprep.subr.bf16.mxu1 %v4140_v40  ;;  %v4220_v39 = vld [vmem:[#allocation21 + $0x44] ss:$8 sps:$4 sm:$0xff]   ;;  %v4218_v40 = vld [vmem:[#allocation21 + $0x40] ss:$8 sps:$4 sm:$0xff]  }
 0x18d   : > { %1031 = vmatpush1.bf16.msra.mxu0 %v4142_v41  ;;  %1113 = vmatpush1.bf16.msra.mxu1 %v4143_v42  ;;  %v4223_v41 = vld [vmem:[#allocation21 + $0x54] ss:$8 sps:$4 sm:$0xff]   ;;  %v4221_v42 = vld [vmem:[#allocation21 + $0x50] ss:$8 sps:$4 sm:$0xff]  }
 0x18e   : > { %1032 = vmatprep.subr.bf16.mxu0 %v4144_v43  ;;  %1114 = vmatprep.subr.bf16.mxu1 %v4146_v45  ;;  %v4226_v43 = vld [vmem:[#allocation21 + $0x64] ss:$8 sps:$4 sm:$0xff]   ;;  %v4224_v45 = vld [vmem:[#allocation21 + $0x60] ss:$8 sps:$4 sm:$0xff]  }
 0x191   : > { %1033 = vmatpush1.bf16.msra.mxu0 %v4148_v46  ;;  %1115 = vmatpush1.bf16.msra.mxu1 %v4149_v47  ;;  %v5263_v46 = vshrl.u32 %v386_v4, 7 }
 0x192   : > { %1043 = vmatprep.subr.bf16.mxu0 %v4152_v49  ;;  %1125 = vmatprep.subr.bf16.mxu1 %v4155_v50 }
 0x193   : > { %v5266_v47 = vsub.s32 0, %v5263_v46  ;;  %v5270_v49 = vsub.s32 1, %v5263_v46 }
 0x194   : > { %1035 = vmatmul.mubr.bf16.vlgmr.msra.gmra.mrb[0].mxu0 %v401_v51  ;;  %1117 = vmatmul.mubr.bf16.vlgmr.msra.gmra.mrb[0].mxu1 %v401_v51 }
 0x195   : > { %1044 = vmatpush1.bf16.msra.mxu0 %v4150_v52  ;;  %1126 = vmatpush1.bf16.msra.mxu1 %v4153_v53  ;;  %v985_v50 = vrot.slane %v500_v48, %v5266_v47  ;;  %v989_v51 = vrot.slane %v500_v48, %v5270_v49 }
 0x196   : > { %1045 = vmatprep.subr.bf16.mxu0 %v4158_v54  ;;  %1127 = vmatprep.subr.bf16.mxu1 %v4161_v55  ;;  %v996_v54 = vsub.s32 3, %v5263_v46 }
 0x197   : > { %1075 = vmatprep.mubr.bf16.mxu0 %v4962_v44  ;;  %1157 = vmatprep.mubr.bf16.mxu1 %v4962_v44 }
 0x199   : > { %1046 = vmatpush1.bf16.msra.mxu0 %v4156_v56  ;;  %1128 = vmatpush1.bf16.msra.mxu1 %v4159_v57 }
 0x19a   : > { %1047 = vmatprep.subr.bf16.mxu0 %v4164_v58  ;;  %1129 = vmatprep.subr.bf16.mxu1 %v4167_v59 }
 0x19d   : > { %1048 = vmatpush1.bf16.msra.mxu0 %v4162_v60  ;;  %1130 = vmatpush1.bf16.msra.mxu1 %v4165_v61 }
 0x19e   : > { %1049 = vmatprep.subr.bf16.mxu0 %v4170_v62  ;;  %1131 = vmatprep.subr.bf16.mxu1 %v4173_v63 }
 0x1a1   : > { %1050 = vmatpush1.bf16.msra.mxu0 %v4168_v0  ;;  %1132 = vmatpush1.bf16.msra.mxu1 %v4171_v1  ;;  %v997_v1 = vrot.slane %v500_v48, %v996_v54 }
 0x1a2   : > { %1051 = vmatprep.subr.bf16.mxu0 %v4176_v2  ;;  %1133 = vmatprep.subr.bf16.mxu1 %v4179_v3  ;;  %v992_v2 = vsub.s32 2, %v5263_v46 }
 0x1a5   : > { %1052 = vmatpush1.bf16.msra.mxu0 %v4174_v6  ;;  %1134 = vmatpush1.bf16.msra.mxu1 %v4177_v7  ;;  %v993_v6 = vrot.slane %v500_v48, %v992_v2  ;;  %v1471_v48 = vld [vmem:[#allocation14 + $0x50] sm:$0xff] }
 0x1a6   : > { %1053 = vmatprep.subr.bf16.mxu0 %v4182_v8  ;;  %1135 = vmatprep.subr.bf16.mxu1 %v4185_v9 }
 0x1a9   : > { %1054 = vmatpush1.bf16.msra.mxu0 %v4180_v10  ;;  %1136 = vmatpush1.bf16.msra.mxu1 %v4183_v11 }
 0x1aa   : > { %1055 = vmatprep.subr.bf16.mxu0 %v4188_v12  ;;  %1137 = vmatprep.subr.bf16.mxu1 %v4191_v13 }
 0x1ad   : > { %1056 = vmatpush1.bf16.msra.mxu0 %v4186_v14  ;;  %1138 = vmatpush1.bf16.msra.mxu1 %v4189_v15  ;;  %v397_v15 = vld [vmem:[#allocation32] sm:$0x1] }
 0x1ae   : > { %1057 = vmatprep.subr.bf16.mxu0 %v4194_v16  ;;  %1139 = vmatprep.subr.bf16.mxu1 %v4197_v17 }
 0x1b1   : > { %1058 = vmatpush1.bf16.msra.mxu0 %v4192_v18  ;;  %1140 = vmatpush1.bf16.msra.mxu1 %v4195_v19 }
 0x1b2   : > { %3564 = vmatprep.subr.bf16.mxu0 %v4963_v23  ;;  %1420 = vmatprep.subr.bf16.mxu1 %v4208_v32  ;;  %v4965_v32 = vmov 0.0|0.0  }
 0x1b4   : > { %1076 = vmatmul.mubr.bf16.vlgmr.msra.gmra.mrb[0].mxu0 %v403_v21  ;;  %1158 = vmatmul.mubr.bf16.vlgmr.msra.gmra.mrb[0].mxu1 %v403_v21 }
 0x1b5   : > { %1452 = vmatprep.mubr.bf16.mxu1 %v4962_v44  ;;  %3565 = vmatpush3.bf16.msra.mxu0 %v4198_v22 }
 0x1b6   : > { %3566 = vmatprep.subr.bf16.mxu0 %v4963_v23  ;;  %3580 = vmatprep.mubr.msk.bf16.mxu0 %vm4964_vm0, %v4963_v23 }
 0x1b7   : > { %1421 = vmatpush1.bf16.msra.mxu1 %v4206_v31  ;;  %v1463_v31 = vld [vmem:[#allocation14 + $0x10] sm:$0xff] }
 0x1b8   : > { %1422 = vmatprep.subr.bf16.mxu1 %v4211_v33 }
 0x1b9   : > { %3567 = vmatpush3.bf16.msra.mxu0 %v4199_v24 }
 0x1ba   : > { %3568 = vmatprep.subr.bf16.mxu0 %v4963_v23 }
 0x1bb   : > { %1423 = vmatpush1.bf16.msra.mxu1 %v4209_v34  ;;  %v1464_v34 = vld [vmem:[#allocation14 + $0x18] sm:$0xff] }
 0x1bc   : > { %1424 = vmatprep.subr.bf16.mxu1 %v4214_v35  ;;  %v3818_v35 = vpack.c.bf16 %v1464_v34, %v1463_v31 }
 0x1bd   : > { %3569 = vmatpush3.bf16.msra.mxu0 %v4200_v25 }
 0x1be   : > { %3570 = vmatprep.subr.bf16.mxu0 %v4963_v23 }
 0x1bf   : > { %1425 = vmatpush1.bf16.msra.mxu1 %v4212_v36  ;;  %v1465_v36 = vld [vmem:[#allocation14 + $0x20] sm:$0xff] }
 0x1c0   : > { %1426 = vmatprep.subr.bf16.mxu1 %v4217_v37  ;;  %v1466_v37 = vld [vmem:[#allocation14 + $0x28] sm:$0xff] }
 0x1c1   : > { %3571 = vmatpush3.bf16.msra.mxu0 %v4201_v26 }
 0x1c2   : > { %3572 = vmatprep.subr.bf16.mxu0 %v4963_v23 }
 0x1c3   : > { %1427 = vmatpush1.bf16.msra.mxu1 %v4215_v38  ;;  %v3821_v38 = vpack.c.bf16 %v1466_v37, %v1465_v36 }
 0x1c4   : > { %1428 = vmatprep.subr.bf16.mxu1 %v4220_v39  ;;  %v1467_v39 = vld [vmem:[#allocation14 + $0x30] sm:$0xff] }
 0x1c5   : > { %3573 = vmatpush3.bf16.msra.mxu0 %v4202_v27  ;;  %v4229_v27 = vld [vmem:[#allocation21 + $0x74] ss:$8 sps:$4 sm:$0xff]  }
 0x1c6   : > { %3574 = vmatprep.subr.bf16.mxu0 %v4963_v23 }
 0x1c7   : > { %1429 = vmatpush1.bf16.msra.mxu1 %v4218_v40  ;;  %v1468_v40 = vld [vmem:[#allocation14 + $0x38] sm:$0xff] }
 0x1c8   : > { %1430 = vmatprep.subr.bf16.mxu1 %v4223_v41  ;;  %v3824_v41 = vpack.c.bf16 %v1468_v40, %v1467_v39 }
 0x1c9   : > { %3575 = vmatpush3.bf16.msra.mxu0 %v4203_v28  ;;  %v4227_v28 = vld [vmem:[#allocation21 + $0x70] ss:$8 sps:$4 sm:$0xff]  }
 0x1ca   : > { %3576 = vmatprep.subr.bf16.mxu0 %v4963_v23 }
 0x1cb   : > { %1431 = vmatpush1.bf16.msra.mxu1 %v4221_v42  ;;  %v1469_v42 = vld [vmem:[#allocation14 + $0x40] sm:$0xff] }
 0x1cc   : > { %1432 = vmatprep.subr.bf16.mxu1 %v4226_v43  ;;  %v1470_v43 = vld [vmem:[#allocation14 + $0x48] sm:$0xff] }
 0x1cd   : > { %3577 = vmatpush3.bf16.msra.mxu0 %v4204_v29  ;;  %v1461_v29 = vld [vmem:[#allocation14] sm:$0xff] }
 0x1ce   : > { %3578 = vmatprep.subr.bf16.mxu0 %v4963_v23 }
 0x1cf   : > { %1433 = vmatpush1.bf16.msra.mxu1 %v4224_v45  ;;  %v3827_v45 = vpack.c.bf16 %v1470_v43, %v1469_v42 }
 0x1d0   : > { %1434 = vmatprep.subr.bf16.mxu1 %v4229_v27 }
 0x1d1   : > { %3579 = vmatpush3.bf16.msra.mxu0 %v4205_v30  ;;  %v1462_v30 = vld [vmem:[#allocation14 + $0x8] sm:$0xff] }
 0x1d2   : > { %3814 = vmatprep.subr.bf16.mxu0 %v4965_v32  ;;  %v3815_v33 = vpack.c.bf16 %v1462_v30, %v1461_v29 }
 0x1d3   : > { %1435 = vmatpush1.bf16.msra.mxu1 %v4227_v28 }
 0x1d4   : > { %3838 = vmatprep.subr.bf16.mxu1 %v4965_v32 }
 0x287   : > { %v1077_v52 = vpop.f32.mrb[0].mxu0  ;;  %v1159_v53 = vpop.f32.mrb[0].mxu1 }
 0x288   : > { %v3958_v55 = vadd.f32 %v1077_v52, %v985_v50  ;;  %v1079_v56 = vpop.f32.mrb[1].mxu0  ;;  %v1161_v57 = vpop.f32.mrb[1].mxu1  ;;  %v3960_v8 = vadd.f32 %v1159_v53, %v993_v6  ;;  %v1472_v50 = vld [vmem:[#allocation14 + $0x58] sm:$0xff]  ;;  %v1473_v52 = vld [vmem:[#allocation14 + $0x60] sm:$0xff]  ;;  %v1474_v53 = vld [vmem:[#allocation14 + $0x68] sm:$0xff] }
 0x289   : > { %v3959_v58 = vadd.f32 %v1079_v56, %v989_v51  ;;  %v1081_v59 = vpop.f32.mrb[2].mxu0  ;;  %v1163_v60 = vpop.f32.mrb[2].mxu1  ;;  %v3961_v3 = vadd.f32 %v1161_v57, %v997_v1  ;;  %v3830_v51 = vpack.c.bf16 %v1472_v50, %v1471_v48  ;;  %v1475_v56 = vld [vmem:[#allocation14 + $0x70] sm:$0xff]  ;;  %v1476_v57 = vld [vmem:[#allocation14 + $0x78] sm:$0xff] }
 0x28a   : > { %v3292_v61 = vmul.f32 -1.442695, %v3958_v55  ;;  %v1082_v62 = vpop.f32.mrb[3].mxu0  ;;  %v1164_v63 = vpop.f32.mrb[3].mxu1  ;;  %v3833_v55 = vpack.c.bf16 %v1474_v53, %v1473_v52  ;;  %v5291_v59 = vld [vmem:[#allocation36] sm:$0x1] }
 0x28b   : > { %v3293_v0 = vmul.f32 -1.442695, %v3959_v58  ;;  %v3294_v7 = vmul.f32 -1.442695, %v3961_v3  ;;  %v3836_v58 = vpack.c.bf16 %v1476_v57, %v1475_v56  ;;  %v1207_v60 = vld [vmem:[%s5493_s21] sm:$0x1] }
 0x28c   : > { %4406 = vpow2.f32 %v3292_v61  ;;  %v1304_v62 = vld [vmem:[#allocation20] sm:$0x1]  ;;  %v1296_v3 = vld [vmem:[#allocation18] sm:$0x1] }
 0x28d   : > { %4408 = vpow2.f32 %v3293_v0 }
 0x28e   : > { %4410 = vpow2.f32 %v3294_v7 }
 0x28f   : > { %4412 = vtanh.f32 %v3960_v8 }
 0x296   : > { %v4407_v9 = vpop.eup %4406 }
 0x297   : > { %v4409_v10 = vpop.eup %4408  ;;  %v1169_v11 = vadd.f32 1.0, %v4407_v9 }
 0x298   : > { %v1175_v12 = vadd.f32 1.0, %v4409_v10  ;;  %v4411_v13 = vpop.eup %4410 }
 0x299   : > { %4414 = vrcp.f32 %v1169_v11  ;;  %v4413_v14 = vpop.eup %4412  ;;  %v1182_v19 = vadd.f32 1.0, %v4411_v13 }
 0x29a   : > { %4416 = vrcp.f32 %v1175_v12 }
 0x29b   : > { %4418 = vrcp.f32 %v1182_v19 }
 0x2a3   : > { %v4415_v16 = vpop.eup %4414 }
 0x2a4   : > { %v4417_v17 = vpop.eup %4416  ;;  %v1186_v18 = vmul.f32 %v4415_v16, %v4413_v14  ;;  %v1309_v14 = vld [vmem:[#allocation3] sm:$0x1] }
 0x2a5   : > { %v1185_v20 = vmul.f32 %v4417_v17, %v397_v15  ;;  %v4419_v22 = vpop.eup %4418  ;;  %v1302_v17 = vld [vmem:[#allocation2] sm:$0x1] }
 0x2a7   : > { %v1187_v21 = vadd.f32 %v1186_v18, %v1185_v20  ;;  %v4232_v20 = vld [vmem:[#allocation24 + $0x4] ss:$16 sps:$4 sm:$0xff]  }
 0x2a9   : > { %1726 = vst [vmem:[#allocation32] sm:$0x1] %v1187_v21  ;;  %4420 = vtanh.f32 %v1187_v21  ;;  %v1328_v21 = vld [vmem:[#allocation23] sm:$0x3] }
 0x2b3   : > { %v4421_v24 = vpop.eup %4420 }
 0x2b4   : > { %v1189_v25 = vmul.f32 %v4421_v24, %v4419_v22  ;;  %v1413_v22 = vrot.slane %v1328_v21, %v5266_v47  ;;  %v1417_v24 = vrot.slane %v1328_v21, %v5270_v49  ;;  %v4250_v21 = vld [vmem:[#allocation24 + $0xc4] ss:$16 sps:$4 sm:$0xff]  }
 0x2b6   : > { %v1190_v26 = vpack.c.bf16 %v1189_v25, %v1189_v25 }
 0x2b8   : > { %3581 = vmatmul.mubr.bf16.vlgmr.msra.gmra.mrb[4].mxu0 %v1190_v26 }
 0x2b9   : > { %3616 = vmatprep.mubr.msk.f32.mxu0 %vm4964_vm0, %v4963_v23  ;;  %3816 = vmatpush3.bf16.msra.mxu0 %v3815_v33 }
 0x2ba   : > { %3817 = vmatprep.subr.bf16.mxu0 %v4965_v32 }
 0x2bd   : > { %3819 = vmatpush3.bf16.msra.mxu0 %v3818_v35 }
 0x2be   : > { %3820 = vmatprep.subr.bf16.mxu0 %v4965_v32 }
 0x2c1   : > { %3822 = vmatpush3.bf16.msra.mxu0 %v3821_v38 }
 0x2c2   : > { %3823 = vmatprep.subr.bf16.mxu0 %v4965_v32 }
 0x2c5   : > { %3825 = vmatpush3.bf16.msra.mxu0 %v3824_v41 }
 0x2c6   : > { %3826 = vmatprep.subr.bf16.mxu0 %v4965_v32 }
 0x2c9   : > { %3828 = vmatpush3.bf16.msra.mxu0 %v3827_v45 }
 0x2ca   : > { %3829 = vmatprep.subr.bf16.mxu0 %v4965_v32 }
 0x2cd   : > { %3831 = vmatpush3.bf16.msra.mxu0 %v3830_v51 }
 0x2ce   : > { %3832 = vmatprep.subr.bf16.mxu0 %v4965_v32 }
 0x2d1   : > { %3834 = vmatpush3.bf16.msra.mxu0 %v3833_v55 }
 0x2d2   : > { %3835 = vmatprep.subr.bf16.mxu0 %v4965_v32 }
 0x2d5   : > { %3837 = vmatpush3.bf16.msra.mxu0 %v3836_v58 }
 0x2d6   : > { %3862 = vmatprep.subr.bf16.mxu0 %v4965_v32 }
 0x2d8   : > { %3617 = vmatmul.mubr.f32.vlgmr.msra.gmra.mrb[8].mxu0 %v5291_v59 }
 0x2d9   : > { %3686 = vmatprep.mubr.msk.f32.mxu0 %vm4964_vm0, %v4963_v23 }
 0x38b   : > { %v1290_v61 = vpop.f32.mrb[4].mxu0 }
 0x38c   : > { %v1291_v63 = vadd.f32 %v1290_v61, %v1207_v60  ;;  %v3582_v0 = vpop.f32.mrb[5].mxu0 }
 0x38d   : > { %v1293_v1 = vpop.f32.mrb[6].mxu0 }
 0x38e   : > { %1725 = vst [vmem:[#allocation30] sm:$0x1] %v1291_v63  ;;  %v3583_v6 = vpop.f32.mrb[7].mxu0  ;;  %v1311_v7 = vpack.c.bf16 %v1291_v63, %v1291_v63  ;;  %v1305_v8 = vmul.f32 %v1304_v62, %v1291_v63  ;;  %v1297_v10 = vmul.f32 %v1296_v3, %v1291_v63  ;;  %v5327_v1 = vstv %s400_s19  ;;  %v1731_v3 = vld [vmem:[#allocation33 + $0x1] sm:$0x1] }
 0x38f   : > { %vm1557_vm2 = vcmp.eq.s32.totalorder %v5237_v5, %v5327_v1 }
 0x390   : > { %1453 = vmatmul.mubr.bf16.vlgmr.msra.gmra.mrb[4].mxu1 %v1311_v7  ;;  %v1306_v9 = vsel %vm1298_vm1, %v1305_v8, 0.0  ;;  %v1299_v11 = vsel %vm1298_vm1, %v1297_v10, 0.0  ;;  %v4230_v8 = vld [vmem:[#allocation24] ss:$16 sps:$4 sm:$0xff]  }
 0x391   : > { %1307 = vadd.xlane.f32.xlu0 %v1306_v9  ;;  %3840 = vmatpush3.bf16.msra.mxu1 %v3815_v33  ;;  %v5332_v9 = vpack.c.bf16 %v1731_v3, %v1731_v3  ;;  %v4304_v3 = vld [vmem:[#allocation24 + $0xc] ss:$16 sps:$4 sm:$0xff]  }
 0x392   : > { %3841 = vmatprep.subr.bf16.mxu1 %v4965_v32  ;;  %3651 = vmatprep.mubr.msk.f32.mxu1 %vm4964_vm0, %v4963_v23 }
 0x395   : > { %1300 = vadd.xlane.f32.xlu0 %v1299_v11  ;;  %3843 = vmatpush3.bf16.msra.mxu1 %v3818_v35  ;;  %v4235_v11 = vld [vmem:[#allocation24 + $0x24] ss:$16 sps:$4 sm:$0xff]  }
 0x396   : > { %3844 = vmatprep.subr.bf16.mxu1 %v4965_v32 }
 0x399   : > { %3846 = vmatpush3.bf16.msra.mxu1 %v3821_v38 }
 0x39a   : > { %3847 = vmatprep.subr.bf16.mxu1 %v4965_v32 }
 0x39d   : > { %3849 = vmatpush3.bf16.msra.mxu1 %v3824_v41 }
 0x39e   : > { %3850 = vmatprep.subr.bf16.mxu1 %v4965_v32 }
 0x3a1   : > { %3852 = vmatpush3.bf16.msra.mxu1 %v3827_v45 }
 0x3a2   : > { %3853 = vmatprep.subr.bf16.mxu1 %v4965_v32 }
 0x3a5   : > { %3855 = vmatpush3.bf16.msra.mxu1 %v3830_v51 }
 0x3a6   : > { %3856 = vmatprep.subr.bf16.mxu1 %v4965_v32 }
 0x3a9   : > { %3858 = vmatpush3.bf16.msra.mxu1 %v3833_v55 }
 0x3aa   : > { %3859 = vmatprep.subr.bf16.mxu1 %v4965_v32 }
 0x3ab   : > { %v5309_v12 = vpop.f32.mrb[8].mxu0 }
 0x3ac   : > { %v3618_v13 = vpop.f32.mrb[9].mxu0 }
 0x3ad   : > { %3861 = vmatpush3.bf16.msra.mxu1 %v3836_v58 }
 0x3ae   : > { %2334 = vmatprep.subr.bf16.mxu1 %v4232_v20  ;;  %v4245_v20 = vld [vmem:[#allocation24 + $0xa0] ss:$16 sps:$4 sm:$0xff]  }
 0x41e   : > { %v1308_v15 = vpop.xlane.xlu0 %1307 }
 0x41f   : > { %v1310_v16 = vadd.f32 %v1309_v14, %v1308_v15  ;;  %v4236_v14 = vld [vmem:[#allocation24 + $0x40] ss:$16 sps:$4 sm:$0xff]   ;;  %v4241_v15 = vld [vmem:[#allocation24 + $0x64] ss:$16 sps:$4 sm:$0xff]  }
 0x421   : > { %1549 = vperm.xlu1 %4052, %v1310_v16   ;;  %v4239_v16 = vld [vmem:[#allocation24 + $0x60] ss:$16 sps:$4 sm:$0xff]  }
 0x422   : > { %v1301_v18 = vpop.xlane.xlu0 %1300 }
 0x423   : > { %v1303_v19 = vadd.f32 %v1302_v17, %v1301_v18  ;;  %v4244_v17 = vld [vmem:[#allocation24 + $0x84] ss:$16 sps:$4 sm:$0xff]   ;;  %v4242_v18 = vld [vmem:[#allocation24 + $0x80] ss:$16 sps:$4 sm:$0xff]  }
 0x425   : > { %1560 = vperm.xlu1 %4052, %v1303_v19   ;;  %v4247_v19 = vld [vmem:[#allocation24 + $0xa4] ss:$16 sps:$4 sm:$0xff]  }
 0x463   : > { %v1454_v25 = vpop.f32.mrb[4].mxu1 }
 0x464   : > { %v1455_v26 = vadd.f32 %v1454_v25, %v1413_v22  ;;  %v1456_v27 = vpop.f32.mrb[5].mxu1  ;;  %v4248_v22 = vld [vmem:[#allocation24 + $0xc0] ss:$16 sps:$4 sm:$0xff]  }
 0x465   : > { %v5313_v28 = vadd.f32 %v1456_v27, %v1417_v24  ;;  %v1458_v29 = vpop.f32.mrb[6].mxu1  ;;  %v4253_v24 = vld [vmem:[#allocation24 + $0xe4] ss:$16 sps:$4 sm:$0xff]   ;;  %v4251_v25 = vld [vmem:[#allocation24 + $0xe0] ss:$16 sps:$4 sm:$0xff]  }
 0x466   : > { %3319 = vst [vmem:[%s3154_s9 + $0x8] sm:$0x1] %v1455_v26  ;;  %v1459_v30 = vpop.f32.mrb[7].mxu1  ;;  %v4256_v26 = vld [vmem:[#allocation24 + $0x104] ss:$16 sps:$4 sm:$0xff]  }
 0x467   : > { %v4254_v27 = vld [vmem:[#allocation24 + $0x100] ss:$16 sps:$4 sm:$0xff]   ;;  %v4259_v29 = vld [vmem:[#allocation24 + $0x124] ss:$16 sps:$4 sm:$0xff]  }
 0x468   : > { %v4257_v30 = vld [vmem:[#allocation24 + $0x120] ss:$16 sps:$4 sm:$0xff]  }
 0x46d   : > { %v1639_v31 = vld [vmem:[#allocation35] sm:$0xff]  ;;  %v1640_v33 = vld [vmem:[#allocation35 + $0x8] sm:$0xff]  ;;  %v1641_v35 = vld [vmem:[#allocation35 + $0x10] sm:$0xff] }
 0x46e   : > { %v3863_v34 = vpack.c.bf16 %v1640_v33, %v1639_v31  ;;  %v1642_v36 = vld [vmem:[#allocation35 + $0x18] sm:$0xff]  ;;  %v1643_v38 = vld [vmem:[#allocation35 + $0x20] sm:$0xff]  ;;  %v1644_v39 = vld [vmem:[#allocation35 + $0x28] sm:$0xff] }
 0x46f   : > { %v3866_v37 = vpack.c.bf16 %v1642_v36, %v1641_v35  ;;  %v3869_v40 = vpack.c.bf16 %v1644_v39, %v1643_v38  ;;  %v1645_v41 = vld [vmem:[#allocation35 + $0x30] sm:$0xff]  ;;  %v1646_v42 = vld [vmem:[#allocation35 + $0x38] sm:$0xff]  ;;  %v1647_v45 = vld [vmem:[#allocation35 + $0x40] sm:$0xff] }
 0x470   : > { %3864 = vmatpush3.bf16.msra.mxu0 %v3863_v34  ;;  %v3872_v43 = vpack.c.bf16 %v1646_v42, %v1645_v41  ;;  %v1648_v48 = vld [vmem:[#allocation35 + $0x48] sm:$0xff]  ;;  %v1649_v51 = vld [vmem:[#allocation35 + $0x50] sm:$0xff]  ;;  %v1650_v52 = vld [vmem:[#allocation35 + $0x58] sm:$0xff] }
 0x471   : > { %3865 = vmatprep.subr.bf16.mxu0 %v4965_v32  ;;  %v3875_v50 = vpack.c.bf16 %v1648_v48, %v1647_v45  ;;  %v3878_v53 = vpack.c.bf16 %v1650_v52, %v1649_v51  ;;  %v1651_v55 = vld [vmem:[#allocation35 + $0x60] sm:$0xff]  ;;  %v1652_v56 = vld [vmem:[#allocation35 + $0x68] sm:$0xff]  ;;  %v1653_v58 = vld [vmem:[#allocation35 + $0x70] sm:$0xff] }
 0x472   : > { %v3881_v57 = vpack.c.bf16 %v1652_v56, %v1651_v55  ;;  %v1654_v60 = vld [vmem:[#allocation35 + $0x78] sm:$0xff]  ;;  %v4262_v31 = vld [vmem:[#allocation24 + $0x144] ss:$16 sps:$4 sm:$0xff]  }
 0x473   : > { %v3884_v61 = vpack.c.bf16 %v1654_v60, %v1653_v58  ;;  %v4260_v33 = vld [vmem:[#allocation24 + $0x140] ss:$16 sps:$4 sm:$0xff]   ;;  %v4265_v34 = vld [vmem:[#allocation24 + $0x164] ss:$16 sps:$4 sm:$0xff]  }
 0x474   : > { %3867 = vmatpush3.bf16.msra.mxu0 %v3866_v37  ;;  %v4263_v35 = vld [vmem:[#allocation24 + $0x160] ss:$16 sps:$4 sm:$0xff]   ;;  %v4268_v36 = vld [vmem:[#allocation24 + $0x184] ss:$16 sps:$4 sm:$0xff]  }
 0x475   : > { %3868 = vmatprep.subr.bf16.mxu0 %v4965_v32  ;;  %v4266_v37 = vld [vmem:[#allocation24 + $0x180] ss:$16 sps:$4 sm:$0xff]   ;;  %v4271_v38 = vld [vmem:[#allocation24 + $0x1a4] ss:$16 sps:$4 sm:$0xff]  }
 0x476   : > { %v4269_v39 = vld [vmem:[#allocation24 + $0x1a0] ss:$16 sps:$4 sm:$0xff]   ;;  %v4277_v42 = vld [vmem:[#allocation24 + $0x1e4] ss:$16 sps:$4 sm:$0xff]  }
 0x477   : > { %v4272_v41 = vld [vmem:[#allocation24 + $0x1c0] ss:$16 sps:$4 sm:$0xff]   ;;  %v4280_v45 = vld [vmem:[#allocation24 + $0x204] ss:$16 sps:$4 sm:$0xff]  }
 0x478   : > { %3870 = vmatpush3.bf16.msra.mxu0 %v3869_v40  ;;  %v4274_v40 = vld [vmem:[#allocation24 + $0x1c4] ss:$16 sps:$4 sm:$0xff]   ;;  %v4278_v48 = vld [vmem:[#allocation24 + $0x200] ss:$16 sps:$4 sm:$0xff]  }
 0x479   : > { %3871 = vmatprep.subr.bf16.mxu0 %v4965_v32  ;;  %v4283_v51 = vld [vmem:[#allocation24 + $0x224] ss:$16 sps:$4 sm:$0xff]   ;;  %v4281_v52 = vld [vmem:[#allocation24 + $0x220] ss:$16 sps:$4 sm:$0xff]  }
 0x47a   : > { %v4284_v55 = vld [vmem:[#allocation24 + $0x240] ss:$16 sps:$4 sm:$0xff]   ;;  %v4289_v56 = vld [vmem:[#allocation24 + $0x264] ss:$16 sps:$4 sm:$0xff]  }
 0x47b   : > { %v4292_v58 = vld [vmem:[#allocation24 + $0x284] ss:$16 sps:$4 sm:$0xff]  }
 0x47c   : > { %3873 = vmatpush3.bf16.msra.mxu0 %v3872_v43  ;;  %v4275_v43 = vld [vmem:[#allocation24 + $0x1e0] ss:$16 sps:$4 sm:$0xff]   ;;  %v4295_v60 = vld [vmem:[#allocation24 + $0x2a4] ss:$16 sps:$4 sm:$0xff]  }
 0x47d   : > { %3874 = vmatprep.subr.bf16.mxu0 %v4965_v32 }
 0x480   : > { %3876 = vmatpush3.bf16.msra.mxu0 %v3875_v50  ;;  %v5344_v50 = vpack.c.bf16 %v5313_v28, %v5313_v28  ;;  %v4290_v28 = vld [vmem:[#allocation24 + $0x280] ss:$16 sps:$4 sm:$0xff]  }
 0x481   : > { %3877 = vmatprep.subr.bf16.mxu0 %v4965_v32 }
 0x484   : > { %3879 = vmatpush3.bf16.msra.mxu0 %v3878_v53  ;;  %v4286_v53 = vld [vmem:[#allocation24 + $0x244] ss:$16 sps:$4 sm:$0xff]  }
 0x485   : > { %3880 = vmatprep.subr.bf16.mxu0 %v4965_v32 }
 0x488   : > { %3882 = vmatpush3.bf16.msra.mxu0 %v3881_v57  ;;  %v4287_v57 = vld [vmem:[#allocation24 + $0x260] ss:$16 sps:$4 sm:$0xff]  }
 0x489   : > { %3883 = vmatprep.subr.bf16.mxu0 %v4965_v32 }
 0x48c   : > { %3885 = vmatpush3.bf16.msra.mxu0 %v3884_v61  ;;  %v4293_v61 = vld [vmem:[#allocation24 + $0x2a0] ss:$16 sps:$4 sm:$0xff]  }
 0x48d   : > { %2416 = vmatprep.subr.bf16.mxu0 %v4304_v3  ;;  %v4368_v3 = vld [vmem:[#allocation24 + $0x2c8] ss:$16 sps:$4 sm:$0xff]  }
 0x4a0   : > { %v1550_v62 = vpop.permute.xlu1 %1549 }
 0x4a1   : > { %v1552_v63 = vsub.f32 %v1550_v62, %v5309_v12  ;;  %v4238_v12 = vld [vmem:[#allocation24 + $0x44] ss:$16 sps:$4 sm:$0xff]  }
 0x4a2   : > { %v4298_v62 = vld [vmem:[#allocation24 + $0x2c4] ss:$16 sps:$4 sm:$0xff]  }
 0x4a3   : > { %v1553_v0 = vmax.f32 %v1552_v63, 0.0  ;;  %v4296_v63 = vld [vmem:[#allocation24 + $0x2c0] ss:$16 sps:$4 sm:$0xff]  }
 0x4a4   : > { %v1561_v10 = vpop.permute.xlu1 %1560 }
 0x4a5   : > { %v1554_v6 = vsub.f32 %v5291_v59, %v1553_v0  ;;  %v4233_v59 = vld [vmem:[#allocation24 + $0x20] ss:$16 sps:$4 sm:$0xff]   ;;  %v4301_v0 = vld [vmem:[#allocation24 + $0x2e4] ss:$16 sps:$4 sm:$0xff]  }
 0x4a7   : > { %v1555_v7 = vmax.f32 %v1554_v6, 0.0  ;;  %v4299_v6 = vld [vmem:[#allocation24 + $0x2e0] ss:$16 sps:$4 sm:$0xff]  }
 0x4a9   : > { %v5337_v13 = vsel %vm1557_vm2, %v1561_v10, %v1555_v7  ;;  %v1729_v7 = vld [vmem:[#allocation30 + $0x1] sm:$0x1] }
 0x4aa   : > { %1728 = vst [vmem:[#allocation36] sm:$0x1] %v5337_v13  ;;  %3652 = vmatmul.mubr.f32.vlgmr.msra.gmra.mrb[8].mxu1 %v5337_v13 }
 0x4ab   : > { %2335 = vmatpush1.bf16.msra.mxu1 %v4230_v8  ;;  %2366 = vmatprep.mubr.bf16.mxu1 %v5332_v9  ;;  %v5348_v8 = vpack.c.bf16 %v1729_v7, %v1729_v7 }
 0x4ac   : > { %2336 = vmatprep.subr.bf16.mxu1 %v4235_v11 }
 0x4af   : > { %2337 = vmatpush1.bf16.msra.mxu1 %v4233_v59 }
 0x4b0   : > { %2338 = vmatprep.subr.bf16.mxu1 %v4238_v12 }
 0x4b3   : > { %2339 = vmatpush1.bf16.msra.mxu1 %v4236_v14  ;;  %v4302_v14 = vld [vmem:[#allocation24 + $0x8] ss:$16 sps:$4 sm:$0xff]  }
 0x4b4   : > { %2340 = vmatprep.subr.bf16.mxu1 %v4241_v15 }
 0x4b7   : > { %2341 = vmatpush1.bf16.msra.mxu1 %v4239_v16  ;;  %v4307_v16 = vld [vmem:[#allocation24 + $0x2c] ss:$16 sps:$4 sm:$0xff]  }
 0x4b8   : > { %2342 = vmatprep.subr.bf16.mxu1 %v4244_v17  ;;  %v4305_v17 = vld [vmem:[#allocation24 + $0x28] ss:$16 sps:$4 sm:$0xff]  }
 0x4bb   : > { %2343 = vmatpush1.bf16.msra.mxu1 %v4242_v18  ;;  %v4310_v18 = vld [vmem:[#allocation24 + $0x4c] ss:$16 sps:$4 sm:$0xff]  }
 0x4bc   : > { %2344 = vmatprep.subr.bf16.mxu1 %v4247_v19  ;;  %v4308_v19 = vld [vmem:[#allocation24 + $0x48] ss:$16 sps:$4 sm:$0xff]  }
 0x4bf   : > { %2345 = vmatpush1.bf16.msra.mxu1 %v4245_v20  ;;  %v4313_v20 = vld [vmem:[#allocation24 + $0x6c] ss:$16 sps:$4 sm:$0xff]  }
 0x4c0   : > { %2346 = vmatprep.subr.bf16.mxu1 %v4250_v21  ;;  %v4311_v21 = vld [vmem:[#allocation24 + $0x68] ss:$16 sps:$4 sm:$0xff]  }
 0x4c3   : > { %2347 = vmatpush1.bf16.msra.mxu1 %v4248_v22  ;;  %v4316_v22 = vld [vmem:[#allocation24 + $0x8c] ss:$16 sps:$4 sm:$0xff]  }
 0x4c4   : > { %2348 = vmatprep.subr.bf16.mxu1 %v4253_v24  ;;  %v4314_v24 = vld [vmem:[#allocation24 + $0x88] ss:$16 sps:$4 sm:$0xff]  }
 0x4c7   : > { %2349 = vmatpush1.bf16.msra.mxu1 %v4251_v25  ;;  %v4317_v25 = vld [vmem:[#allocation24 + $0xa8] ss:$16 sps:$4 sm:$0xff]  }
 0x4c8   : > { %2350 = vmatprep.subr.bf16.mxu1 %v4256_v26  ;;  %v4322_v26 = vld [vmem:[#allocation24 + $0xcc] ss:$16 sps:$4 sm:$0xff]  }
 0x4cb   : > { %2351 = vmatpush1.bf16.msra.mxu1 %v4254_v27  ;;  %v4325_v27 = vld [vmem:[#allocation24 + $0xec] ss:$16 sps:$4 sm:$0xff]  }
 0x4cc   : > { %2352 = vmatprep.subr.bf16.mxu1 %v4259_v29  ;;  %v4323_v29 = vld [vmem:[#allocation24 + $0xe8] ss:$16 sps:$4 sm:$0xff]  }
 0x4cf   : > { %2353 = vmatpush1.bf16.msra.mxu1 %v4257_v30  ;;  %v4328_v30 = vld [vmem:[#allocation24 + $0x10c] ss:$16 sps:$4 sm:$0xff]  }
 0x4d0   : > { %2354 = vmatprep.subr.bf16.mxu1 %v4262_v31  ;;  %v4326_v31 = vld [vmem:[#allocation24 + $0x108] ss:$16 sps:$4 sm:$0xff]  }
 0x4d3   : > { %2355 = vmatpush1.bf16.msra.mxu1 %v4260_v33  ;;  %v4331_v33 = vld [vmem:[#allocation24 + $0x12c] ss:$16 sps:$4 sm:$0xff]  }
 0x4d4   : > { %2356 = vmatprep.subr.bf16.mxu1 %v4265_v34  ;;  %v4329_v34 = vld [vmem:[#allocation24 + $0x128] ss:$16 sps:$4 sm:$0xff]  }
 0x4d7   : > { %2357 = vmatpush1.bf16.msra.mxu1 %v4263_v35  ;;  %v4334_v35 = vld [vmem:[#allocation24 + $0x14c] ss:$16 sps:$4 sm:$0xff]  }
 0x4d8   : > { %2358 = vmatprep.subr.bf16.mxu1 %v4268_v36  ;;  %v4332_v36 = vld [vmem:[#allocation24 + $0x148] ss:$16 sps:$4 sm:$0xff]  }
 0x4db   : > { %2359 = vmatpush1.bf16.msra.mxu1 %v4266_v37  ;;  %v4337_v37 = vld [vmem:[#allocation24 + $0x16c] ss:$16 sps:$4 sm:$0xff]  }
 0x4dc   : > { %2360 = vmatprep.subr.bf16.mxu1 %v4271_v38  ;;  %v4335_v38 = vld [vmem:[#allocation24 + $0x168] ss:$16 sps:$4 sm:$0xff]  }
 0x4df   : > { %2361 = vmatpush1.bf16.msra.mxu1 %v4269_v39  ;;  %v4340_v39 = vld [vmem:[#allocation24 + $0x18c] ss:$16 sps:$4 sm:$0xff]  }
 0x4e0   : > { %2362 = vmatprep.subr.bf16.mxu1 %v4274_v40  ;;  %v4338_v40 = vld [vmem:[#allocation24 + $0x188] ss:$16 sps:$4 sm:$0xff]  }
 0x4e3   : > { %2363 = vmatpush1.bf16.msra.mxu1 %v4272_v41  ;;  %v4343_v41 = vld [vmem:[#allocation24 + $0x1ac] ss:$16 sps:$4 sm:$0xff]  }
 0x4e4   : > { %2364 = vmatprep.subr.bf16.mxu1 %v4277_v42  ;;  %v4341_v42 = vld [vmem:[#allocation24 + $0x1a8] ss:$16 sps:$4 sm:$0xff]  }
 0x4e7   : > { %2365 = vmatpush1.bf16.msra.mxu1 %v4275_v43  ;;  %v4346_v43 = vld [vmem:[#allocation24 + $0x1cc] ss:$16 sps:$4 sm:$0xff]  }
 0x4e8   : > { %2375 = vmatprep.subr.bf16.mxu1 %v4280_v45  ;;  %v4344_v45 = vld [vmem:[#allocation24 + $0x1c8] ss:$16 sps:$4 sm:$0xff]  }
 0x4ea   : > { %2367 = vmatmul.mubr.bf16.vlgmr.msra.gmra.mrb[12].mxu1 %v5344_v50 }
 0x4eb   : > { %2376 = vmatpush1.bf16.msra.mxu1 %v4278_v48  ;;  %2407 = vmatprep.mubr.bf16.mxu1 %v4962_v44  ;;  %v4349_v48 = vld [vmem:[#allocation24 + $0x1ec] ss:$16 sps:$4 sm:$0xff]  }
 0x4ec   : > { %2377 = vmatprep.subr.bf16.mxu1 %v4283_v51  ;;  %v4347_v51 = vld [vmem:[#allocation24 + $0x1e8] ss:$16 sps:$4 sm:$0xff]  }
 0x4ef   : > { %2378 = vmatpush1.bf16.msra.mxu1 %v4281_v52  ;;  %v4352_v52 = vld [vmem:[#allocation24 + $0x20c] ss:$16 sps:$4 sm:$0xff]  }
 0x4f0   : > { %2379 = vmatprep.subr.bf16.mxu1 %v4286_v53  ;;  %v4350_v53 = vld [vmem:[#allocation24 + $0x208] ss:$16 sps:$4 sm:$0xff]  }
 0x4f3   : > { %2380 = vmatpush1.bf16.msra.mxu1 %v4284_v55  ;;  %v4355_v55 = vld [vmem:[#allocation24 + $0x22c] ss:$16 sps:$4 sm:$0xff]  }
 0x4f4   : > { %2381 = vmatprep.subr.bf16.mxu1 %v4289_v56  ;;  %v4353_v56 = vld [vmem:[#allocation24 + $0x228] ss:$16 sps:$4 sm:$0xff]  }
 0x4f7   : > { %2382 = vmatpush1.bf16.msra.mxu1 %v4287_v57  ;;  %v4358_v57 = vld [vmem:[#allocation24 + $0x24c] ss:$16 sps:$4 sm:$0xff]  }
 0x4f8   : > { %2383 = vmatprep.subr.bf16.mxu1 %v4292_v58  ;;  %v4356_v58 = vld [vmem:[#allocation24 + $0x248] ss:$16 sps:$4 sm:$0xff]  }
 0x4fb   : > { %2384 = vmatpush1.bf16.msra.mxu1 %v4290_v28  ;;  %v4361_v28 = vld [vmem:[#allocation24 + $0x26c] ss:$16 sps:$4 sm:$0xff]  }
 0x4fc   : > { %2385 = vmatprep.subr.bf16.mxu1 %v4295_v60  ;;  %v4359_v60 = vld [vmem:[#allocation24 + $0x268] ss:$16 sps:$4 sm:$0xff]  }
 0x4ff   : > { %2386 = vmatpush1.bf16.msra.mxu1 %v4293_v61  ;;  %v4364_v61 = vld [vmem:[#allocation24 + $0x28c] ss:$16 sps:$4 sm:$0xff]  }
 0x500   : > { %2387 = vmatprep.subr.bf16.mxu1 %v4298_v62  ;;  %v4362_v62 = vld [vmem:[#allocation24 + $0x288] ss:$16 sps:$4 sm:$0xff]  }
 0x503   : > { %2388 = vmatpush1.bf16.msra.mxu1 %v4296_v63  ;;  %v4367_v63 = vld [vmem:[#allocation24 + $0x2ac] ss:$16 sps:$4 sm:$0xff]  }
 0x504   : > { %2389 = vmatprep.subr.bf16.mxu1 %v4301_v0  ;;  %v4370_v0 = vld [vmem:[#allocation24 + $0x2cc] ss:$16 sps:$4 sm:$0xff]  }
 0x507   : > { %2390 = vmatpush1.bf16.msra.mxu1 %v4299_v6  ;;  %v4373_v6 = vld [vmem:[#allocation24 + $0x2ec] ss:$16 sps:$4 sm:$0xff]  }
 0x508   : > { %3689 = vmatprep.subr.bf16.mxu1 %v4963_v23 }
 0x50a   : > { %2408 = vmatmul.mubr.bf16.vlgmr.msra.gmra.mrb[12].mxu1 %v5348_v8 }
 0x50b   : > { %3705 = vmatprep.mubr.msk.bf16.mxu1 %vm4964_vm0, %v4963_v23 }
 0x57d   : > { %v1630_v10 = vpop.f32.mrb[8].mxu1 }
 0x57e   : > { %v1634_v11 = vsub.f32 1.0, %v1630_v10  ;;  %v3653_v59 = vpop.f32.mrb[9].mxu1  ;;  %v4371_v10 = vld [vmem:[#allocation24 + $0x2e8] ss:$16 sps:$4 sm:$0xff]  }
 0x580   : > { %v1635_v12 = vmax.f32 %v1634_v11, 0.0 }
 0x582   : > { %v1636_v15 = vmin.f32 %v5337_v13, %v1635_v12  ;;  %v4319_v13 = vld [vmem:[#allocation24 + $0xac] ss:$16 sps:$4 sm:$0xff]  }
 0x584   : > { %3687 = vmatmul.mubr.f32.vlgmr.msra.gmra.mrb[10].mxu0 %v1636_v15  ;;  %v4375_v15 = vld [vmem:[%s5494_s29 + $0x8] sm:$0xff]  }
 0x585   : > { %2417 = vmatpush1.bf16.msra.mxu0 %v4302_v14  ;;  %2448 = vmatprep.mubr.bf16.mxu0 %v5332_v9  ;;  %v4320_v9 = vld [vmem:[#allocation24 + $0xc8] ss:$16 sps:$4 sm:$0xff]   ;;  %v4374_v14 = vld [vmem:[%s5494_s29] sm:$0xff]  }
 0x586   : > { %2418 = vmatprep.subr.bf16.mxu0 %v4307_v16  ;;  %3690 = vmatpush3.bf16.msra.mxu1 %v4374_v14  ;;  %v4376_v16 = vld [vmem:[%s5494_s29 + $0x10] sm:$0xff]   ;;  %v4403_v14 = vld [vmem:[#allocation27 + $0x70] ss:$8 sps:$4 sm:$0xff]  }
 0x587   : > { %3691 = vmatprep.subr.bf16.mxu1 %v4963_v23 }
 0x589   : > { %2419 = vmatpush1.bf16.msra.mxu0 %v4305_v17  ;;  %v4377_v17 = vld [vmem:[%s5494_s29 + $0x18] sm:$0xff]  }
 0x58a   : > { %2420 = vmatprep.subr.bf16.mxu0 %v4310_v18  ;;  %3692 = vmatpush3.bf16.msra.mxu1 %v4375_v15  ;;  %v4380_v18 = vld [vmem:[%s5494_s29 + $0x30] sm:$0xff]  }
 0x58b   : > { %3693 = vmatprep.subr.bf16.mxu1 %v4963_v23  ;;  %v4405_v15 = vld [vmem:[#allocation27 + $0x74] ss:$8 sps:$4 sm:$0xff]  }
 0x58d   : > { %2421 = vmatpush1.bf16.msra.mxu0 %v4308_v19  ;;  %v4381_v19 = vld [vmem:[%s5494_s29 + $0x38] sm:$0xff]  }
 0x58e   : > { %2422 = vmatprep.subr.bf16.mxu0 %v4313_v20  ;;  %3694 = vmatpush3.bf16.msra.mxu1 %v4376_v16  ;;  %v2792_v16 = vld [vmem:[#allocation14] sm:$0xff] }
 0x58f   : > { %3695 = vmatprep.subr.bf16.mxu1 %v4963_v23 }
 0x591   : > { %2423 = vmatpush1.bf16.msra.mxu0 %v4311_v21 }
 0x592   : > { %2424 = vmatprep.subr.bf16.mxu0 %v4316_v22  ;;  %3696 = vmatpush3.bf16.msra.mxu1 %v4377_v17  ;;  %v4382_v22 = vld [vmem:[#allocation27] ss:$8 sps:$4 sm:$0xff]  }
 0x593   : > { %3697 = vmatprep.subr.bf16.mxu1 %v4963_v23  ;;  %v2793_v17 = vld [vmem:[#allocation14 + $0x8] sm:$0xff] }
 0x595   : > { %2425 = vmatpush1.bf16.msra.mxu0 %v4314_v24  ;;  %v4384_v24 = vld [vmem:[#allocation27 + $0x4] ss:$8 sps:$4 sm:$0xff]  }
 0x596   : > { %2426 = vmatprep.subr.bf16.mxu0 %v4319_v13  ;;  %v4387_v13 = vld [vmem:[#allocation27 + $0x14] ss:$8 sps:$4 sm:$0xff]  }
 0x599   : > { %2427 = vmatpush1.bf16.msra.mxu0 %v4317_v25  ;;  %v4385_v25 = vld [vmem:[#allocation27 + $0x10] ss:$8 sps:$4 sm:$0xff]  }
 0x59a   : > { %2428 = vmatprep.subr.bf16.mxu0 %v4322_v26  ;;  %v4390_v26 = vld [vmem:[#allocation27 + $0x24] ss:$8 sps:$4 sm:$0xff]  }
 0x59d   : > { %2429 = vmatpush1.bf16.msra.mxu0 %v4320_v9  ;;  %v4388_v9 = vld [vmem:[#allocation27 + $0x20] ss:$8 sps:$4 sm:$0xff]  }
 0x59e   : > { %2430 = vmatprep.subr.bf16.mxu0 %v4325_v27  ;;  %v4393_v27 = vld [vmem:[#allocation27 + $0x34] ss:$8 sps:$4 sm:$0xff]  }
 0x5a1   : > { %2431 = vmatpush1.bf16.msra.mxu0 %v4323_v29  ;;  %v4391_v29 = vld [vmem:[#allocation27 + $0x30] ss:$8 sps:$4 sm:$0xff]  }
 0x5a2   : > { %2432 = vmatprep.subr.bf16.mxu0 %v4328_v30  ;;  %v4396_v30 = vld [vmem:[#allocation27 + $0x44] ss:$8 sps:$4 sm:$0xff]  }
 0x5a5   : > { %2433 = vmatpush1.bf16.msra.mxu0 %v4326_v31  ;;  %v4394_v31 = vld [vmem:[#allocation27 + $0x40] ss:$8 sps:$4 sm:$0xff]  }
 0x5a6   : > { %2434 = vmatprep.subr.bf16.mxu0 %v4331_v33  ;;  %v4399_v33 = vld [vmem:[#allocation27 + $0x54] ss:$8 sps:$4 sm:$0xff]  }
 0x5a9   : > { %2435 = vmatpush1.bf16.msra.mxu0 %v4329_v34  ;;  %v4397_v34 = vld [vmem:[#allocation27 + $0x50] ss:$8 sps:$4 sm:$0xff]  }
 0x5aa   : > { %2436 = vmatprep.subr.bf16.mxu0 %v4334_v35  ;;  %v4402_v35 = vld [vmem:[#allocation27 + $0x64] ss:$8 sps:$4 sm:$0xff]  }
 0x5ad   : > { %2437 = vmatpush1.bf16.msra.mxu0 %v4332_v36  ;;  %v4400_v36 = vld [vmem:[#allocation27 + $0x60] ss:$8 sps:$4 sm:$0xff]  }
 0x5ae   : > { %2438 = vmatprep.subr.bf16.mxu0 %v4337_v37  ;;  %v1832_v37 = vld [vmem:[#allocation26] sm:$0xf] }
 0x5b1   : > { %2439 = vmatpush1.bf16.msra.mxu0 %v4335_v38  ;;  %v2321_v38 = vrot.slane %v1832_v37, %v5270_v49 }
 0x5b2   : > { %2440 = vmatprep.subr.bf16.mxu0 %v4340_v39  ;;  %v2317_v39 = vrot.slane %v1832_v37, %v5266_v47 }
 0x5b5   : > { %2441 = vmatpush1.bf16.msra.mxu0 %v4338_v40 }
 0x5b6   : > { %2442 = vmatprep.subr.bf16.mxu0 %v4343_v41 }
 0x5b9   : > { %2443 = vmatpush1.bf16.msra.mxu0 %v4341_v42 }
 0x5ba   : > { %2444 = vmatprep.subr.bf16.mxu0 %v4346_v43 }
 0x5bd   : > { %2445 = vmatpush1.bf16.msra.mxu0 %v4344_v45 }
 0x5be   : > { %2446 = vmatprep.subr.bf16.mxu0 %v4349_v48 }
 0x5c1   : > { %2447 = vmatpush1.bf16.msra.mxu0 %v4347_v51 }
 0x5c2   : > { %2457 = vmatprep.subr.bf16.mxu0 %v4352_v52  ;;  %v2325_v52 = vrot.slane %v1832_v37, %v992_v2 }
 0x5c4   : > { %2449 = vmatmul.mubr.bf16.vlgmr.msra.gmra.mrb[12].mxu0 %v5344_v50  ;;  %v4365_v50 = vld [vmem:[#allocation24 + $0x2a8] ss:$16 sps:$4 sm:$0xff]  }
 0x5c5   : > { %2458 = vmatpush1.bf16.msra.mxu0 %v4350_v53  ;;  %2489 = vmatprep.mubr.bf16.mxu0 %v4962_v44 }
 0x5c6   : > { %2459 = vmatprep.subr.bf16.mxu0 %v4355_v55  ;;  %v2329_v55 = vrot.slane %v1832_v37, %v996_v54  ;;  %v2807_v37 = vld [vmem:[#allocation14 + $0x78] sm:$0xff] }
 0x5c9   : > { %2460 = vmatpush1.bf16.msra.mxu0 %v4353_v56 }
 0x5ca   : > { %2461 = vmatprep.subr.bf16.mxu0 %v4358_v57 }
 0x5cd   : > { %2462 = vmatpush1.bf16.msra.mxu0 %v4356_v58 }
 0x5ce   : > { %2463 = vmatprep.subr.bf16.mxu0 %v4361_v28 }
 0x5d1   : > { %2464 = vmatpush1.bf16.msra.mxu0 %v4359_v60 }
 0x5d2   : > { %2465 = vmatprep.subr.bf16.mxu0 %v4364_v61 }
 0x5d5   : > { %2466 = vmatpush1.bf16.msra.mxu0 %v4362_v62 }
 0x5d6   : > { %2467 = vmatprep.subr.bf16.mxu0 %v4367_v63 }
 0x5d9   : > { %2468 = vmatpush1.bf16.msra.mxu0 %v4365_v50  ;;  %v1730_v50 = vld [vmem:[#allocation32 + $0x1] sm:$0x1] }
 0x5da   : > { %2469 = vmatprep.subr.bf16.mxu0 %v4370_v0 }
 0x5dd   : > { %v5358_v7 = vpop.f32.mrb[12].mxu1  ;;  %2470 = vmatpush1.bf16.msra.mxu0 %v4368_v3 }
 0x5de   : > { %v5360_v11 = vpop.f32.mrb[13].mxu1  ;;  %2471 = vmatprep.subr.bf16.mxu0 %v4373_v6  ;;  %v3962_v41 = vadd.f32 %v5358_v7, %v2317_v39  ;;  %v5398_v39 = vld [vmem:[#allocation36 + $0x1] sm:$0x1] }
 0x5df   : > { %v2413_v59 = vpop.f32.mrb[14].mxu1  ;;  %v3963_v40 = vadd.f32 %v5360_v11, %v2321_v38 }
 0x5e0   : > { %v2414_v12 = vpop.f32.mrb[15].mxu1  ;;  %v3416_v43 = vmul.f32 -1.442695, %v3962_v41 }
 0x5e1   : > { %2472 = vmatpush1.bf16.msra.mxu0 %v4371_v10  ;;  %v3417_v42 = vmul.f32 -1.442695, %v3963_v40  ;;  %v2539_v40 = vld [vmem:[%s5495_s16] sm:$0x1] }
 0x5e2   : > { %2751 = vmatprep.subr.bf16.mxu0 %v4384_v24  ;;  %v2798_v24 = vld [vmem:[#allocation14 + $0x30] sm:$0xff] }
 0x5e3   : > { %4422 = vpow2.f32 %v3417_v42  ;;  %v2635_v42 = vld [vmem:[%s5496_s5] sm:$0x1] }
 0x5e4   : > { %2490 = vmatmul.mubr.bf16.vlgmr.msra.gmra.mrb[12].mxu0 %v5348_v8  ;;  %v4378_v8 = vld [vmem:[%s5494_s29 + $0x20] sm:$0xff]   ;;  %4424 = vpow2.f32 %v3416_v43 }
 0x5e5   : > { %2783 = vmatprep.mubr.bf16.mxu0 %v4962_v44  ;;  %3698 = vmatpush3.bf16.msra.mxu1 %v4378_v8  ;;  %v4379_v44 = vld [vmem:[%s5494_s29 + $0x28] sm:$0xff]   ;;  %v3887_v8 = vpack.c.bf16 %v2793_v17, %v2792_v16  ;;  %v2628_v43 = vld [vmem:[%s5497_s1] sm:$0x1] }
 0x5e6   : > { %3699 = vmatprep.subr.bf16.mxu1 %v4963_v23  ;;  %2752 = vmatpush1.bf16.msra.mxu0 %v4382_v22 }
 0x5e7   : > { %2753 = vmatprep.subr.bf16.mxu0 %v4387_v13  ;;  %v2799_v13 = vld [vmem:[#allocation14 + $0x38] sm:$0xff] }
 0x5e9   : > { %3700 = vmatpush3.bf16.msra.mxu1 %v4379_v44  ;;  %v2794_v44 = vld [vmem:[#allocation14 + $0x10] sm:$0xff] }
 0x5ea   : > { %3701 = vmatprep.subr.bf16.mxu1 %v4963_v23  ;;  %2754 = vmatpush1.bf16.msra.mxu0 %v4385_v25  ;;  %v3896_v25 = vpack.c.bf16 %v2799_v13, %v2798_v24 }
 0x5eb   : > { %2755 = vmatprep.subr.bf16.mxu0 %v4390_v26  ;;  %v2800_v26 = vld [vmem:[#allocation14 + $0x40] sm:$0xff] }
 0x5ed   : > { %3702 = vmatpush3.bf16.msra.mxu1 %v4380_v18  ;;  %v4423_v45 = vpop.eup %4422  ;;  %v2795_v18 = vld [vmem:[#allocation14 + $0x18] sm:$0xff] }
 0x5ee   : > { %3703 = vmatprep.subr.bf16.mxu1 %v4963_v23  ;;  %2756 = vmatpush1.bf16.msra.mxu0 %v4388_v9  ;;  %v4425_v48 = vpop.eup %4424  ;;  %v2507_v51 = vadd.f32 1.0, %v4423_v45  ;;  %v2801_v9 = vld [vmem:[#allocation14 + $0x48] sm:$0xff] }
 0x5ef   : > { %2757 = vmatprep.subr.bf16.mxu0 %v4393_v27  ;;  %v2501_v53 = vadd.f32 1.0, %v4425_v48  ;;  %v3899_v27 = vpack.c.bf16 %v2801_v9, %v2800_v26 }
 0x5f0   : > { %4426 = vrcp.f32 %v2507_v51 }
 0x5f1   : > { %3704 = vmatpush3.bf16.msra.mxu1 %v4381_v19  ;;  %4428 = vrcp.f32 %v2501_v53  ;;  %v3890_v19 = vpack.c.bf16 %v2795_v18, %v2794_v44 }
 0x5f2   : > { %3886 = vmatprep.subr.bf16.mxu1 %v4965_v32  ;;  %2758 = vmatpush1.bf16.msra.mxu0 %v4391_v29  ;;  %v2802_v29 = vld [vmem:[#allocation14 + $0x50] sm:$0xff] }
 0x5f3   : > { %2759 = vmatprep.subr.bf16.mxu0 %v4396_v30  ;;  %v2803_v30 = vld [vmem:[#allocation14 + $0x58] sm:$0xff] }
 0x5f6   : > { %2760 = vmatpush1.bf16.msra.mxu0 %v4394_v31  ;;  %v3902_v31 = vpack.c.bf16 %v2803_v30, %v2802_v29 }
 0x5f7   : > { %2761 = vmatprep.subr.bf16.mxu0 %v4399_v33  ;;  %v2804_v33 = vld [vmem:[#allocation14 + $0x60] sm:$0xff] }
 0x5fa   : > { %2762 = vmatpush1.bf16.msra.mxu0 %v4397_v34  ;;  %v4427_v63 = vpop.eup %4426  ;;  %v2805_v34 = vld [vmem:[#allocation14 + $0x68] sm:$0xff] }
 0x5fb   : > { %2763 = vmatprep.subr.bf16.mxu0 %v4402_v35  ;;  %v4429_v0 = vpop.eup %4428  ;;  %v2517_v2 = vmul.f32 %v4427_v63, %v1730_v50  ;;  %v3905_v35 = vpack.c.bf16 %v2805_v34, %v2804_v33 }
 0x5fe   : > { %2764 = vmatpush1.bf16.msra.mxu0 %v4400_v36  ;;  %v2806_v36 = vld [vmem:[#allocation14 + $0x70] sm:$0xff] }
 0x5ff   : > { %2765 = vmatprep.subr.bf16.mxu0 %v4405_v15  ;;  %v3908_v38 = vpack.c.bf16 %v2807_v37, %v2806_v36 }
 0x602   : > { %2766 = vmatpush1.bf16.msra.mxu0 %v4403_v14 }
 0x603   : > { %3910 = vmatprep.subr.bf16.mxu0 %v4965_v32 }
 0x657   : > { %v1721_v20 = vpop.f32.mrb[10].mxu0 }
 0x658   : > { %1727 = vst [vmem:[#allocation33] sm:$0x1] %v1721_v20  ;;  %v3688_v21 = vpop.f32.mrb[11].mxu0  ;;  %v2796_v20 = vld [vmem:[#allocation14 + $0x20] sm:$0xff] }
 0x659   : > { %v2797_v21 = vld [vmem:[#allocation14 + $0x28] sm:$0xff] }
 0x65a   : > { %v3893_v22 = vpack.c.bf16 %v2797_v21, %v2796_v20 }
 0x6b7   : > { %v2491_v56 = vpop.f32.mrb[12].mxu0 }
 0x6b8   : > { %v3964_v57 = vadd.f32 %v2491_v56, %v2325_v52  ;;  %v2493_v58 = vpop.f32.mrb[13].mxu0 }
 0x6b9   : > { %v3965_v28 = vadd.f32 %v2493_v58, %v2329_v55  ;;  %v2495_v60 = vpop.f32.mrb[14].mxu0 }
 0x6ba   : > { %4430 = vtanh.f32 %v3964_v57  ;;  %v2496_v61 = vpop.f32.mrb[15].mxu0  ;;  %v2640_v60 = vld [vmem:[#allocation5] sm:$0x1] }
 0x6bb   : > { %v3418_v62 = vmul.f32 -1.442695, %v3965_v28  ;;  %v2633_v61 = vld [vmem:[#allocation4] sm:$0x1] }
 0x6bd   : > { %4432 = vpow2.f32 %v3418_v62 }
 0x6c4   : > { %v4431_v3 = vpop.eup %4430 }
 0x6c5   : > { %v2518_v6 = vmul.f32 %v4431_v3, %v4429_v0  ;;  %v2659_v3 = vld [vmem:[%s5498_s30] sm:$0x3] }
 0x6c7   : > { %v4433_v7 = vpop.eup %4432  ;;  %v2519_v46 = vadd.f32 %v2518_v6, %v2517_v2  ;;  %v2744_v2 = vrot.slane %v2659_v3, %v5266_v47  ;;  %v2748_v6 = vrot.slane %v2659_v3, %v5270_v49 }
 0x6c8   : > { %v2514_v54 = vadd.f32 1.0, %v4433_v7 }
 0x6c9   : > { %4434 = vtanh.f32 %v2519_v46  ;;  %3056 = vst [vmem:[#allocation32 + $0x1] sm:$0x1] %v2519_v46 }
 0x6ca   : > { %4436 = vrcp.f32 %v2514_v54 }
 0x6d3   : > { %v4435_v10 = vpop.eup %4434 }
 0x6d4   : > { %v4437_v11 = vpop.eup %4436 }
 0x6d5   : > { %v2521_v59 = vmul.f32 %v4437_v11, %v4435_v10 }
 0x6d7   : > { %v2522_v12 = vpack.c.bf16 %v2521_v59, %v2521_v59 }
 0x6d9   : > { %3706 = vmatmul.mubr.bf16.vlgmr.msra.gmra.mrb[16].mxu1 %v2522_v12 }
 0x6da   : > { %3741 = vmatprep.mubr.msk.f32.mxu1 %vm4964_vm0, %v4963_v23  ;;  %3888 = vmatpush3.bf16.msra.mxu1 %v3887_v8 }
 0x6db   : > { %3889 = vmatprep.subr.bf16.mxu1 %v4965_v32 }
 0x6de   : > { %3891 = vmatpush3.bf16.msra.mxu1 %v3890_v19 }
 0x6df   : > { %3892 = vmatprep.subr.bf16.mxu1 %v4965_v32 }
 0x6e2   : > { %3894 = vmatpush3.bf16.msra.mxu1 %v3893_v22 }
 0x6e3   : > { %3895 = vmatprep.subr.bf16.mxu1 %v4965_v32 }
 0x6e6   : > { %3897 = vmatpush3.bf16.msra.mxu1 %v3896_v25 }
 0x6e7   : > { %3898 = vmatprep.subr.bf16.mxu1 %v4965_v32 }
 0x6ea   : > { %3900 = vmatpush3.bf16.msra.mxu1 %v3899_v27 }
 0x6eb   : > { %3901 = vmatprep.subr.bf16.mxu1 %v4965_v32 }
 0x6ee   : > { %3903 = vmatpush3.bf16.msra.mxu1 %v3902_v31 }
 0x6ef   : > { %3904 = vmatprep.subr.bf16.mxu1 %v4965_v32 }
 0x6f2   : > { %3906 = vmatpush3.bf16.msra.mxu1 %v3905_v35 }
 0x6f3   : > { %3907 = vmatprep.subr.bf16.mxu1 %v4965_v32 }
 0x6f6   : > { %3909 = vmatpush3.bf16.msra.mxu1 %v3908_v38 }
 0x6f7   : > { %3934 = vmatprep.subr.bf16.mxu1 %v4965_v32 }
 0x6f9   : > { %3742 = vmatmul.mubr.f32.vlgmr.msra.gmra.mrb[10].mxu1 %v5398_v39 }
 0x6fa   : > { %3811 = vmatprep.mubr.msk.f32.mxu1 %vm4964_vm0, %v4963_v23 }
 0x7ac   : > { %v2622_v41 = vpop.f32.mrb[16].mxu1 }
 0x7ad   : > { %v2623_v45 = vadd.f32 %v2622_v41, %v2539_v40  ;;  %v3707_v48 = vpop.f32.mrb[17].mxu1 }
 0x7ae   : > { %v2625_v51 = vpop.f32.mrb[18].mxu1 }
 0x7af   : > { %3055 = vst [vmem:[#allocation30 + $0x1] sm:$0x1] %v2623_v45  ;;  %v3708_v52 = vpop.f32.mrb[19].mxu1  ;;  %v2642_v53 = vpack.c.bf16 %v2623_v45, %v2623_v45  ;;  %v2636_v55 = vmul.f32 %v2635_v42, %v2623_v45  ;;  %v2629_v56 = vmul.f32 %v2628_v43, %v2623_v45 }
 0x7b1   : > { %2784 = vmatmul.mubr.bf16.vlgmr.msra.gmra.mrb[16].mxu0 %v2642_v53  ;;  %v2637_v57 = vsel %vm1298_vm1, %v2636_v55, 0.0  ;;  %v2630_v58 = vsel %vm1298_vm1, %v2629_v56, 0.0 }
 0x7b2   : > { %2638 = vadd.xlane.f32.xlu0 %v2637_v57  ;;  %2631 = vadd.xlane.f32.xlu1 %v2630_v58 }
 0x7b3   : > { %3912 = vmatpush3.bf16.msra.mxu0 %v3887_v8  ;;  %3776 = vmatprep.mubr.msk.f32.mxu0 %vm4964_vm0, %v4963_v23 }
 0x7b4   : > { %3913 = vmatprep.subr.bf16.mxu0 %v4965_v32 }
 0x7b7   : > { %3915 = vmatpush3.bf16.msra.mxu0 %v3890_v19 }
 0x7b8   : > { %3916 = vmatprep.subr.bf16.mxu0 %v4965_v32 }
 0x7bb   : > { %3918 = vmatpush3.bf16.msra.mxu0 %v3893_v22 }
 0x7bc   : > { %3919 = vmatprep.subr.bf16.mxu0 %v4965_v32 }
 0x7bf   : > { %3921 = vmatpush3.bf16.msra.mxu0 %v3896_v25 }
 0x7c0   : > { %3922 = vmatprep.subr.bf16.mxu0 %v4965_v32 }
 0x7c3   : > { %3924 = vmatpush3.bf16.msra.mxu0 %v3899_v27 }
 0x7c4   : > { %3925 = vmatprep.subr.bf16.mxu0 %v4965_v32 }
 0x7c7   : > { %3927 = vmatpush3.bf16.msra.mxu0 %v3902_v31 }
 0x7c8   : > { %3928 = vmatprep.subr.bf16.mxu0 %v4965_v32 }
 0x7cb   : > { %3930 = vmatpush3.bf16.msra.mxu0 %v3905_v35 }
 0x7cc   : > { %3931 = vmatprep.subr.bf16.mxu0 %v4965_v32  ;;  %v5418_v23 = vpop.f32.mrb[10].mxu1 }
 0x7cd   : > { %v3743_v28 = vpop.f32.mrb[11].mxu1 }
 0x7cf   : > { %3933 = vmatpush3.bf16.msra.mxu0 %v3908_v38 }
 0x83f   : > { %v2639_v62 = vpop.xlane.xlu0 %2638  ;;  %v2632_v63 = vpop.xlane.xlu1 %2631 }
 0x840   : > { %v2641_v50 = vadd.f32 %v2640_v60, %v2639_v62  ;;  %v2634_v0 = vadd.f32 %v2633_v61, %v2632_v63 }
 0x842   : > { %2880 = vperm.xlu0 %4053, %v2641_v50   ;;  %2889 = vperm.xlu1 %4052, %v2634_v0  }
 0x884   : > { %v2785_v7 = vpop.f32.mrb[16].mxu0 }
 0x885   : > { %v2786_v46 = vadd.f32 %v2785_v7, %v2744_v2  ;;  %v2787_v54 = vpop.f32.mrb[17].mxu0 }
 0x886   : > { %v2788_v10 = vadd.f32 %v2787_v54, %v2748_v6  ;;  %v2789_v11 = vpop.f32.mrb[18].mxu0 }
 0x887   : > { %3443 = vst [vmem:[%s3154_s9 + $0x88] sm:$0x1] %v2786_v46  ;;  %v2790_v59 = vpop.f32.mrb[19].mxu0 }
 0x888   : > { %3060 = vst [vmem:[%s3059_s10] sm:$0x1] %v2788_v10 }
 0x88e   : > { %v2969_v12 = vld [vmem:[#allocation35 + $0x80] sm:$0xff]  ;;  %v2970_v14 = vld [vmem:[#allocation35 + $0x88] sm:$0xff]  ;;  %v2971_v16 = vld [vmem:[#allocation35 + $0x90] sm:$0xff] }
 0x88f   : > { %v3935_v15 = vpack.c.bf16 %v2970_v14, %v2969_v12  ;;  %v2972_v17 = vld [vmem:[#allocation35 + $0x98] sm:$0xff]  ;;  %v2973_v49 = vld [vmem:[#allocation35 + $0xa0] sm:$0xff]  ;;  %v2974_v8 = vld [vmem:[#allocation35 + $0xa8] sm:$0xff] }
 0x890   : > { %v3938_v47 = vpack.c.bf16 %v2972_v17, %v2971_v16  ;;  %v3941_v44 = vpack.c.bf16 %v2974_v8, %v2973_v49  ;;  %v2975_v18 = vld [vmem:[#allocation35 + $0xb0] sm:$0xff]  ;;  %v2976_v19 = vld [vmem:[#allocation35 + $0xb8] sm:$0xff]  ;;  %v2977_v21 = vld [vmem:[#allocation35 + $0xc0] sm:$0xff] }
 0x891   : > { %3936 = vmatpush3.bf16.msra.mxu1 %v3935_v15  ;;  %v3944_v20 = vpack.c.bf16 %v2976_v19, %v2975_v18  ;;  %v2978_v22 = vld [vmem:[#allocation35 + $0xc8] sm:$0xff]  ;;  %v2979_v13 = vld [vmem:[#allocation35 + $0xd0] sm:$0xff]  ;;  %v2980_v25 = vld [vmem:[#allocation35 + $0xd8] sm:$0xff] }
 0x892   : > { %3937 = vmatprep.subr.bf16.mxu1 %v4965_v32  ;;  %v3947_v24 = vpack.c.bf16 %v2978_v22, %v2977_v21  ;;  %v3950_v26 = vpack.c.bf16 %v2980_v25, %v2979_v13  ;;  %v2981_v9 = vld [vmem:[#allocation35 + $0xe0] sm:$0xff]  ;;  %v2982_v27 = vld [vmem:[#allocation35 + $0xe8] sm:$0xff]  ;;  %v2983_v30 = vld [vmem:[#allocation35 + $0xf0] sm:$0xff] }
 0x893   : > { %v3953_v29 = vpack.c.bf16 %v2982_v27, %v2981_v9  ;;  %v2984_v31 = vld [vmem:[#allocation35 + $0xf8] sm:$0xff] }
 0x894   : > { %v3956_v33 = vpack.c.bf16 %v2984_v31, %v2983_v30 }
 0x895   : > { %3939 = vmatpush3.bf16.msra.mxu1 %v3938_v47 }
 0x896   : > { %3940 = vmatprep.subr.bf16.mxu1 %v4965_v32 }
 0x899   : > { %3942 = vmatpush3.bf16.msra.mxu1 %v3941_v44 }
 0x89a   : > { %3943 = vmatprep.subr.bf16.mxu1 %v4965_v32 }
 0x89d   : > { %3945 = vmatpush3.bf16.msra.mxu1 %v3944_v20 }
 0x89e   : > { %3946 = vmatprep.subr.bf16.mxu1 %v4965_v32 }
 0x8a1   : > { %3948 = vmatpush3.bf16.msra.mxu1 %v3947_v24 }
 0x8a2   : > { %3949 = vmatprep.subr.bf16.mxu1 %v4965_v32 }
 0x8a5   : > { %3951 = vmatpush3.bf16.msra.mxu1 %v3950_v26 }
 0x8a6   : > { %3952 = vmatprep.subr.bf16.mxu1 %v4965_v32 }
 0x8a9   : > { %3954 = vmatpush3.bf16.msra.mxu1 %v3953_v29 }
 0x8aa   : > { %3955 = vmatprep.subr.bf16.mxu1 %v4965_v32 }
 0x8ad   : > { %3957 = vmatpush3.bf16.msra.mxu1 %v3956_v33 }
 0x8c1   : > { %v2881_v34 = vpop.permute.xlu0 %2880  ;;  %v2890_v40 = vpop.permute.xlu1 %2889 }
 0x8c2   : > { %v2883_v35 = vsub.f32 %v2881_v34, %v5418_v23 }
 0x8c4   : > { %v2884_v36 = vmax.f32 %v2883_v35, 0.0 }
 0x8c6   : > { %v2885_v37 = vsub.f32 %v5398_v39, %v2884_v36 }
 0x8c8   : > { %v2886_v38 = vmax.f32 %v2885_v37, 0.0 }
 0x8ca   : > { %v2892_v41 = vsel %vm1557_vm2, %v2890_v40, %v2886_v38 }
 0x8cb   : > { %3058 = vst [vmem:[#allocation36 + $0x1] sm:$0x1] %v2892_v41  ;;  %3777 = vmatmul.mubr.f32.vlgmr.msra.gmra.mrb[20].mxu0 %v2892_v41 }
 0x99e   : > { %v2959_v42 = vpop.f32.mrb[20].mxu0 }
 0x99f   : > { %v2963_v43 = vsub.f32 1.0, %v2959_v42  ;;  %v3778_v45 = vpop.f32.mrb[21].mxu0 }
 0x9a1   : > { %v2964_v32 = vmax.f32 %v2963_v43, 0.0 }
 0x9a3   : > { %v2965_v48 = vmin.f32 %v2892_v41, %v2964_v32 }
 0x9a5   : > { %3812 = vmatmul.mubr.f32.vlgmr.msra.gmra.mrb[20].mxu1 %v2965_v48 }
 0xa73   :  { %392 = sbr.rel (!%p390_p0) target bundleno = 338 (0x152), region = 267 }
 0xa78   : > { %v3051_v51 = vpop.f32.mrb[20].mxu1 }
 0xa79   : > { %3057 = vst [vmem:[#allocation33 + $0x1] sm:$0x1] %v3051_v51  ;;  %v3813_v52 = vpop.f32.mrb[21].mxu1 }
 0xa7a   :  { %4757 = shalt.err (!%p4754_p5)
}
 0xa7b   :  { %s5499_s18 = sld [smem:[#allocation61_spill]] }
 0xa81   :  { %s4758_s6 = scalar_lea.hbm %s5499_s18, 32 }
 0xa82   :  { %p4759_p6 = scmp.ne.s32.totalorder %s5499_s18, %s4758_s6  ;;  %p4762_p7 = scmp.lt.u32.totalorder %s4758_s6, %s5499_s18 }
 0xa84   :  { %p4764_p8 = pnand %p4762_p7, %p4759_p6 }
 0xa86   :  { %4767 = shalt.err (!%p4764_p8)
}
 0xa87   :  { %3080 = dma.vmem_to_hbm [thread:$0]  %s3078_s11, 32, %s5499_s18, [#allocation31]  }
 0xa88   :  { %s4768_s22 = scalar_lea.vmem %s3098_s17, 32  ;;  %p4773_p10 = scmp.lt.s32.totalorder %s3098_s17, %s3098_s17 }
 0xa89   :  { %p4769_p9 = scmp.ne.s32.totalorder %s3098_s17, %s4768_s22  ;;  %p4774_p11 = scmp.lt.s32.totalorder %s4768_s22, %s4768_s22 }
 0xa8b   :  { %p4775_p12 = por %p4774_p11, %p4773_p10 }
 0xa8d   :  { %p4776_p13 = pnand %p4775_p12, %p4769_p9 }
 0xa8f   :  { %4779 = shalt.err (!%p4776_p13)
}
 0xa90   :  { %s5500_s27 = sld [smem:[#allocation63_spill]] }
 0xa96   :  { %s4780_s23 = scalar_lea.hbm %s5500_s27, 32 }
 0xa97   :  { %p4781_p0 = scmp.ne.s32.totalorder %s5500_s27, %s4780_s23  ;;  %p4784_p1 = scmp.lt.u32.totalorder %s4780_s23, %s5500_s27 }
 0xa99   :  { %p4786_p2 = pnand %p4784_p1, %p4781_p0 }
 0xa9b   :  { %4789 = shalt.err (!%p4786_p2)
}
 0xa9c   :  { %3100 = dma.vmem_to_hbm [thread:$0]  %s3098_s17, 32, %s5500_s27, [#allocation34]  }
 0xa9d   :  { %s4968_s20 = smov [#allocation29]   ;;  %s4969_s25 = smov [#allocation32]  }
 0xa9e   :  { %s3067_s13 = sshll.u32 %s4968_s20, 4  ;;  %s3087_s4 = sshll.u32 %s4969_s25, 4  ;;  %s3068_s13 = int_to_ptr.vmem [resolvable:$true] %s3067_s13  ;;  %s3088_s4 = int_to_ptr.vmem [resolvable:$true] %s3087_s4 }
 0xa9f   :  { %s4790_s8 = scalar_lea.vmem %s3068_s13, 128  ;;  %p4795_p4 = scmp.lt.s32.totalorder %s3068_s13, %s3068_s13 }
 0xaa0   :  { %p4791_p3 = scmp.ne.s32.totalorder %s3068_s13, %s4790_s8  ;;  %p4796_p5 = scmp.lt.s32.totalorder %s4790_s8, %s4790_s8 }
 0xaa2   :  { %p4797_p6 = por %p4796_p5, %p4795_p4 }
 0xaa4   :  { %p4798_p7 = pnand %p4797_p6, %p4791_p3 }
 0xaa6   :  { %4801 = shalt.err (!%p4798_p7)
}
 0xaa7   :  { %s5501_s26 = sld [smem:[#allocation60_spill]] }
 0xaad   :  { %s4802_s0 = scalar_lea.hbm %s5501_s26, 128 }
 0xaae   :  { %p4803_p8 = scmp.ne.s32.totalorder %s5501_s26, %s4802_s0  ;;  %p4806_p9 = scmp.lt.u32.totalorder %s4802_s0, %s5501_s26 }
 0xab0   :  { %p4808_p10 = pnand %p4806_p9, %p4803_p8 }
 0xab2   :  { %4811 = shalt.err (!%p4808_p10)
}
 0xab3   :  { %3070 = dma.vmem_to_hbm [thread:$0]  %s3068_s13, 128, %s5501_s26, [#allocation8]  }
 0xab4   :  { %s4812_s3 = scalar_lea.vmem %s3088_s4, 32  ;;  %p4817_p12 = scmp.lt.s32.totalorder %s3088_s4, %s3088_s4 }
 0xab5   :  { %p4813_p11 = scmp.ne.s32.totalorder %s3088_s4, %s4812_s3  ;;  %p4818_p13 = scmp.lt.s32.totalorder %s4812_s3, %s4812_s3 }
 0xab7   :  { %p4819_p0 = por %p4818_p13, %p4817_p12 }
 0xab9   :  { %p4820_p1 = pnand %p4819_p0, %p4813_p11 }
 0xabb   :  { %4823 = shalt.err (!%p4820_p1)
}
 0xabc   :  { %s5502_s21 = sld [smem:[#allocation62_spill]] }
 0xac2   :  { %s4824_s9 = scalar_lea.hbm %s5502_s21, 32 }
 0xac3   :  { %p4825_p2 = scmp.ne.s32.totalorder %s5502_s21, %s4824_s9  ;;  %p4828_p3 = scmp.lt.u32.totalorder %s4824_s9, %s5502_s21 }
 0xac5   :  { %p4830_p4 = pnand %p4828_p3, %p4825_p2 }
 0xac7   :  { %4833 = shalt.err (!%p4830_p4)
}
 0xac8   :  { %3090 = dma.vmem_to_hbm [thread:$0]  %s3088_s4, 32, %s5502_s21, [#allocation31]  }
 0xac9   :  { %s4970_s19 = smov [#allocation35]   ;;  %s4971_s16 = smov [#allocation36]  }
 0xaca   :  { %s3106_s29 = sshll.u32 %s4970_s19, 4  ;;  %s3119_s5 = sshll.u32 %s4971_s16, 4  ;;  %s3107_s29 = int_to_ptr.vmem [resolvable:$true] %s3106_s29  ;;  %s3120_s5 = int_to_ptr.vmem [resolvable:$true] %s3119_s5 }
 0xacb   :  { %s4834_s1 = scalar_lea.vmem %s3107_s29, 4096  ;;  %p4839_p6 = scmp.lt.s32.totalorder %s3107_s29, %s3107_s29 }
 0xacc   :  { %p4835_p5 = scmp.ne.s32.totalorder %s3107_s29, %s4834_s1  ;;  %p4840_p7 = scmp.lt.s32.totalorder %s4834_s1, %s4834_s1 }
 0xace   :  { %p4841_p8 = por %p4840_p7, %p4839_p6 }
 0xad0   :  { %p4842_p9 = pnand %p4841_p8, %p4835_p5 }
 0xad2   :  { %4845 = shalt.err (!%p4842_p9)
}
 0xad3   :  { %s4846_s30 = scalar_lea.hbm %s5118_s28, 4096 }
 0xad4   :  { %p4847_p10 = scmp.ne.s32.totalorder %s5118_s28, %s4846_s30  ;;  %p4850_p11 = scmp.lt.u32.totalorder %s4846_s30, %s5118_s28 }
 0xad6   :  { %p4852_p12 = pnand %p4850_p11, %p4847_p10 }
 0xad8   :  { %4855 = shalt.err (!%p4852_p12)
}
 0xad9   :  { %3112 = dma.vmem_to_hbm [thread:$0]  %s3107_s29, 4096, %s5118_s28, [#allocation34], %s4950_s24, %s4950_s24, %s4951_s2  }
 0xada   :  { %s4856_s10 = scalar_lea.vmem %s3120_s5, 32  ;;  %p4861_p0 = scmp.lt.s32.totalorder %s3120_s5, %s3120_s5 }
 0xadb   :  { %p4857_p13 = scmp.ne.s32.totalorder %s3120_s5, %s4856_s10  ;;  %p4862_p1 = scmp.lt.s32.totalorder %s4856_s10, %s4856_s10 }
 0xadd   :  { %p4863_p2 = por %p4862_p1, %p4861_p0 }
 0xadf   :  { %p4864_p3 = pnand %p4863_p2, %p4857_p13 }
 0xae1   :  { %4867 = shalt.err (!%p4864_p3)
}
 0xae2   :  { %s4868_s12 = scalar_lea.hbm %s5123_s7, 32 }
 0xae3   :  { %p4869_p4 = scmp.ne.s32.totalorder %s5123_s7, %s4868_s12  ;;  %p4872_p5 = scmp.lt.u32.totalorder %s4868_s12, %s5123_s7 }
 0xae5   :  { %p4874_p6 = pnand %p4872_p5, %p4869_p4 }
 0xae7   :  { %4877 = shalt.err (!%p4874_p6)
}
 0xae8   :  { %3122 = dma.vmem_to_hbm [thread:$0]  %s3120_s5, 32, %s5123_s7, [#allocation37]  }
 0xae9   :  { %4898 = dma.done.wait [#allocation8], 128  }
 0xaea   :  { %4899 = vsyncadd [#allocation8], 4294967168 }
 0xaeb   :  { %4900 = dma.done.wait [#allocation31], 64  }
 0xaec   :  { %4901 = vsyncadd [#allocation31], 4294967232 }
 0xaed   :  { %4902 = dma.done.wait [#allocation34], 4128  }
 0xaee   :  { %4903 = vsyncadd [#allocation34], 4294963168 }
 0xaef   :  { %4904 = dma.done.wait [#allocation37], 32  }
 0xaf0   :  { %4905 = vsyncadd [#allocation37], 4294967264 }
 0xaf1   :  { %3141 = vsyncpa [#allocation7], 1 }
 0xaf2   :  { %3142 = vsyncpa [#allocation10], 1 }
 0xaf3   :  { %3143 = vsyncpa [#allocation13], 1 }
 0xaf4   :  { %3144 = vsyncpa [#allocation16], 1 }
 0xaf5   :  { %3145 = vsyncpa [#allocation19], 1 }
 0xaf6   :  { %3146 = vsyncpa [#allocation22], 1 }
 0xaf7   :  { %3147 = vsyncpa [#allocation25], 1 }
 0xaf8   :  { %3148 = vsyncpa [#allocation28], 1 }
 0xaf9   :  { %3149 = vsyncpa [#allocation8], 1 }
 0xafa   :  { %3150 = vsyncpa [#allocation31], 1 }
 0xafb   :  { %3151 = vsyncpa [#allocation34], 1 }
 0xafc   :  { %3152 = vsyncpa [#allocation37], 1 }

</bundles_post_ra>
